<compile_context>
chip_gen: v7x
topology: tpu7x:2x2x1
jax: 0.10.0
libtpu: 0.0.40
codegen_flags: <defaults>
</compile_context>

<pallas_src>
import jax
import jax.numpy as jnp
from jax import lax
from jax.experimental import pallas as pl
from jax.experimental.pallas import tpu as pltpu

SOS_token = 1
LANE = 128


def seq2seq_kernel(enc_emb_ref, dec_emb_ref,
                   w_ih_enc_ref, w_hh_enc_ref, b_gi_enc_ref, b_hn_enc_ref,
                   w_ih_dec_ref, w_hh_dec_ref, b_gi_dec_ref, b_hn_dec_ref,
                   w_out_ref, b_out_ref, tgt_idx_ref,
                   loss_ref):
    S, B, H = enc_emb_ref.shape
    T = dec_emb_ref.shape[0]
    GW = w_hh_enc_ref.shape[0]          # padded per-gate band width (multiple of 128)
    O = w_out_ref.shape[1]

    # ---- hoisted, fused input-side matmuls: one matmul per RNN for all gates ----
    enc_x = enc_emb_ref[...].reshape(S * B, H)                               # (S*B, H)
    gi_e = (jnp.dot(enc_x, w_ih_enc_ref[...], preferred_element_type=jnp.float32)
            + b_gi_enc_ref[...]).reshape(S, B, 3 * GW)                       # (S, B, 3*GW)

    dec_x = jnp.maximum(dec_emb_ref[...], 0.0).reshape(T * B, H)             # relu(embedding)
    gi_d = (jnp.dot(dec_x, w_ih_dec_ref[...], preferred_element_type=jnp.float32)
            + b_gi_dec_ref[...]).reshape(T, B, 3 * GW)                       # (T, B, 3*GW)

    w_hh_e = w_hh_enc_ref[...]                                               # (GW, 3*GW)
    w_hh_d = w_hh_dec_ref[...]
    b_hn_e = b_hn_enc_ref[...]                                               # (1, GW)
    b_hn_d = b_hn_dec_ref[...]

    def gru_step(gi, h, w_hh, b_hn):
        # Single fused MXU op on the serial path; gates read as full 128-lane bands.
        gh = jnp.dot(h, w_hh, preferred_element_type=jnp.float32)            # (B, 3*GW)
        r = jax.nn.sigmoid(gi[:, 0:GW] + gh[:, 0:GW])
        z = jax.nn.sigmoid(gi[:, GW:2 * GW] + gh[:, GW:2 * GW])
        n = jnp.tanh(gi[:, 2 * GW:3 * GW] + r * (gh[:, 2 * GW:3 * GW] + b_hn))
        return (1.0 - z) * n + z * h

    # h carried as one (B, GW) vreg; lanes >= H provably remain exactly 0.
    h = jnp.zeros((B, GW), jnp.float32)

    # ---- encoder recurrence (fully unrolled, S static) ----
    for s in range(S):
        h = gru_step(gi_e[s], h, w_hh_e, b_hn_e)

    # ---- decoder recurrence; keep hidden states in registers (no scratch) ----
    hs = []
    for t in range(T):
        h = gru_step(gi_d[t], h, w_hh_d, b_hn_d)
        hs.append(h)

    # ---- batched output projection + log-softmax + NLL, once after the loop ----
    h_all = jnp.concatenate(hs, axis=0)                                      # (T*B, GW), row = t*B + b
    logits = jnp.dot(h_all, w_out_ref[...],
                     preferred_element_type=jnp.float32) + b_out_ref[...]    # (T*B, O)
    m = jnp.max(logits, axis=1, keepdims=True)
    lse = m + jnp.log(jnp.sum(jnp.exp(logits - m), axis=1, keepdims=True))
    log_probs = logits - lse                                                 # LogSoftmax(dim=1)

    col = lax.broadcasted_iota(jnp.int32, (T * B, O), 1)
    onehot = (col == tgt_idx_ref[...]).astype(jnp.float32)                   # (T*B, O)
    picked = log_probs * onehot                                              # (T*B, O)

    # Group-sum over decoder steps per batch element: loss[b] = -sum_t picked[t*B + b].
    rowb = lax.broadcasted_iota(jnp.int32, (B, T * B), 0)
    colj = lax.broadcasted_iota(jnp.int32, (B, T * B), 1)
    sel = ((colj % B) == rowb).astype(jnp.float32)                           # (B, T*B)
    loss_ref[...] = -jnp.sum(
        jnp.dot(sel, picked, preferred_element_type=jnp.float32),
        axis=1, keepdims=True)                                               # (B, 1)


def _prep_gru(w_ih, w_hh, b_ih, b_hh, gw):
    """Pack PyTorch-style (H,3H)/(1,3H) GRU params into fused 128-lane-banded tensors."""
    H = w_ih.shape[0]
    wi = jnp.split(w_ih.astype(jnp.float32), 3, axis=1)   # 3 x (H, H)
    wh = jnp.split(w_hh.astype(jnp.float32), 3, axis=1)
    bi = jnp.split(b_ih.astype(jnp.float32), 3, axis=1)   # 3 x (1, H)
    bh = jnp.split(b_hh.astype(jnp.float32), 3, axis=1)

    w_ih_cat = jnp.zeros((H, 3 * gw), jnp.float32)
    w_hh_cat = jnp.zeros((gw, 3 * gw), jnp.float32)
    for g in range(3):
        w_ih_cat = w_ih_cat.at[:, g * gw:g * gw + H].set(wi[g])
        w_hh_cat = w_hh_cat.at[:H, g * gw:g * gw + H].set(wh[g])

    # r/z gates: b_ih + b_hh folds into the precomputed input-side term.
    # n gate: b_hh_n must stay inside the r*(...) product -> kept separate (b_hn).
    b_gi = jnp.zeros((1, 3 * gw), jnp.float32)
    b_gi = b_gi.at[:, 0:H].set(bi[0] + bh[0])
    b_gi = b_gi.at[:, gw:gw + H].set(bi[1] + bh[1])
    b_gi = b_gi.at[:, 2 * gw:2 * gw + H].set(bi[2])
    b_hn = jnp.zeros((1, gw), jnp.float32).at[:, :H].set(bh[2])
    return w_ih_cat, w_hh_cat, b_gi, b_hn


def seq2seq_loss(input_tokens, target_tokens, params):
    """input_tokens: (B, S) int32; target_tokens: (B, T) int32.

    Returns (B,) per-pair losses; each equals the original Seq2Seq.forward for that pair.
    """
    B, S = input_tokens.shape
    T = target_tokens.shape[1]
    H = params['emb_enc'].shape[1]
    GW = ((H + LANE - 1) // LANE) * LANE

    # Glue: embedding gathers + teacher-forcing shift (SOS, tgt[:, :-1]) + target indices.
    enc_emb = jnp.transpose(params['emb_enc'][input_tokens].astype(jnp.float32),
                            (1, 0, 2))                                        # (S, B, H)
    sos = jnp.full((B, 1), SOS_token, jnp.int32)
    dec_in = jnp.concatenate([sos, target_tokens[:, :T - 1].astype(jnp.int32)], axis=1)
    dec_emb = jnp.transpose(params['emb_dec'][dec_in].astype(jnp.float32),
                            (1, 0, 2))                                        # (T, B, H)
    # Row ordering matches the in-kernel concat (row = t*B + b).
    tgt_idx = jnp.transpose(target_tokens.astype(jnp.int32), (1, 0)).reshape(T * B, 1)

    w_ih_e, w_hh_e, b_gi_e, b_hn_e = _prep_gru(params['w_ih_enc'], params['w_hh_enc'],
                                               params['b_ih_enc'], params['b_hh_enc'], GW)
    w_ih_d, w_hh_d, b_gi_d, b_hn_d = _prep_gru(params['w_ih_dec'], params['w_hh_dec'],
                                               params['b_ih_dec'], params['b_hh_dec'], GW)
    O = params['w_out'].shape[1]
    w_out_p = jnp.zeros((GW, O), jnp.float32).at[:H, :].set(params['w_out'].astype(jnp.float32))
    b_out = params['b_out'].astype(jnp.float32)

    vmem = pl.BlockSpec(memory_space=pltpu.MemorySpace.VMEM)
    out = pl.pallas_call(
        seq2seq_kernel,
        out_shape=jax.ShapeDtypeStruct((B, 1), jnp.float32),
        in_specs=[vmem] * 13,
        out_specs=vmem,
    )(enc_emb, dec_emb,
      w_ih_e, w_hh_e, b_gi_e, b_hn_e,
      w_ih_d, w_hh_d, b_gi_d, b_hn_d,
      w_out_p, b_out, tgt_idx)
    return out[:, 0]


def seq2seq_ref(input_tokens, target_tokens, params):
    """Pure-JAX reference reproducing the PyTorch forward for ONE (src, tgt) pair."""
    H = params['emb_enc'].shape[1]

    def gru_step(x, h, w_ih, w_hh, b_ih, b_hh):
        gi = x @ w_ih + b_ih
        gh = h @ w_hh + b_hh
        r = jax.nn.sigmoid(gi[:, 0:H] + gh[:, 0:H])
        z = jax.nn.sigmoid(gi[:, H:2 * H] + gh[:, H:2 * H])
        n = jnp.tanh(gi[:, 2 * H:3 * H] + r * gh[:, 2 * H:3 * H])
        return (1.0 - z) * n + z * h

    h = jnp.zeros((1, H), jnp.float32)
    for tok in input_tokens:
        x = params['emb_enc'][tok][None, :]
        h = gru_step(x, h, params['w_ih_enc'], params['w_hh_enc'],
                     params['b_ih_enc'], params['b_hh_enc'])
    loss = 0.0
    dec_tok = jnp.int32(SOS_token)
    for i in range(target_tokens.shape[1]):
        x = jnp.maximum(params['emb_dec'][dec_tok][None, :], 0.0)
        h = gru_step(x, h, params['w_ih_dec'], params['w_hh_dec'],
                     params['b_ih_dec'], params['b_hh_dec'])
        logits = h @ params['w_out'] + params['b_out']
        log_probs = jax.nn.log_softmax(logits, axis=1)
        loss = loss - log_probs[0, target_tokens[0, i]]
        dec_tok = target_tokens[0, i]
    return loss


if __name__ == "__main__":
    key = jax.random.PRNGKey(0)
    B = 8              # batch of independent (source, target) pairs
    H = 32             # hidden_size (scaled down from 256)
    INPUT_VOCAB = 20   # encoder input_size
    OUTPUT_VOCAB = 16  # decoder output_size
    S_ENC = 8          # source sequence length
    T_DEC = 8          # target sequence length

    ks = jax.random.split(key, 14)
    bound = 1.0 / jnp.sqrt(H)

    def u(k, shape):
        return jax.random.uniform(k, shape, jnp.float32, -bound, bound)

    params = {
        'emb_enc': jax.random.normal(ks[0], (INPUT_VOCAB, H), jnp.float32),
        'emb_dec': jax.random.normal(ks[1], (OUTPUT_VOCAB, H), jnp.float32),
        'w_ih_enc': u(ks[2], (H, 3 * H)),
        'w_hh_enc': u(ks[3], (H, 3 * H)),
        'b_ih_enc': u(ks[4], (1, 3 * H)),
        'b_hh_enc': u(ks[5], (1, 3 * H)),
        'w_ih_dec': u(ks[6], (H, 3 * H)),
        'w_hh_dec': u(ks[7], (H, 3 * H)),
        'b_ih_dec': u(ks[8], (1, 3 * H)),
        'b_hh_dec': u(ks[9], (1, 3 * H)),
        'w_out': u(ks[10], (H, OUTPUT_VOCAB)),
        'b_out': u(ks[11], (1, OUTPUT_VOCAB)),
    }

    input_tokens = jax.random.randint(ks[12], (B, S_ENC), 0, INPUT_VOCAB, jnp.int32)
    target_tokens = jax.random.randint(ks[13], (B, T_DEC), 0, OUTPUT_VOCAB, jnp.int32)

    loss = jax.jit(seq2seq_loss)(input_tokens, target_tokens, params)
    jax.block_until_ready(loss)

    for b in range(B):
        ref_b = seq2seq_ref(input_tokens[b], target_tokens[b:b + 1], params)
        assert jnp.allclose(loss[b], ref_b, rtol=1e-4, atol=1e-4), (b, loss[b], ref_b)
    print("KERNEL_OK")
</pallas_src>

<mosaic_0001>
module attributes {stable_mosaic.version = 11 : i64} {
  func.func @seq2seq_kernel(%arg0: memref<8x8x32xf32, #tpu.memory_space<vmem>>, %arg1: memref<8x8x32xf32, #tpu.memory_space<vmem>>, %arg2: memref<32x384xf32, #tpu.memory_space<vmem>>, %arg3: memref<128x384xf32, #tpu.memory_space<vmem>>, %arg4: memref<1x384xf32, #tpu.memory_space<vmem>>, %arg5: memref<1x128xf32, #tpu.memory_space<vmem>>, %arg6: memref<32x384xf32, #tpu.memory_space<vmem>>, %arg7: memref<128x384xf32, #tpu.memory_space<vmem>>, %arg8: memref<1x384xf32, #tpu.memory_space<vmem>>, %arg9: memref<1x128xf32, #tpu.memory_space<vmem>>, %arg10: memref<128x16xf32, #tpu.memory_space<vmem>>, %arg11: memref<1x16xf32, #tpu.memory_space<vmem>>, %arg12: memref<64x1xi32, #tpu.memory_space<vmem>>, %arg13: memref<8x1xf32, #tpu.memory_space<vmem>>) attributes {dimension_semantics = [], scalar_prefetch = 0 : i64, scratch_operands = 0 : i64, tpu.core_type = #tpu.core_type<tc>} {
    %c0 = arith.constant 0 : index
    %c0_0 = arith.constant 0 : index
    %c0_1 = arith.constant 0 : index
    %0 = vector.load %arg0[%c0, %c0_0, %c0_1] : memref<8x8x32xf32, #tpu.memory_space<vmem>>, vector<8x8x32xf32>
    %1 = vector.shape_cast %0 : vector<8x8x32xf32> to vector<64x32xf32>
    %c0_2 = arith.constant 0 : index
    %c0_3 = arith.constant 0 : index
    %2 = vector.load %arg2[%c0_2, %c0_3] : memref<32x384xf32, #tpu.memory_space<vmem>>, vector<32x384xf32>
    %cst = arith.constant dense<0.000000e+00> : vector<64x384xf32>
    %3 = tpu.matmul %1, %2, %cst {dimension_numbers = #tpu.dot_dimension_numbers<[1], [0], [0], [1], [0, 0, 1, 1], [], []>} : vector<64x32xf32>, vector<32x384xf32>, vector<64x384xf32> -> vector<64x384xf32>
    %c0_4 = arith.constant 0 : index
    %c0_5 = arith.constant 0 : index
    %4 = vector.load %arg4[%c0_4, %c0_5] : memref<1x384xf32, #tpu.memory_space<vmem>>, vector<1x384xf32>
    %5 = vector.broadcast %4 : vector<1x384xf32> to vector<64x384xf32>
    %6 = arith.addf %3, %5 : vector<64x384xf32>
    %7 = vector.shape_cast %6 : vector<64x384xf32> to vector<8x8x384xf32>
    %c0_6 = arith.constant 0 : index
    %c0_7 = arith.constant 0 : index
    %c0_8 = arith.constant 0 : index
    %8 = vector.load %arg1[%c0_6, %c0_7, %c0_8] : memref<8x8x32xf32, #tpu.memory_space<vmem>>, vector<8x8x32xf32>
    %cst_9 = arith.constant 0.000000e+00 : f32
    %9 = vector.broadcast %cst_9 : f32 to vector<8x8x32xf32>
    %10 = arith.maximumf %8, %9 : vector<8x8x32xf32>
    %11 = vector.shape_cast %10 : vector<8x8x32xf32> to vector<64x32xf32>
    %c0_10 = arith.constant 0 : index
    %c0_11 = arith.constant 0 : index
    %12 = vector.load %arg6[%c0_10, %c0_11] : memref<32x384xf32, #tpu.memory_space<vmem>>, vector<32x384xf32>
    %cst_12 = arith.constant dense<0.000000e+00> : vector<64x384xf32>
    %13 = tpu.matmul %11, %12, %cst_12 {dimension_numbers = #tpu.dot_dimension_numbers<[1], [0], [0], [1], [0, 0, 1, 1], [], []>} : vector<64x32xf32>, vector<32x384xf32>, vector<64x384xf32> -> vector<64x384xf32>
    %c0_13 = arith.constant 0 : index
    %c0_14 = arith.constant 0 : index
    %14 = vector.load %arg8[%c0_13, %c0_14] : memref<1x384xf32, #tpu.memory_space<vmem>>, vector<1x384xf32>
    %15 = vector.broadcast %14 : vector<1x384xf32> to vector<64x384xf32>
    %16 = arith.addf %13, %15 : vector<64x384xf32>
    %17 = vector.shape_cast %16 : vector<64x384xf32> to vector<8x8x384xf32>
    %c0_15 = arith.constant 0 : index
    %c0_16 = arith.constant 0 : index
    %18 = vector.load %arg3[%c0_15, %c0_16] : memref<128x384xf32, #tpu.memory_space<vmem>>, vector<128x384xf32>
    %c0_17 = arith.constant 0 : index
    %c0_18 = arith.constant 0 : index
    %19 = vector.load %arg7[%c0_17, %c0_18] : memref<128x384xf32, #tpu.memory_space<vmem>>, vector<128x384xf32>
    %c0_19 = arith.constant 0 : index
    %c0_20 = arith.constant 0 : index
    %20 = vector.load %arg5[%c0_19, %c0_20] : memref<1x128xf32, #tpu.memory_space<vmem>>, vector<1x128xf32>
    %c0_21 = arith.constant 0 : index
    %c0_22 = arith.constant 0 : index
    %21 = vector.load %arg9[%c0_21, %c0_22] : memref<1x128xf32, #tpu.memory_space<vmem>>, vector<1x128xf32>
    %cst_23 = arith.constant 0.000000e+00 : f32
    %22 = vector.broadcast %cst_23 : f32 to vector<8x128xf32>
    %23 = vector.extract_strided_slice %7 {offsets = [0, 0, 0], sizes = [1, 8, 384], strides = [1, 1, 1]} : vector<8x8x384xf32> to vector<1x8x384xf32>
    %24 = vector.shape_cast %23 : vector<1x8x384xf32> to vector<8x384xf32>
    %cst_24 = arith.constant dense<0.000000e+00> : vector<8x384xf32>
    %25 = tpu.matmul %22, %18, %cst_24 {dimension_numbers = #tpu.dot_dimension_numbers<[1], [0], [0], [1], [0, 0, 1, 1], [], []>} : vector<8x128xf32>, vector<128x384xf32>, vector<8x384xf32> -> vector<8x384xf32>
    %26 = vector.extract_strided_slice %24 {offsets = [0, 0], sizes = [8, 128], strides = [1, 1]} : vector<8x384xf32> to vector<8x128xf32>
    %27 = vector.extract_strided_slice %25 {offsets = [0, 0], sizes = [8, 128], strides = [1, 1]} : vector<8x384xf32> to vector<8x128xf32>
    %28 = arith.addf %26, %27 : vector<8x128xf32>
    %29 = arith.negf %28 : vector<8x128xf32>
    %30 = math.exp %29 : vector<8x128xf32>
    %cst_25 = arith.constant 1.000000e+00 : f32
    %31 = vector.broadcast %cst_25 : f32 to vector<8x128xf32>
    %32 = arith.addf %31, %30 : vector<8x128xf32>
    %33 = arith.divf %31, %32 : vector<8x128xf32>
    %34 = vector.extract_strided_slice %24 {offsets = [0, 128], sizes = [8, 128], strides = [1, 1]} : vector<8x384xf32> to vector<8x128xf32>
    %35 = vector.extract_strided_slice %25 {offsets = [0, 128], sizes = [8, 128], strides = [1, 1]} : vector<8x384xf32> to vector<8x128xf32>
    %36 = arith.addf %34, %35 : vector<8x128xf32>
    %37 = arith.negf %36 : vector<8x128xf32>
    %38 = math.exp %37 : vector<8x128xf32>
    %cst_26 = arith.constant 1.000000e+00 : f32
    %39 = vector.broadcast %cst_26 : f32 to vector<8x128xf32>
    %40 = arith.addf %39, %38 : vector<8x128xf32>
    %41 = arith.divf %39, %40 : vector<8x128xf32>
    %42 = vector.extract_strided_slice %24 {offsets = [0, 256], sizes = [8, 128], strides = [1, 1]} : vector<8x384xf32> to vector<8x128xf32>
    %43 = vector.extract_strided_slice %25 {offsets = [0, 256], sizes = [8, 128], strides = [1, 1]} : vector<8x384xf32> to vector<8x128xf32>
    %44 = vector.broadcast %20 : vector<1x128xf32> to vector<8x128xf32>
    %45 = arith.addf %43, %44 : vector<8x128xf32>
    %46 = arith.mulf %33, %45 : vector<8x128xf32>
    %47 = arith.addf %42, %46 : vector<8x128xf32>
    %48 = math.tanh %47 : vector<8x128xf32>
    %cst_27 = arith.constant 1.000000e+00 : f32
    %49 = vector.broadcast %cst_27 : f32 to vector<8x128xf32>
    %50 = arith.subf %49, %41 : vector<8x128xf32>
    %51 = arith.mulf %50, %48 : vector<8x128xf32>
    %52 = arith.mulf %41, %22 : vector<8x128xf32>
    %53 = arith.addf %51, %52 : vector<8x128xf32>
    %54 = vector.extract_strided_slice %7 {offsets = [1, 0, 0], sizes = [1, 8, 384], strides = [1, 1, 1]} : vector<8x8x384xf32> to vector<1x8x384xf32>
    %55 = vector.shape_cast %54 : vector<1x8x384xf32> to vector<8x384xf32>
    %cst_28 = arith.constant dense<0.000000e+00> : vector<8x384xf32>
    %56 = tpu.matmul %53, %18, %cst_28 {dimension_numbers = #tpu.dot_dimension_numbers<[1], [0], [0], [1], [0, 0, 1, 1], [], []>} : vector<8x128xf32>, vector<128x384xf32>, vector<8x384xf32> -> vector<8x384xf32>
    %57 = vector.extract_strided_slice %55 {offsets = [0, 0], sizes = [8, 128], strides = [1, 1]} : vector<8x384xf32> to vector<8x128xf32>
    %58 = vector.extract_strided_slice %56 {offsets = [0, 0], sizes = [8, 128], strides = [1, 1]} : vector<8x384xf32> to vector<8x128xf32>
    %59 = arith.addf %57, %58 : vector<8x128xf32>
    %60 = arith.negf %59 : vector<8x128xf32>
    %61 = math.exp %60 : vector<8x128xf32>
    %cst_29 = arith.constant 1.000000e+00 : f32
    %62 = vector.broadcast %cst_29 : f32 to vector<8x128xf32>
    %63 = arith.addf %62, %61 : vector<8x128xf32>
    %64 = arith.divf %62, %63 : vector<8x128xf32>
    %65 = vector.extract_strided_slice %55 {offsets = [0, 128], sizes = [8, 128], strides = [1, 1]} : vector<8x384xf32> to vector<8x128xf32>
    %66 = vector.extract_strided_slice %56 {offsets = [0, 128], sizes = [8, 128], strides = [1, 1]} : vector<8x384xf32> to vector<8x128xf32>
    %67 = arith.addf %65, %66 : vector<8x128xf32>
    %68 = arith.negf %67 : vector<8x128xf32>
    %69 = math.exp %68 : vector<8x128xf32>
    %cst_30 = arith.constant 1.000000e+00 : f32
    %70 = vector.broadcast %cst_30 : f32 to vector<8x128xf32>
    %71 = arith.addf %70, %69 : vector<8x128xf32>
    %72 = arith.divf %70, %71 : vector<8x128xf32>
    %73 = vector.extract_strided_slice %55 {offsets = [0, 256], sizes = [8, 128], strides = [1, 1]} : vector<8x384xf32> to vector<8x128xf32>
    %74 = vector.extract_strided_slice %56 {offsets = [0, 256], sizes = [8, 128], strides = [1, 1]} : vector<8x384xf32> to vector<8x128xf32>
    %75 = vector.broadcast %20 : vector<1x128xf32> to vector<8x128xf32>
    %76 = arith.addf %74, %75 : vector<8x128xf32>
    %77 = arith.mulf %64, %76 : vector<8x128xf32>
    %78 = arith.addf %73, %77 : vector<8x128xf32>
    %79 = math.tanh %78 : vector<8x128xf32>
    %cst_31 = arith.constant 1.000000e+00 : f32
    %80 = vector.broadcast %cst_31 : f32 to vector<8x128xf32>
    %81 = arith.subf %80, %72 : vector<8x128xf32>
    %82 = arith.mulf %81, %79 : vector<8x128xf32>
    %83 = arith.mulf %72, %53 : vector<8x128xf32>
    %84 = arith.addf %82, %83 : vector<8x128xf32>
    %85 = vector.extract_strided_slice %7 {offsets = [2, 0, 0], sizes = [1, 8, 384], strides = [1, 1, 1]} : vector<8x8x384xf32> to vector<1x8x384xf32>
    %86 = vector.shape_cast %85 : vector<1x8x384xf32> to vector<8x384xf32>
    %cst_32 = arith.constant dense<0.000000e+00> : vector<8x384xf32>
    %87 = tpu.matmul %84, %18, %cst_32 {dimension_numbers = #tpu.dot_dimension_numbers<[1], [0], [0], [1], [0, 0, 1, 1], [], []>} : vector<8x128xf32>, vector<128x384xf32>, vector<8x384xf32> -> vector<8x384xf32>
    %88 = vector.extract_strided_slice %86 {offsets = [0, 0], sizes = [8, 128], strides = [1, 1]} : vector<8x384xf32> to vector<8x128xf32>
    %89 = vector.extract_strided_slice %87 {offsets = [0, 0], sizes = [8, 128], strides = [1, 1]} : vector<8x384xf32> to vector<8x128xf32>
    %90 = arith.addf %88, %89 : vector<8x128xf32>
    %91 = arith.negf %90 : vector<8x128xf32>
    %92 = math.exp %91 : vector<8x128xf32>
    %cst_33 = arith.constant 1.000000e+00 : f32
    %93 = vector.broadcast %cst_33 : f32 to vector<8x128xf32>
    %94 = arith.addf %93, %92 : vector<8x128xf32>
    %95 = arith.divf %93, %94 : vector<8x128xf32>
    %96 = vector.extract_strided_slice %86 {offsets = [0, 128], sizes = [8, 128], strides = [1, 1]} : vector<8x384xf32> to vector<8x128xf32>
    %97 = vector.extract_strided_slice %87 {offsets = [0, 128], sizes = [8, 128], strides = [1, 1]} : vector<8x384xf32> to vector<8x128xf32>
    %98 = arith.addf %96, %97 : vector<8x128xf32>
    %99 = arith.negf %98 : vector<8x128xf32>
    %100 = math.exp %99 : vector<8x128xf32>
    %cst_34 = arith.constant 1.000000e+00 : f32
    %101 = vector.broadcast %cst_34 : f32 to vector<8x128xf32>
    %102 = arith.addf %101, %100 : vector<8x128xf32>
    %103 = arith.divf %101, %102 : vector<8x128xf32>
    %104 = vector.extract_strided_slice %86 {offsets = [0, 256], sizes = [8, 128], strides = [1, 1]} : vector<8x384xf32> to vector<8x128xf32>
    %105 = vector.extract_strided_slice %87 {offsets = [0, 256], sizes = [8, 128], strides = [1, 1]} : vector<8x384xf32> to vector<8x128xf32>
    %106 = vector.broadcast %20 : vector<1x128xf32> to vector<8x128xf32>
    %107 = arith.addf %105, %106 : vector<8x128xf32>
    %108 = arith.mulf %95, %107 : vector<8x128xf32>
    %109 = arith.addf %104, %108 : vector<8x128xf32>
    %110 = math.tanh %109 : vector<8x128xf32>
    %cst_35 = arith.constant 1.000000e+00 : f32
    %111 = vector.broadcast %cst_35 : f32 to vector<8x128xf32>
    %112 = arith.subf %111, %103 : vector<8x128xf32>
    %113 = arith.mulf %112, %110 : vector<8x128xf32>
    %114 = arith.mulf %103, %84 : vector<8x128xf32>
    %115 = arith.addf %113, %114 : vector<8x128xf32>
    %116 = vector.extract_strided_slice %7 {offsets = [3, 0, 0], sizes = [1, 8, 384], strides = [1, 1, 1]} : vector<8x8x384xf32> to vector<1x8x384xf32>
    %117 = vector.shape_cast %116 : vector<1x8x384xf32> to vector<8x384xf32>
    %cst_36 = arith.constant dense<0.000000e+00> : vector<8x384xf32>
    %118 = tpu.matmul %115, %18, %cst_36 {dimension_numbers = #tpu.dot_dimension_numbers<[1], [0], [0], [1], [0, 0, 1, 1], [], []>} : vector<8x128xf32>, vector<128x384xf32>, vector<8x384xf32> -> vector<8x384xf32>
    %119 = vector.extract_strided_slice %117 {offsets = [0, 0], sizes = [8, 128], strides = [1, 1]} : vector<8x384xf32> to vector<8x128xf32>
    %120 = vector.extract_strided_slice %118 {offsets = [0, 0], sizes = [8, 128], strides = [1, 1]} : vector<8x384xf32> to vector<8x128xf32>
    %121 = arith.addf %119, %120 : vector<8x128xf32>
    %122 = arith.negf %121 : vector<8x128xf32>
    %123 = math.exp %122 : vector<8x128xf32>
    %cst_37 = arith.constant 1.000000e+00 : f32
    %124 = vector.broadcast %cst_37 : f32 to vector<8x128xf32>
    %125 = arith.addf %124, %123 : vector<8x128xf32>
    %126 = arith.divf %124, %125 : vector<8x128xf32>
    %127 = vector.extract_strided_slice %117 {offsets = [0, 128], sizes = [8, 128], strides = [1, 1]} : vector<8x384xf32> to vector<8x128xf32>
    %128 = vector.extract_strided_slice %118 {offsets = [0, 128], sizes = [8, 128], strides = [1, 1]} : vector<8x384xf32> to vector<8x128xf32>
    %129 = arith.addf %127, %128 : vector<8x128xf32>
    %130 = arith.negf %129 : vector<8x128xf32>
    %131 = math.exp %130 : vector<8x128xf32>
    %cst_38 = arith.constant 1.000000e+00 : f32
    %132 = vector.broadcast %cst_38 : f32 to vector<8x128xf32>
    %133 = arith.addf %132, %131 : vector<8x128xf32>
    %134 = arith.divf %132, %133 : vector<8x128xf32>
    %135 = vector.extract_strided_slice %117 {offsets = [0, 256], sizes = [8, 128], strides = [1, 1]} : vector<8x384xf32> to vector<8x128xf32>
    %136 = vector.extract_strided_slice %118 {offsets = [0, 256], sizes = [8, 128], strides = [1, 1]} : vector<8x384xf32> to vector<8x128xf32>
    %137 = vector.broadcast %20 : vector<1x128xf32> to vector<8x128xf32>
    %138 = arith.addf %136, %137 : vector<8x128xf32>
    %139 = arith.mulf %126, %138 : vector<8x128xf32>
    %140 = arith.addf %135, %139 : vector<8x128xf32>
    %141 = math.tanh %140 : vector<8x128xf32>
    %cst_39 = arith.constant 1.000000e+00 : f32
    %142 = vector.broadcast %cst_39 : f32 to vector<8x128xf32>
    %143 = arith.subf %142, %134 : vector<8x128xf32>
    %144 = arith.mulf %143, %141 : vector<8x128xf32>
    %145 = arith.mulf %134, %115 : vector<8x128xf32>
    %146 = arith.addf %144, %145 : vector<8x128xf32>
    %147 = vector.extract_strided_slice %7 {offsets = [4, 0, 0], sizes = [1, 8, 384], strides = [1, 1, 1]} : vector<8x8x384xf32> to vector<1x8x384xf32>
    %148 = vector.shape_cast %147 : vector<1x8x384xf32> to vector<8x384xf32>
    %cst_40 = arith.constant dense<0.000000e+00> : vector<8x384xf32>
    %149 = tpu.matmul %146, %18, %cst_40 {dimension_numbers = #tpu.dot_dimension_numbers<[1], [0], [0], [1], [0, 0, 1, 1], [], []>} : vector<8x128xf32>, vector<128x384xf32>, vector<8x384xf32> -> vector<8x384xf32>
    %150 = vector.extract_strided_slice %148 {offsets = [0, 0], sizes = [8, 128], strides = [1, 1]} : vector<8x384xf32> to vector<8x128xf32>
    %151 = vector.extract_strided_slice %149 {offsets = [0, 0], sizes = [8, 128], strides = [1, 1]} : vector<8x384xf32> to vector<8x128xf32>
    %152 = arith.addf %150, %151 : vector<8x128xf32>
    %153 = arith.negf %152 : vector<8x128xf32>
    %154 = math.exp %153 : vector<8x128xf32>
    %cst_41 = arith.constant 1.000000e+00 : f32
    %155 = vector.broadcast %cst_41 : f32 to vector<8x128xf32>
    %156 = arith.addf %155, %154 : vector<8x128xf32>
    %157 = arith.divf %155, %156 : vector<8x128xf32>
    %158 = vector.extract_strided_slice %148 {offsets = [0, 128], sizes = [8, 128], strides = [1, 1]} : vector<8x384xf32> to vector<8x128xf32>
    %159 = vector.extract_strided_slice %149 {offsets = [0, 128], sizes = [8, 128], strides = [1, 1]} : vector<8x384xf32> to vector<8x128xf32>
    %160 = arith.addf %158, %159 : vector<8x128xf32>
    %161 = arith.negf %160 : vector<8x128xf32>
    %162 = math.exp %161 : vector<8x128xf32>
    %cst_42 = arith.constant 1.000000e+00 : f32
    %163 = vector.broadcast %cst_42 : f32 to vector<8x128xf32>
    %164 = arith.addf %163, %162 : vector<8x128xf32>
    %165 = arith.divf %163, %164 : vector<8x128xf32>
    %166 = vector.extract_strided_slice %148 {offsets = [0, 256], sizes = [8, 128], strides = [1, 1]} : vector<8x384xf32> to vector<8x128xf32>
    %167 = vector.extract_strided_slice %149 {offsets = [0, 256], sizes = [8, 128], strides = [1, 1]} : vector<8x384xf32> to vector<8x128xf32>
    %168 = vector.broadcast %20 : vector<1x128xf32> to vector<8x128xf32>
    %169 = arith.addf %167, %168 : vector<8x128xf32>
    %170 = arith.mulf %157, %169 : vector<8x128xf32>
    %171 = arith.addf %166, %170 : vector<8x128xf32>
    %172 = math.tanh %171 : vector<8x128xf32>
    %cst_43 = arith.constant 1.000000e+00 : f32
    %173 = vector.broadcast %cst_43 : f32 to vector<8x128xf32>
    %174 = arith.subf %173, %165 : vector<8x128xf32>
    %175 = arith.mulf %174, %172 : vector<8x128xf32>
    %176 = arith.mulf %165, %146 : vector<8x128xf32>
    %177 = arith.addf %175, %176 : vector<8x128xf32>
    %178 = vector.extract_strided_slice %7 {offsets = [5, 0, 0], sizes = [1, 8, 384], strides = [1, 1, 1]} : vector<8x8x384xf32> to vector<1x8x384xf32>
    %179 = vector.shape_cast %178 : vector<1x8x384xf32> to vector<8x384xf32>
    %cst_44 = arith.constant dense<0.000000e+00> : vector<8x384xf32>
    %180 = tpu.matmul %177, %18, %cst_44 {dimension_numbers = #tpu.dot_dimension_numbers<[1], [0], [0], [1], [0, 0, 1, 1], [], []>} : vector<8x128xf32>, vector<128x384xf32>, vector<8x384xf32> -> vector<8x384xf32>
    %181 = vector.extract_strided_slice %179 {offsets = [0, 0], sizes = [8, 128], strides = [1, 1]} : vector<8x384xf32> to vector<8x128xf32>
    %182 = vector.extract_strided_slice %180 {offsets = [0, 0], sizes = [8, 128], strides = [1, 1]} : vector<8x384xf32> to vector<8x128xf32>
    %183 = arith.addf %181, %182 : vector<8x128xf32>
    %184 = arith.negf %183 : vector<8x128xf32>
    %185 = math.exp %184 : vector<8x128xf32>
    %cst_45 = arith.constant 1.000000e+00 : f32
    %186 = vector.broadcast %cst_45 : f32 to vector<8x128xf32>
    %187 = arith.addf %186, %185 : vector<8x128xf32>
    %188 = arith.divf %186, %187 : vector<8x128xf32>
    %189 = vector.extract_strided_slice %179 {offsets = [0, 128], sizes = [8, 128], strides = [1, 1]} : vector<8x384xf32> to vector<8x128xf32>
    %190 = vector.extract_strided_slice %180 {offsets = [0, 128], sizes = [8, 128], strides = [1, 1]} : vector<8x384xf32> to vector<8x128xf32>
    %191 = arith.addf %189, %190 : vector<8x128xf32>
    %192 = arith.negf %191 : vector<8x128xf32>
    %193 = math.exp %192 : vector<8x128xf32>
    %cst_46 = arith.constant 1.000000e+00 : f32
    %194 = vector.broadcast %cst_46 : f32 to vector<8x128xf32>
    %195 = arith.addf %194, %193 : vector<8x128xf32>
    %196 = arith.divf %194, %195 : vector<8x128xf32>
    %197 = vector.extract_strided_slice %179 {offsets = [0, 256], sizes = [8, 128], strides = [1, 1]} : vector<8x384xf32> to vector<8x128xf32>
    %198 = vector.extract_strided_slice %180 {offsets = [0, 256], sizes = [8, 128], strides = [1, 1]} : vector<8x384xf32> to vector<8x128xf32>
    %199 = vector.broadcast %20 : vector<1x128xf32> to vector<8x128xf32>
    %200 = arith.addf %198, %199 : vector<8x128xf32>
    %201 = arith.mulf %188, %200 : vector<8x128xf32>
    %202 = arith.addf %197, %201 : vector<8x128xf32>
    %203 = math.tanh %202 : vector<8x128xf32>
    %cst_47 = arith.constant 1.000000e+00 : f32
    %204 = vector.broadcast %cst_47 : f32 to vector<8x128xf32>
    %205 = arith.subf %204, %196 : vector<8x128xf32>
    %206 = arith.mulf %205, %203 : vector<8x128xf32>
    %207 = arith.mulf %196, %177 : vector<8x128xf32>
    %208 = arith.addf %206, %207 : vector<8x128xf32>
    %209 = vector.extract_strided_slice %7 {offsets = [6, 0, 0], sizes = [1, 8, 384], strides = [1, 1, 1]} : vector<8x8x384xf32> to vector<1x8x384xf32>
    %210 = vector.shape_cast %209 : vector<1x8x384xf32> to vector<8x384xf32>
    %cst_48 = arith.constant dense<0.000000e+00> : vector<8x384xf32>
    %211 = tpu.matmul %208, %18, %cst_48 {dimension_numbers = #tpu.dot_dimension_numbers<[1], [0], [0], [1], [0, 0, 1, 1], [], []>} : vector<8x128xf32>, vector<128x384xf32>, vector<8x384xf32> -> vector<8x384xf32>
    %212 = vector.extract_strided_slice %210 {offsets = [0, 0], sizes = [8, 128], strides = [1, 1]} : vector<8x384xf32> to vector<8x128xf32>
    %213 = vector.extract_strided_slice %211 {offsets = [0, 0], sizes = [8, 128], strides = [1, 1]} : vector<8x384xf32> to vector<8x128xf32>
    %214 = arith.addf %212, %213 : vector<8x128xf32>
    %215 = arith.negf %214 : vector<8x128xf32>
    %216 = math.exp %215 : vector<8x128xf32>
    %cst_49 = arith.constant 1.000000e+00 : f32
    %217 = vector.broadcast %cst_49 : f32 to vector<8x128xf32>
    %218 = arith.addf %217, %216 : vector<8x128xf32>
    %219 = arith.divf %217, %218 : vector<8x128xf32>
    %220 = vector.extract_strided_slice %210 {offsets = [0, 128], sizes = [8, 128], strides = [1, 1]} : vector<8x384xf32> to vector<8x128xf32>
    %221 = vector.extract_strided_slice %211 {offsets = [0, 128], sizes = [8, 128], strides = [1, 1]} : vector<8x384xf32> to vector<8x128xf32>
    %222 = arith.addf %220, %221 : vector<8x128xf32>
    %223 = arith.negf %222 : vector<8x128xf32>
    %224 = math.exp %223 : vector<8x128xf32>
    %cst_50 = arith.constant 1.000000e+00 : f32
    %225 = vector.broadcast %cst_50 : f32 to vector<8x128xf32>
    %226 = arith.addf %225, %224 : vector<8x128xf32>
    %227 = arith.divf %225, %226 : vector<8x128xf32>
    %228 = vector.extract_strided_slice %210 {offsets = [0, 256], sizes = [8, 128], strides = [1, 1]} : vector<8x384xf32> to vector<8x128xf32>
    %229 = vector.extract_strided_slice %211 {offsets = [0, 256], sizes = [8, 128], strides = [1, 1]} : vector<8x384xf32> to vector<8x128xf32>
    %230 = vector.broadcast %20 : vector<1x128xf32> to vector<8x128xf32>
    %231 = arith.addf %229, %230 : vector<8x128xf32>
    %232 = arith.mulf %219, %231 : vector<8x128xf32>
    %233 = arith.addf %228, %232 : vector<8x128xf32>
    %234 = math.tanh %233 : vector<8x128xf32>
    %cst_51 = arith.constant 1.000000e+00 : f32
    %235 = vector.broadcast %cst_51 : f32 to vector<8x128xf32>
    %236 = arith.subf %235, %227 : vector<8x128xf32>
    %237 = arith.mulf %236, %234 : vector<8x128xf32>
    %238 = arith.mulf %227, %208 : vector<8x128xf32>
    %239 = arith.addf %237, %238 : vector<8x128xf32>
    %240 = vector.extract_strided_slice %7 {offsets = [7, 0, 0], sizes = [1, 8, 384], strides = [1, 1, 1]} : vector<8x8x384xf32> to vector<1x8x384xf32>
    %241 = vector.shape_cast %240 : vector<1x8x384xf32> to vector<8x384xf32>
    %cst_52 = arith.constant dense<0.000000e+00> : vector<8x384xf32>
    %242 = tpu.matmul %239, %18, %cst_52 {dimension_numbers = #tpu.dot_dimension_numbers<[1], [0], [0], [1], [0, 0, 1, 1], [], []>} : vector<8x128xf32>, vector<128x384xf32>, vector<8x384xf32> -> vector<8x384xf32>
    %243 = vector.extract_strided_slice %241 {offsets = [0, 0], sizes = [8, 128], strides = [1, 1]} : vector<8x384xf32> to vector<8x128xf32>
    %244 = vector.extract_strided_slice %242 {offsets = [0, 0], sizes = [8, 128], strides = [1, 1]} : vector<8x384xf32> to vector<8x128xf32>
    %245 = arith.addf %243, %244 : vector<8x128xf32>
    %246 = arith.negf %245 : vector<8x128xf32>
    %247 = math.exp %246 : vector<8x128xf32>
    %cst_53 = arith.constant 1.000000e+00 : f32
    %248 = vector.broadcast %cst_53 : f32 to vector<8x128xf32>
    %249 = arith.addf %248, %247 : vector<8x128xf32>
    %250 = arith.divf %248, %249 : vector<8x128xf32>
    %251 = vector.extract_strided_slice %241 {offsets = [0, 128], sizes = [8, 128], strides = [1, 1]} : vector<8x384xf32> to vector<8x128xf32>
    %252 = vector.extract_strided_slice %242 {offsets = [0, 128], sizes = [8, 128], strides = [1, 1]} : vector<8x384xf32> to vector<8x128xf32>
    %253 = arith.addf %251, %252 : vector<8x128xf32>
    %254 = arith.negf %253 : vector<8x128xf32>
    %255 = math.exp %254 : vector<8x128xf32>
    %cst_54 = arith.constant 1.000000e+00 : f32
    %256 = vector.broadcast %cst_54 : f32 to vector<8x128xf32>
    %257 = arith.addf %256, %255 : vector<8x128xf32>
    %258 = arith.divf %256, %257 : vector<8x128xf32>
    %259 = vector.extract_strided_slice %241 {offsets = [0, 256], sizes = [8, 128], strides = [1, 1]} : vector<8x384xf32> to vector<8x128xf32>
    %260 = vector.extract_strided_slice %242 {offsets = [0, 256], sizes = [8, 128], strides = [1, 1]} : vector<8x384xf32> to vector<8x128xf32>
    %261 = vector.broadcast %20 : vector<1x128xf32> to vector<8x128xf32>
    %262 = arith.addf %260, %261 : vector<8x128xf32>
    %263 = arith.mulf %250, %262 : vector<8x128xf32>
    %264 = arith.addf %259, %263 : vector<8x128xf32>
    %265 = math.tanh %264 : vector<8x128xf32>
    %cst_55 = arith.constant 1.000000e+00 : f32
    %266 = vector.broadcast %cst_55 : f32 to vector<8x128xf32>
    %267 = arith.subf %266, %258 : vector<8x128xf32>
    %268 = arith.mulf %267, %265 : vector<8x128xf32>
    %269 = arith.mulf %258, %239 : vector<8x128xf32>
    %270 = arith.addf %268, %269 : vector<8x128xf32>
    %271 = vector.extract_strided_slice %17 {offsets = [0, 0, 0], sizes = [1, 8, 384], strides = [1, 1, 1]} : vector<8x8x384xf32> to vector<1x8x384xf32>
    %272 = vector.shape_cast %271 : vector<1x8x384xf32> to vector<8x384xf32>
    %cst_56 = arith.constant dense<0.000000e+00> : vector<8x384xf32>
    %273 = tpu.matmul %270, %19, %cst_56 {dimension_numbers = #tpu.dot_dimension_numbers<[1], [0], [0], [1], [0, 0, 1, 1], [], []>} : vector<8x128xf32>, vector<128x384xf32>, vector<8x384xf32> -> vector<8x384xf32>
    %274 = vector.extract_strided_slice %272 {offsets = [0, 0], sizes = [8, 128], strides = [1, 1]} : vector<8x384xf32> to vector<8x128xf32>
    %275 = vector.extract_strided_slice %273 {offsets = [0, 0], sizes = [8, 128], strides = [1, 1]} : vector<8x384xf32> to vector<8x128xf32>
    %276 = arith.addf %274, %275 : vector<8x128xf32>
    %277 = arith.negf %276 : vector<8x128xf32>
    %278 = math.exp %277 : vector<8x128xf32>
    %cst_57 = arith.constant 1.000000e+00 : f32
    %279 = vector.broadcast %cst_57 : f32 to vector<8x128xf32>
    %280 = arith.addf %279, %278 : vector<8x128xf32>
    %281 = arith.divf %279, %280 : vector<8x128xf32>
    %282 = vector.extract_strided_slice %272 {offsets = [0, 128], sizes = [8, 128], strides = [1, 1]} : vector<8x384xf32> to vector<8x128xf32>
    %283 = vector.extract_strided_slice %273 {offsets = [0, 128], sizes = [8, 128], strides = [1, 1]} : vector<8x384xf32> to vector<8x128xf32>
    %284 = arith.addf %282, %283 : vector<8x128xf32>
    %285 = arith.negf %284 : vector<8x128xf32>
    %286 = math.exp %285 : vector<8x128xf32>
    %cst_58 = arith.constant 1.000000e+00 : f32
    %287 = vector.broadcast %cst_58 : f32 to vector<8x128xf32>
    %288 = arith.addf %287, %286 : vector<8x128xf32>
    %289 = arith.divf %287, %288 : vector<8x128xf32>
    %290 = vector.extract_strided_slice %272 {offsets = [0, 256], sizes = [8, 128], strides = [1, 1]} : vector<8x384xf32> to vector<8x128xf32>
    %291 = vector.extract_strided_slice %273 {offsets = [0, 256], sizes = [8, 128], strides = [1, 1]} : vector<8x384xf32> to vector<8x128xf32>
    %292 = vector.broadcast %21 : vector<1x128xf32> to vector<8x128xf32>
    %293 = arith.addf %291, %292 : vector<8x128xf32>
    %294 = arith.mulf %281, %293 : vector<8x128xf32>
    %295 = arith.addf %290, %294 : vector<8x128xf32>
    %296 = math.tanh %295 : vector<8x128xf32>
    %cst_59 = arith.constant 1.000000e+00 : f32
    %297 = vector.broadcast %cst_59 : f32 to vector<8x128xf32>
    %298 = arith.subf %297, %289 : vector<8x128xf32>
    %299 = arith.mulf %298, %296 : vector<8x128xf32>
    %300 = arith.mulf %289, %270 : vector<8x128xf32>
    %301 = arith.addf %299, %300 : vector<8x128xf32>
    %302 = vector.extract_strided_slice %17 {offsets = [1, 0, 0], sizes = [1, 8, 384], strides = [1, 1, 1]} : vector<8x8x384xf32> to vector<1x8x384xf32>
    %303 = vector.shape_cast %302 : vector<1x8x384xf32> to vector<8x384xf32>
    %cst_60 = arith.constant dense<0.000000e+00> : vector<8x384xf32>
    %304 = tpu.matmul %301, %19, %cst_60 {dimension_numbers = #tpu.dot_dimension_numbers<[1], [0], [0], [1], [0, 0, 1, 1], [], []>} : vector<8x128xf32>, vector<128x384xf32>, vector<8x384xf32> -> vector<8x384xf32>
    %305 = vector.extract_strided_slice %303 {offsets = [0, 0], sizes = [8, 128], strides = [1, 1]} : vector<8x384xf32> to vector<8x128xf32>
    %306 = vector.extract_strided_slice %304 {offsets = [0, 0], sizes = [8, 128], strides = [1, 1]} : vector<8x384xf32> to vector<8x128xf32>
    %307 = arith.addf %305, %306 : vector<8x128xf32>
    %308 = arith.negf %307 : vector<8x128xf32>
    %309 = math.exp %308 : vector<8x128xf32>
    %cst_61 = arith.constant 1.000000e+00 : f32
    %310 = vector.broadcast %cst_61 : f32 to vector<8x128xf32>
    %311 = arith.addf %310, %309 : vector<8x128xf32>
    %312 = arith.divf %310, %311 : vector<8x128xf32>
    %313 = vector.extract_strided_slice %303 {offsets = [0, 128], sizes = [8, 128], strides = [1, 1]} : vector<8x384xf32> to vector<8x128xf32>
    %314 = vector.extract_strided_slice %304 {offsets = [0, 128], sizes = [8, 128], strides = [1, 1]} : vector<8x384xf32> to vector<8x128xf32>
    %315 = arith.addf %313, %314 : vector<8x128xf32>
    %316 = arith.negf %315 : vector<8x128xf32>
    %317 = math.exp %316 : vector<8x128xf32>
    %cst_62 = arith.constant 1.000000e+00 : f32
    %318 = vector.broadcast %cst_62 : f32 to vector<8x128xf32>
    %319 = arith.addf %318, %317 : vector<8x128xf32>
    %320 = arith.divf %318, %319 : vector<8x128xf32>
    %321 = vector.extract_strided_slice %303 {offsets = [0, 256], sizes = [8, 128], strides = [1, 1]} : vector<8x384xf32> to vector<8x128xf32>
    %322 = vector.extract_strided_slice %304 {offsets = [0, 256], sizes = [8, 128], strides = [1, 1]} : vector<8x384xf32> to vector<8x128xf32>
    %323 = vector.broadcast %21 : vector<1x128xf32> to vector<8x128xf32>
    %324 = arith.addf %322, %323 : vector<8x128xf32>
    %325 = arith.mulf %312, %324 : vector<8x128xf32>
    %326 = arith.addf %321, %325 : vector<8x128xf32>
    %327 = math.tanh %326 : vector<8x128xf32>
    %cst_63 = arith.constant 1.000000e+00 : f32
    %328 = vector.broadcast %cst_63 : f32 to vector<8x128xf32>
    %329 = arith.subf %328, %320 : vector<8x128xf32>
    %330 = arith.mulf %329, %327 : vector<8x128xf32>
    %331 = arith.mulf %320, %301 : vector<8x128xf32>
    %332 = arith.addf %330, %331 : vector<8x128xf32>
    %333 = vector.extract_strided_slice %17 {offsets = [2, 0, 0], sizes = [1, 8, 384], strides = [1, 1, 1]} : vector<8x8x384xf32> to vector<1x8x384xf32>
    %334 = vector.shape_cast %333 : vector<1x8x384xf32> to vector<8x384xf32>
    %cst_64 = arith.constant dense<0.000000e+00> : vector<8x384xf32>
    %335 = tpu.matmul %332, %19, %cst_64 {dimension_numbers = #tpu.dot_dimension_numbers<[1], [0], [0], [1], [0, 0, 1, 1], [], []>} : vector<8x128xf32>, vector<128x384xf32>, vector<8x384xf32> -> vector<8x384xf32>
    %336 = vector.extract_strided_slice %334 {offsets = [0, 0], sizes = [8, 128], strides = [1, 1]} : vector<8x384xf32> to vector<8x128xf32>
    %337 = vector.extract_strided_slice %335 {offsets = [0, 0], sizes = [8, 128], strides = [1, 1]} : vector<8x384xf32> to vector<8x128xf32>
    %338 = arith.addf %336, %337 : vector<8x128xf32>
    %339 = arith.negf %338 : vector<8x128xf32>
    %340 = math.exp %339 : vector<8x128xf32>
    %cst_65 = arith.constant 1.000000e+00 : f32
    %341 = vector.broadcast %cst_65 : f32 to vector<8x128xf32>
    %342 = arith.addf %341, %340 : vector<8x128xf32>
    %343 = arith.divf %341, %342 : vector<8x128xf32>
    %344 = vector.extract_strided_slice %334 {offsets = [0, 128], sizes = [8, 128], strides = [1, 1]} : vector<8x384xf32> to vector<8x128xf32>
    %345 = vector.extract_strided_slice %335 {offsets = [0, 128], sizes = [8, 128], strides = [1, 1]} : vector<8x384xf32> to vector<8x128xf32>
    %346 = arith.addf %344, %345 : vector<8x128xf32>
    %347 = arith.negf %346 : vector<8x128xf32>
    %348 = math.exp %347 : vector<8x128xf32>
    %cst_66 = arith.constant 1.000000e+00 : f32
    %349 = vector.broadcast %cst_66 : f32 to vector<8x128xf32>
    %350 = arith.addf %349, %348 : vector<8x128xf32>
    %351 = arith.divf %349, %350 : vector<8x128xf32>
    %352 = vector.extract_strided_slice %334 {offsets = [0, 256], sizes = [8, 128], strides = [1, 1]} : vector<8x384xf32> to vector<8x128xf32>
    %353 = vector.extract_strided_slice %335 {offsets = [0, 256], sizes = [8, 128], strides = [1, 1]} : vector<8x384xf32> to vector<8x128xf32>
    %354 = vector.broadcast %21 : vector<1x128xf32> to vector<8x128xf32>
    %355 = arith.addf %353, %354 : vector<8x128xf32>
    %356 = arith.mulf %343, %355 : vector<8x128xf32>
    %357 = arith.addf %352, %356 : vector<8x128xf32>
    %358 = math.tanh %357 : vector<8x128xf32>
    %cst_67 = arith.constant 1.000000e+00 : f32
    %359 = vector.broadcast %cst_67 : f32 to vector<8x128xf32>
    %360 = arith.subf %359, %351 : vector<8x128xf32>
    %361 = arith.mulf %360, %358 : vector<8x128xf32>
    %362 = arith.mulf %351, %332 : vector<8x128xf32>
    %363 = arith.addf %361, %362 : vector<8x128xf32>
    %364 = vector.extract_strided_slice %17 {offsets = [3, 0, 0], sizes = [1, 8, 384], strides = [1, 1, 1]} : vector<8x8x384xf32> to vector<1x8x384xf32>
    %365 = vector.shape_cast %364 : vector<1x8x384xf32> to vector<8x384xf32>
    %cst_68 = arith.constant dense<0.000000e+00> : vector<8x384xf32>
    %366 = tpu.matmul %363, %19, %cst_68 {dimension_numbers = #tpu.dot_dimension_numbers<[1], [0], [0], [1], [0, 0, 1, 1], [], []>} : vector<8x128xf32>, vector<128x384xf32>, vector<8x384xf32> -> vector<8x384xf32>
    %367 = vector.extract_strided_slice %365 {offsets = [0, 0], sizes = [8, 128], strides = [1, 1]} : vector<8x384xf32> to vector<8x128xf32>
    %368 = vector.extract_strided_slice %366 {offsets = [0, 0], sizes = [8, 128], strides = [1, 1]} : vector<8x384xf32> to vector<8x128xf32>
    %369 = arith.addf %367, %368 : vector<8x128xf32>
    %370 = arith.negf %369 : vector<8x128xf32>
    %371 = math.exp %370 : vector<8x128xf32>
    %cst_69 = arith.constant 1.000000e+00 : f32
    %372 = vector.broadcast %cst_69 : f32 to vector<8x128xf32>
    %373 = arith.addf %372, %371 : vector<8x128xf32>
    %374 = arith.divf %372, %373 : vector<8x128xf32>
    %375 = vector.extract_strided_slice %365 {offsets = [0, 128], sizes = [8, 128], strides = [1, 1]} : vector<8x384xf32> to vector<8x128xf32>
    %376 = vector.extract_strided_slice %366 {offsets = [0, 128], sizes = [8, 128], strides = [1, 1]} : vector<8x384xf32> to vector<8x128xf32>
    %377 = arith.addf %375, %376 : vector<8x128xf32>
    %378 = arith.negf %377 : vector<8x128xf32>
    %379 = math.exp %378 : vector<8x128xf32>
    %cst_70 = arith.constant 1.000000e+00 : f32
    %380 = vector.broadcast %cst_70 : f32 to vector<8x128xf32>
    %381 = arith.addf %380, %379 : vector<8x128xf32>
    %382 = arith.divf %380, %381 : vector<8x128xf32>
    %383 = vector.extract_strided_slice %365 {offsets = [0, 256], sizes = [8, 128], strides = [1, 1]} : vector<8x384xf32> to vector<8x128xf32>
    %384 = vector.extract_strided_slice %366 {offsets = [0, 256], sizes = [8, 128], strides = [1, 1]} : vector<8x384xf32> to vector<8x128xf32>
    %385 = vector.broadcast %21 : vector<1x128xf32> to vector<8x128xf32>
    %386 = arith.addf %384, %385 : vector<8x128xf32>
    %387 = arith.mulf %374, %386 : vector<8x128xf32>
    %388 = arith.addf %383, %387 : vector<8x128xf32>
    %389 = math.tanh %388 : vector<8x128xf32>
    %cst_71 = arith.constant 1.000000e+00 : f32
    %390 = vector.broadcast %cst_71 : f32 to vector<8x128xf32>
    %391 = arith.subf %390, %382 : vector<8x128xf32>
    %392 = arith.mulf %391, %389 : vector<8x128xf32>
    %393 = arith.mulf %382, %363 : vector<8x128xf32>
    %394 = arith.addf %392, %393 : vector<8x128xf32>
    %395 = vector.extract_strided_slice %17 {offsets = [4, 0, 0], sizes = [1, 8, 384], strides = [1, 1, 1]} : vector<8x8x384xf32> to vector<1x8x384xf32>
    %396 = vector.shape_cast %395 : vector<1x8x384xf32> to vector<8x384xf32>
    %cst_72 = arith.constant dense<0.000000e+00> : vector<8x384xf32>
    %397 = tpu.matmul %394, %19, %cst_72 {dimension_numbers = #tpu.dot_dimension_numbers<[1], [0], [0], [1], [0, 0, 1, 1], [], []>} : vector<8x128xf32>, vector<128x384xf32>, vector<8x384xf32> -> vector<8x384xf32>
    %398 = vector.extract_strided_slice %396 {offsets = [0, 0], sizes = [8, 128], strides = [1, 1]} : vector<8x384xf32> to vector<8x128xf32>
    %399 = vector.extract_strided_slice %397 {offsets = [0, 0], sizes = [8, 128], strides = [1, 1]} : vector<8x384xf32> to vector<8x128xf32>
    %400 = arith.addf %398, %399 : vector<8x128xf32>
    %401 = arith.negf %400 : vector<8x128xf32>
    %402 = math.exp %401 : vector<8x128xf32>
    %cst_73 = arith.constant 1.000000e+00 : f32
    %403 = vector.broadcast %cst_73 : f32 to vector<8x128xf32>
    %404 = arith.addf %403, %402 : vector<8x128xf32>
    %405 = arith.divf %403, %404 : vector<8x128xf32>
    %406 = vector.extract_strided_slice %396 {offsets = [0, 128], sizes = [8, 128], strides = [1, 1]} : vector<8x384xf32> to vector<8x128xf32>
    %407 = vector.extract_strided_slice %397 {offsets = [0, 128], sizes = [8, 128], strides = [1, 1]} : vector<8x384xf32> to vector<8x128xf32>
    %408 = arith.addf %406, %407 : vector<8x128xf32>
    %409 = arith.negf %408 : vector<8x128xf32>
    %410 = math.exp %409 : vector<8x128xf32>
    %cst_74 = arith.constant 1.000000e+00 : f32
    %411 = vector.broadcast %cst_74 : f32 to vector<8x128xf32>
    %412 = arith.addf %411, %410 : vector<8x128xf32>
    %413 = arith.divf %411, %412 : vector<8x128xf32>
    %414 = vector.extract_strided_slice %396 {offsets = [0, 256], sizes = [8, 128], strides = [1, 1]} : vector<8x384xf32> to vector<8x128xf32>
    %415 = vector.extract_strided_slice %397 {offsets = [0, 256], sizes = [8, 128], strides = [1, 1]} : vector<8x384xf32> to vector<8x128xf32>
    %416 = vector.broadcast %21 : vector<1x128xf32> to vector<8x128xf32>
    %417 = arith.addf %415, %416 : vector<8x128xf32>
    %418 = arith.mulf %405, %417 : vector<8x128xf32>
    %419 = arith.addf %414, %418 : vector<8x128xf32>
    %420 = math.tanh %419 : vector<8x128xf32>
    %cst_75 = arith.constant 1.000000e+00 : f32
    %421 = vector.broadcast %cst_75 : f32 to vector<8x128xf32>
    %422 = arith.subf %421, %413 : vector<8x128xf32>
    %423 = arith.mulf %422, %420 : vector<8x128xf32>
    %424 = arith.mulf %413, %394 : vector<8x128xf32>
    %425 = arith.addf %423, %424 : vector<8x128xf32>
    %426 = vector.extract_strided_slice %17 {offsets = [5, 0, 0], sizes = [1, 8, 384], strides = [1, 1, 1]} : vector<8x8x384xf32> to vector<1x8x384xf32>
    %427 = vector.shape_cast %426 : vector<1x8x384xf32> to vector<8x384xf32>
    %cst_76 = arith.constant dense<0.000000e+00> : vector<8x384xf32>
    %428 = tpu.matmul %425, %19, %cst_76 {dimension_numbers = #tpu.dot_dimension_numbers<[1], [0], [0], [1], [0, 0, 1, 1], [], []>} : vector<8x128xf32>, vector<128x384xf32>, vector<8x384xf32> -> vector<8x384xf32>
    %429 = vector.extract_strided_slice %427 {offsets = [0, 0], sizes = [8, 128], strides = [1, 1]} : vector<8x384xf32> to vector<8x128xf32>
    %430 = vector.extract_strided_slice %428 {offsets = [0, 0], sizes = [8, 128], strides = [1, 1]} : vector<8x384xf32> to vector<8x128xf32>
    %431 = arith.addf %429, %430 : vector<8x128xf32>
    %432 = arith.negf %431 : vector<8x128xf32>
    %433 = math.exp %432 : vector<8x128xf32>
    %cst_77 = arith.constant 1.000000e+00 : f32
    %434 = vector.broadcast %cst_77 : f32 to vector<8x128xf32>
    %435 = arith.addf %434, %433 : vector<8x128xf32>
    %436 = arith.divf %434, %435 : vector<8x128xf32>
    %437 = vector.extract_strided_slice %427 {offsets = [0, 128], sizes = [8, 128], strides = [1, 1]} : vector<8x384xf32> to vector<8x128xf32>
    %438 = vector.extract_strided_slice %428 {offsets = [0, 128], sizes = [8, 128], strides = [1, 1]} : vector<8x384xf32> to vector<8x128xf32>
    %439 = arith.addf %437, %438 : vector<8x128xf32>
    %440 = arith.negf %439 : vector<8x128xf32>
    %441 = math.exp %440 : vector<8x128xf32>
    %cst_78 = arith.constant 1.000000e+00 : f32
    %442 = vector.broadcast %cst_78 : f32 to vector<8x128xf32>
    %443 = arith.addf %442, %441 : vector<8x128xf32>
    %444 = arith.divf %442, %443 : vector<8x128xf32>
    %445 = vector.extract_strided_slice %427 {offsets = [0, 256], sizes = [8, 128], strides = [1, 1]} : vector<8x384xf32> to vector<8x128xf32>
    %446 = vector.extract_strided_slice %428 {offsets = [0, 256], sizes = [8, 128], strides = [1, 1]} : vector<8x384xf32> to vector<8x128xf32>
    %447 = vector.broadcast %21 : vector<1x128xf32> to vector<8x128xf32>
    %448 = arith.addf %446, %447 : vector<8x128xf32>
    %449 = arith.mulf %436, %448 : vector<8x128xf32>
    %450 = arith.addf %445, %449 : vector<8x128xf32>
    %451 = math.tanh %450 : vector<8x128xf32>
    %cst_79 = arith.constant 1.000000e+00 : f32
    %452 = vector.broadcast %cst_79 : f32 to vector<8x128xf32>
    %453 = arith.subf %452, %444 : vector<8x128xf32>
    %454 = arith.mulf %453, %451 : vector<8x128xf32>
    %455 = arith.mulf %444, %425 : vector<8x128xf32>
    %456 = arith.addf %454, %455 : vector<8x128xf32>
    %457 = vector.extract_strided_slice %17 {offsets = [6, 0, 0], sizes = [1, 8, 384], strides = [1, 1, 1]} : vector<8x8x384xf32> to vector<1x8x384xf32>
    %458 = vector.shape_cast %457 : vector<1x8x384xf32> to vector<8x384xf32>
    %cst_80 = arith.constant dense<0.000000e+00> : vector<8x384xf32>
    %459 = tpu.matmul %456, %19, %cst_80 {dimension_numbers = #tpu.dot_dimension_numbers<[1], [0], [0], [1], [0, 0, 1, 1], [], []>} : vector<8x128xf32>, vector<128x384xf32>, vector<8x384xf32> -> vector<8x384xf32>
    %460 = vector.extract_strided_slice %458 {offsets = [0, 0], sizes = [8, 128], strides = [1, 1]} : vector<8x384xf32> to vector<8x128xf32>
    %461 = vector.extract_strided_slice %459 {offsets = [0, 0], sizes = [8, 128], strides = [1, 1]} : vector<8x384xf32> to vector<8x128xf32>
    %462 = arith.addf %460, %461 : vector<8x128xf32>
    %463 = arith.negf %462 : vector<8x128xf32>
    %464 = math.exp %463 : vector<8x128xf32>
    %cst_81 = arith.constant 1.000000e+00 : f32
    %465 = vector.broadcast %cst_81 : f32 to vector<8x128xf32>
    %466 = arith.addf %465, %464 : vector<8x128xf32>
    %467 = arith.divf %465, %466 : vector<8x128xf32>
    %468 = vector.extract_strided_slice %458 {offsets = [0, 128], sizes = [8, 128], strides = [1, 1]} : vector<8x384xf32> to vector<8x128xf32>
    %469 = vector.extract_strided_slice %459 {offsets = [0, 128], sizes = [8, 128], strides = [1, 1]} : vector<8x384xf32> to vector<8x128xf32>
    %470 = arith.addf %468, %469 : vector<8x128xf32>
    %471 = arith.negf %470 : vector<8x128xf32>
    %472 = math.exp %471 : vector<8x128xf32>
    %cst_82 = arith.constant 1.000000e+00 : f32
    %473 = vector.broadcast %cst_82 : f32 to vector<8x128xf32>
    %474 = arith.addf %473, %472 : vector<8x128xf32>
    %475 = arith.divf %473, %474 : vector<8x128xf32>
    %476 = vector.extract_strided_slice %458 {offsets = [0, 256], sizes = [8, 128], strides = [1, 1]} : vector<8x384xf32> to vector<8x128xf32>
    %477 = vector.extract_strided_slice %459 {offsets = [0, 256], sizes = [8, 128], strides = [1, 1]} : vector<8x384xf32> to vector<8x128xf32>
    %478 = vector.broadcast %21 : vector<1x128xf32> to vector<8x128xf32>
    %479 = arith.addf %477, %478 : vector<8x128xf32>
    %480 = arith.mulf %467, %479 : vector<8x128xf32>
    %481 = arith.addf %476, %480 : vector<8x128xf32>
    %482 = math.tanh %481 : vector<8x128xf32>
    %cst_83 = arith.constant 1.000000e+00 : f32
    %483 = vector.broadcast %cst_83 : f32 to vector<8x128xf32>
    %484 = arith.subf %483, %475 : vector<8x128xf32>
    %485 = arith.mulf %484, %482 : vector<8x128xf32>
    %486 = arith.mulf %475, %456 : vector<8x128xf32>
    %487 = arith.addf %485, %486 : vector<8x128xf32>
    %488 = vector.extract_strided_slice %17 {offsets = [7, 0, 0], sizes = [1, 8, 384], strides = [1, 1, 1]} : vector<8x8x384xf32> to vector<1x8x384xf32>
    %489 = vector.shape_cast %488 : vector<1x8x384xf32> to vector<8x384xf32>
    %cst_84 = arith.constant dense<0.000000e+00> : vector<8x384xf32>
    %490 = tpu.matmul %487, %19, %cst_84 {dimension_numbers = #tpu.dot_dimension_numbers<[1], [0], [0], [1], [0, 0, 1, 1], [], []>} : vector<8x128xf32>, vector<128x384xf32>, vector<8x384xf32> -> vector<8x384xf32>
    %491 = vector.extract_strided_slice %489 {offsets = [0, 0], sizes = [8, 128], strides = [1, 1]} : vector<8x384xf32> to vector<8x128xf32>
    %492 = vector.extract_strided_slice %490 {offsets = [0, 0], sizes = [8, 128], strides = [1, 1]} : vector<8x384xf32> to vector<8x128xf32>
    %493 = arith.addf %491, %492 : vector<8x128xf32>
    %494 = arith.negf %493 : vector<8x128xf32>
    %495 = math.exp %494 : vector<8x128xf32>
    %cst_85 = arith.constant 1.000000e+00 : f32
    %496 = vector.broadcast %cst_85 : f32 to vector<8x128xf32>
    %497 = arith.addf %496, %495 : vector<8x128xf32>
    %498 = arith.divf %496, %497 : vector<8x128xf32>
    %499 = vector.extract_strided_slice %489 {offsets = [0, 128], sizes = [8, 128], strides = [1, 1]} : vector<8x384xf32> to vector<8x128xf32>
    %500 = vector.extract_strided_slice %490 {offsets = [0, 128], sizes = [8, 128], strides = [1, 1]} : vector<8x384xf32> to vector<8x128xf32>
    %501 = arith.addf %499, %500 : vector<8x128xf32>
    %502 = arith.negf %501 : vector<8x128xf32>
    %503 = math.exp %502 : vector<8x128xf32>
    %cst_86 = arith.constant 1.000000e+00 : f32
    %504 = vector.broadcast %cst_86 : f32 to vector<8x128xf32>
    %505 = arith.addf %504, %503 : vector<8x128xf32>
    %506 = arith.divf %504, %505 : vector<8x128xf32>
    %507 = vector.extract_strided_slice %489 {offsets = [0, 256], sizes = [8, 128], strides = [1, 1]} : vector<8x384xf32> to vector<8x128xf32>
    %508 = vector.extract_strided_slice %490 {offsets = [0, 256], sizes = [8, 128], strides = [1, 1]} : vector<8x384xf32> to vector<8x128xf32>
    %509 = vector.broadcast %21 : vector<1x128xf32> to vector<8x128xf32>
    %510 = arith.addf %508, %509 : vector<8x128xf32>
    %511 = arith.mulf %498, %510 : vector<8x128xf32>
    %512 = arith.addf %507, %511 : vector<8x128xf32>
    %513 = math.tanh %512 : vector<8x128xf32>
    %cst_87 = arith.constant 1.000000e+00 : f32
    %514 = vector.broadcast %cst_87 : f32 to vector<8x128xf32>
    %515 = arith.subf %514, %506 : vector<8x128xf32>
    %516 = arith.mulf %515, %513 : vector<8x128xf32>
    %517 = arith.mulf %506, %487 : vector<8x128xf32>
    %518 = arith.addf %516, %517 : vector<8x128xf32>
    %519 = tpu.concatenate %301, %332, %363, %394, %425, %456, %487, %518 in 0 : vector<8x128xf32>, vector<8x128xf32>, vector<8x128xf32>, vector<8x128xf32>, vector<8x128xf32>, vector<8x128xf32>, vector<8x128xf32>, vector<8x128xf32> -> vector<64x128xf32>
    %c0_88 = arith.constant 0 : index
    %c0_89 = arith.constant 0 : index
    %520 = vector.load %arg10[%c0_88, %c0_89] : memref<128x16xf32, #tpu.memory_space<vmem>>, vector<128x16xf32>
    %cst_90 = arith.constant dense<0.000000e+00> : vector<64x16xf32>
    %521 = tpu.matmul %519, %520, %cst_90 {dimension_numbers = #tpu.dot_dimension_numbers<[1], [0], [0], [1], [0, 0, 1, 1], [], []>} : vector<64x128xf32>, vector<128x16xf32>, vector<64x16xf32> -> vector<64x16xf32>
    %c0_91 = arith.constant 0 : index
    %c0_92 = arith.constant 0 : index
    %522 = vector.load %arg11[%c0_91, %c0_92] : memref<1x16xf32, #tpu.memory_space<vmem>>, vector<1x16xf32>
    %523 = vector.broadcast %522 : vector<1x16xf32> to vector<64x16xf32>
    %524 = arith.addf %521, %523 : vector<64x16xf32>
    %cst_93 = arith.constant dense<0xFF800000> : vector<64xf32>
    %525 = vector.multi_reduction <maximumf>, %524, %cst_93 [1] : vector<64x16xf32> to vector<64xf32>
    %526 = vector.shape_cast %525 : vector<64xf32> to vector<64x1xf32>
    %527 = vector.broadcast %526 : vector<64x1xf32> to vector<64x16xf32>
    %528 = arith.subf %524, %527 : vector<64x16xf32>
    %529 = math.exp %528 : vector<64x16xf32>
    %cst_94 = arith.constant dense<0.000000e+00> : vector<64xf32>
    %530 = vector.multi_reduction <add>, %529, %cst_94 [1] : vector<64x16xf32> to vector<64xf32>
    %531 = vector.shape_cast %530 : vector<64xf32> to vector<64x1xf32>
    %532 = math.log %531 : vector<64x1xf32>
    %533 = arith.addf %526, %532 : vector<64x1xf32>
    %534 = vector.broadcast %533 : vector<64x1xf32> to vector<64x16xf32>
    %535 = arith.subf %524, %534 : vector<64x16xf32>
    %536 = tpu.iota {dimensions = array<i32: 1>} : vector<64x16xi32>
    %c0_95 = arith.constant 0 : index
    %c0_96 = arith.constant 0 : index
    %537 = vector.load %arg12[%c0_95, %c0_96] : memref<64x1xi32, #tpu.memory_space<vmem>>, vector<64x1xi32>
    %538 = vector.broadcast %537 : vector<64x1xi32> to vector<64x16xi32>
    %539 = arith.cmpi eq, %536, %538 : vector<64x16xi32>
    %540 = arith.extui %539 : vector<64x16xi1> to vector<64x16xi32>
    %541 = arith.sitofp %540 : vector<64x16xi32> to vector<64x16xf32>
    %542 = arith.mulf %535, %541 : vector<64x16xf32>
    %543 = tpu.iota {dimensions = array<i32: 0>} : vector<8x64xi32>
    %544 = tpu.iota {dimensions = array<i32: 1>} : vector<8x64xi32>
    %c8_i32 = arith.constant 8 : i32
    %c0_i32 = arith.constant 0 : i32
    %545 = arith.cmpi eq, %c8_i32, %c0_i32 : i32
    %c1_i32 = arith.constant 1 : i32
    %546 = arith.select %545, %c1_i32, %c8_i32 : i32
    %547 = vector.broadcast %546 : i32 to vector<8x64xi32>
    %548 = arith.remsi %544, %547 : vector<8x64xi32>
    %c0_i32_97 = arith.constant 0 : i32
    %549 = vector.broadcast %c0_i32_97 : i32 to vector<8x64xi32>
    %550 = arith.cmpi ne, %548, %549 : vector<8x64xi32>
    %c0_i32_98 = arith.constant 0 : i32
    %551 = vector.broadcast %c0_i32_98 : i32 to vector<8x64xi32>
    %552 = arith.cmpi slt, %548, %551 : vector<8x64xi32>
    %c0_i32_99 = arith.constant 0 : i32
    %553 = arith.cmpi slt, %546, %c0_i32_99 : i32
    %554 = vector.broadcast %553 : i1 to vector<8x64xi1>
    %555 = vector.broadcast %554 : vector<8x64xi1> to vector<8x64xi1>
    %556 = arith.xori %552, %555 : vector<8x64xi1>
    %557 = arith.andi %556, %550 : vector<8x64xi1>
    %558 = vector.broadcast %546 : i32 to vector<8x64xi32>
    %559 = arith.addi %548, %558 : vector<8x64xi32>
    %560 = arith.select %557, %559, %548 : vector<8x64xi1>, vector<8x64xi32>
    %561 = arith.cmpi eq, %560, %543 : vector<8x64xi32>
    %562 = arith.extui %561 : vector<8x64xi1> to vector<8x64xi32>
    %563 = arith.sitofp %562 : vector<8x64xi32> to vector<8x64xf32>
    %cst_100 = arith.constant dense<0.000000e+00> : vector<8x16xf32>
    %564 = tpu.matmul %563, %542, %cst_100 {dimension_numbers = #tpu.dot_dimension_numbers<[1], [0], [0], [1], [0, 0, 1, 1], [], []>} : vector<8x64xf32>, vector<64x16xf32>, vector<8x16xf32> -> vector<8x16xf32>
    %cst_101 = arith.constant dense<0.000000e+00> : vector<8xf32>
    %565 = vector.multi_reduction <add>, %564, %cst_101 [1] : vector<8x16xf32> to vector<8xf32>
    %566 = vector.shape_cast %565 : vector<8xf32> to vector<8x1xf32>
    %cst_102 = arith.constant 0.000000e+00 : f32
    %567 = vector.broadcast %cst_102 : f32 to vector<8x1xf32>
    %568 = arith.subf %567, %566 : vector<8x1xf32>
    %c0_103 = arith.constant 0 : index
    %c0_104 = arith.constant 0 : index
    %569 = vector.load %arg13[%c0_103, %c0_104] : memref<8x1xf32, #tpu.memory_space<vmem>>, vector<8x1xf32>
    tpu.vector_store %arg13[%c0_103, %c0_104], %568 {strides = array<i32>} : memref<8x1xf32, #tpu.memory_space<vmem>>, vector<8x1xf32>,
    return
  }
}

</mosaic_0001>

<bundles_post_ra>
// kernel: seq2seq_loss.1
= control target key start
LH: loop header
LB: loop body
LE: loop exit
PB: predicated region body
PF: predicated region fallthrough
CT: control target
= control target key end

     0   :  { %v6038_v3 = vmov 0.0   ;;  %vm81_vm0 = vcmask 261120   ;;  %v6039_v47 = vmov 0.0|0.0   ;;  %vm6040_vm1 = vmmov 0   ;;  %s7693_s2 = inlined_call_operand.vmem [shape: f32[32,384], index: 2, kind: input, shape index: {}]   ;;  %s7694_s0 = inlined_call_operand.vmem [shape: f32[8,8,32], index: 0, kind: input, shape index: {}]   ;;  %s7695_s6 = inlined_call_operand.vmem [shape: f32[32,384], index: 6, kind: input, shape index: {}]   ;;  %s7696_s1 = inlined_call_operand.vmem [shape: f32[8,8,32], index: 1, kind: input, shape index: {}]   ;;  %s7697_s3 = inlined_call_operand.vmem [shape: f32[128,384], index: 3, kind: input, shape index: {}]   ;;  %s7698_s4 = inlined_call_operand.vmem [shape: f32[1,384], index: 4, kind: input, shape index: {}]   ;;  %s7699_s8 = inlined_call_operand.vmem [shape: f32[1,384], index: 8, kind: input, shape index: {}]   ;;  %s7700_s5 = inlined_call_operand.vmem [shape: f32[1,128], index: 5, kind: input, shape index: {}]   ;;  %s7701_s7 = inlined_call_operand.vmem [shape: f32[128,384], index: 7, kind: input, shape index: {}]   ;;  %s7702_s9 = inlined_call_operand.vmem [shape: f32[1,128], index: 9, kind: input, shape index: {}]   ;;  %s7703_s10 = inlined_call_operand.vmem [shape: f32[128,16], index: 10, kind: input, shape index: {}]   ;;  %s7704_s11 = inlined_call_operand.vmem [shape: f32[1,16], index: 11, kind: input, shape index: {}]   ;;  %s7705_s12 = inlined_call_operand.vmem [shape: s32[64,1], index: 12, kind: input, shape index: {}]   ;;  %s7706_s13 = inlined_call_operand.vmem [shape: f32[8,1], index: 13, kind: output, shape index: {}]  }
   0x1   :  { %v53_v0 = vld [vmem:[%s7693_s2 + $0x8] sm:$0xff]  ;;  %v56_v1 = vld [vmem:[%s7693_s2 + $0x20] sm:$0xff]  ;;  %170 = vmatprep.mubr.f32.mxu0 %v6038_v3  ;;  %v55_v5 = vld [vmem:[%s7693_s2 + $0x18] sm:$0xff]  ;;  %vm3457_vm2 = vcmask 130048   ;;  %vm3645_vm12 = vcmask 523264   ;;  %vm3723_vm13 = vcmask 7168  }
   0x2   :  { %v52_v2 = vld [vmem:[%s7693_s2] sm:$0xff]  ;;  %v4798_v4 = vpack.c.bf16 %v56_v1, %v53_v0  ;;  %v59_v6 = vld [vmem:[%s7693_s2 + $0x38] sm:$0xff]  ;;  %v62_v7 = vld [vmem:[%s7693_s2 + $0x50] sm:$0xff] }
   0x3   :  { %v4800_v8 = vpack.c.bf16 %v55_v5, %v52_v2  ;;  %v4802_v9 = vpack.c.bf16 %v62_v7, %v59_v6  ;;  %v58_v10 = vld [vmem:[%s7693_s2 + $0x30] sm:$0xff]  ;;  %v61_v11 = vld [vmem:[%s7693_s2 + $0x48] sm:$0xff]  ;;  %v6146_v16 = vld [vmem:[%s7694_s0 + $0x20] sm:$0xff] }
   0x4   :  { %4799 = vmatprep.subr.bf16.mxu0 %v4798_v4  ;;  %v54_v12 = vld [vmem:[%s7693_s2 + $0x10] sm:$0xff]  ;;  %v57_v13 = vld [vmem:[%s7693_s2 + $0x28] sm:$0xff]  ;;  %v4804_v14 = vpack.c.bf16 %v61_v11, %v58_v10  ;;  %v60_v17 = vld [vmem:[%s7693_s2 + $0x40] sm:$0xff]  ;;  %4149 = vmatprep.mubr.msk.f32.mxu1 %vm81_vm0, %v6146_v16 }
   0x5   :  { %4801 = vmatpush1.bf16.msra.mxu0 %v4800_v8  ;;  %v4806_v15 = vpack.c.bf16 %v57_v13, %v54_v12  ;;  %v63_v18 = vld [vmem:[%s7693_s2 + $0x58] sm:$0xff]  ;;  %v6159_v20 = vld [vmem:[%s7694_s0] sm:$0xff]  ;;  %v342_v21 = vld [vmem:[%s7695_s6 + $0x10] sm:$0xff] }
   0x6   :  { %4803 = vmatprep.subr.bf16.mxu0 %v4802_v9  ;;  %v4810_v19 = vpack.c.bf16 %v63_v18, %v60_v17  ;;  %v345_v22 = vld [vmem:[%s7695_s6 + $0x28] sm:$0xff]  ;;  %v6183_v26 = vld [vmem:[%s7694_s0 + $0x30] sm:$0xff]  ;;  %v344_v28 = vld [vmem:[%s7695_s6 + $0x20] sm:$0xff] }
   0x7   :  { %5770 = vmatprep.subr.bf16.mxu1 %v4806_v15  ;;  %v6173_v23 = vld [vmem:[%s7694_s0 + $0x8] sm:$0xff]  ;;  %v6178_v25 = vpack.c.bf16 %v345_v22, %v342_v21  ;;  %v6200_v29 = vld [vmem:[%s7694_s0 + $0x10] sm:$0xff]  ;;  %v340_v31 = vld [vmem:[%s7695_s6] sm:$0xff] }
   0x8   :  { %5772 = vmatpush3.bf16.msra.mxu1 %v4806_v15  ;;  %v49_v24 = vld [vmem:[%s7694_s0 + $0x28] sm:$0xff]  ;;  %v343_v32 = vld [vmem:[%s7695_s6 + $0x18] sm:$0xff]  ;;  %v350_v36 = vld [vmem:[%s7695_s6 + $0x50] sm:$0xff] }
   0x9   :  { %4805 = vmatpush1.bf16.msra.mxu0 %v4804_v14  ;;  %5771 = vmatprep.subr.bf16.mxu1 %v4810_v19  ;;  %v341_v27 = vld [vmem:[%s7695_s6 + $0x8] sm:$0xff]  ;;  %v6211_v33 = vld [vmem:[%s7694_s0 + $0x38] sm:$0xff]  ;;  %v4816_v34 = vpack.c.bf16 %v343_v32, %v340_v31  ;;  %v346_v37 = vld [vmem:[%s7695_s6 + $0x30] sm:$0xff] }
   0xa   :  { %4807 = vmatprep.subr.bf16.mxu0 %v4806_v15  ;;  %v4814_v30 = vpack.c.bf16 %v344_v28, %v341_v27  ;;  %v347_v35 = vld [vmem:[%s7695_s6 + $0x38] sm:$0xff]  ;;  %v349_v38 = vld [vmem:[%s7695_s6 + $0x48] sm:$0xff]  ;;  %v6240_v42 = vld [vmem:[%s7696_s1] sm:$0xff] }
   0xb   :  { %v6234_v39 = vld [vmem:[%s7694_s0 + $0x18] sm:$0xff]  ;;  %v4818_v40 = vpack.c.bf16 %v350_v36, %v347_v35  ;;  %v4820_v41 = vpack.c.bf16 %v349_v38, %v346_v37  ;;  %v613_v43 = vld [vmem:[%s7697_s3 + $0x10] sm:$0xff]  ;;  %v616_v44 = vld [vmem:[%s7697_s3 + $0x28] sm:$0xff]  ;;  %v332_v46 = vmax.f32 %v6240_v42, 0.0 }
   0xc   :  { %3729 = vmatmul.mubr.msk.f32.vlgmr.msra.gmra.mrb[0].mxu0 %vm81_vm0, %v6159_v20  ;;  %5773 = vmatpush3.bf16.msra.mxu1 %v4810_v19  ;;  %v6250_v45 = vpack.c.bf16 %v616_v44, %v613_v43  ;;  %v619_v48 = vld [vmem:[%s7697_s3 + $0x40] sm:$0xff]  ;;  %v6261_v49 = vld [vmem:[%s7696_s1 + $0x8] sm:$0xff]  ;;  %v622_v50 = vld [vmem:[%s7697_s3 + $0x58] sm:$0xff] }
   0xd   :  { %4809 = vmatpush3.bf16.msra.mxu0 %v4806_v15  ;;  %176 = vmatprep.mubr.f32.mxu0 %v6038_v3  ;;  %v6272_v51 = vpack.c.bf16 %v622_v50, %v619_v48  ;;  %v333_v52 = vmax.f32 %v6261_v49, 0.0  ;;  %v625_v53 = vld [vmem:[%s7697_s3 + $0x70] sm:$0xff]  ;;  %v628_v54 = vld [vmem:[%s7697_s3 + $0x88] sm:$0xff]  ;;  %v631_v58 = vld [vmem:[%s7697_s3 + $0xa0] sm:$0xff] }
   0xe   :  { %4811 = vmatprep.subr.bf16.mxu0 %v4810_v19  ;;  %4815 = vmatprep.subr.bf16.mxu1 %v4814_v30  ;;  %v6286_v55 = vld [vmem:[%s7696_s1 + $0x10] sm:$0xff]  ;;  %v6294_v56 = vpack.c.bf16 %v628_v54, %v625_v53  ;;  %v634_v59 = vld [vmem:[%s7697_s3 + $0xb8] sm:$0xff]  ;;  %v640_v0 = vld [vmem:[%s7697_s3 + $0xe8] sm:$0xff] }
   0xf   :  { %4150 = vmatmul.mubr.msk.f32.vlgmr.msra.gmra.mrb[0].mxu1 %vm81_vm0, %v49_v24  ;;  %v334_v57 = vmax.f32 %v6286_v55, 0.0  ;;  %v6308_v60 = vld [vmem:[%s7696_s1 + $0x18] sm:$0xff]  ;;  %v6317_v61 = vpack.c.bf16 %v634_v59, %v631_v58  ;;  %v637_v63 = vld [vmem:[%s7697_s3 + $0xd0] sm:$0xff]  ;;  %v6331_v1 = vld [vmem:[%s7696_s1 + $0x20] sm:$0xff] }
  0x10   :  { %3730 = vmatmul.mubr.msk.f32.gmra.mrb[2].mxu0 %vm81_vm0, %v6173_v23  ;;  %4152 = vmatprep.mubr.msk.f32.mxu1 %vm81_vm0, %v6183_v26  ;;  %v335_v62 = vmax.f32 %v6308_v60, 0.0  ;;  %v348_v2 = vld [vmem:[%s7695_s6 + $0x40] sm:$0xff]  ;;  %v351_v4 = vld [vmem:[%s7695_s6 + $0x58] sm:$0xff]  ;;  %v6346_v5 = vpack.c.bf16 %v640_v0, %v637_v63  ;;  %v336_v6 = vmax.f32 %v6331_v1, 0.0  ;;  %v6361_v10 = vld [vmem:[%s7696_s1 + $0x28] sm:$0xff] }
  0x11   :  { %182 = vmatprep.mubr.f32.mxu0 %v6038_v3  ;;  %4813 = vmatpush3.bf16.msra.mxu0 %v4810_v19  ;;  %v643_v7 = vld [vmem:[%s7697_s3 + $0x100] sm:$0xff]  ;;  %v646_v8 = vld [vmem:[%s7697_s3 + $0x118] sm:$0xff]  ;;  %v4826_v9 = vpack.c.bf16 %v351_v4, %v348_v2  ;;  %v612_v11 = vld [vmem:[%s7697_s3 + $0x8] sm:$0xff]  ;;  %v337_v14 = vmax.f32 %v6361_v10, 0.0 }
  0x12   :  { %4823 = vmatprep.subr.bf16.mxu0 %v6178_v25  ;;  %4817 = vmatpush1.bf16.msra.mxu1 %v4816_v34  ;;  %v615_v12 = vld [vmem:[%s7697_s3 + $0x20] sm:$0xff]  ;;  %v6376_v13 = vpack.c.bf16 %v646_v8, %v643_v7  ;;  %v649_v15 = vld [vmem:[%s7697_s3 + $0x130] sm:$0xff]  ;;  %v614_v19 = vld [vmem:[%s7697_s3 + $0x18] sm:$0xff] }
  0x13   :  { %4153 = vmatmul.mubr.msk.f32.gmra.mrb[2].mxu1 %vm81_vm0, %v6211_v33  ;;  %4819 = vmatprep.subr.bf16.mxu1 %v4818_v40  ;;  %v6388_v17 = vpack.c.bf16 %v615_v12, %v612_v11  ;;  %v611_v18 = vld [vmem:[%s7697_s3] sm:$0xff]  ;;  %v618_v21 = vld [vmem:[%s7697_s3 + $0x38] sm:$0xff]  ;;  %v621_v22 = vld [vmem:[%s7697_s3 + $0x50] sm:$0xff] }
  0x14   :  { %3731 = vmatmul.mubr.msk.f32.gmra.mrb[4].mxu0 %vm81_vm0, %v6200_v29  ;;  %457 = vmatprep.mubr.f32.mxu1 %v6038_v3  ;;  %v658_v27 = vld [vmem:[%s7697_s3 + $0x178] sm:$0xff]  ;;  %v6427_v28 = vpack.c.bf16 %v621_v22, %v618_v21  ;;  %v620_v30 = vld [vmem:[%s7697_s3 + $0x48] sm:$0xff]  ;;  %v623_v38 = vld [vmem:[%s7697_s3 + $0x60] sm:$0xff] }
  0x15   :  { %188 = vmatprep.mubr.f32.mxu0 %v6038_v3  ;;  %v331_v31 = vld [vmem:[%s7696_s1 + $0x38] sm:$0xff]  ;;  %v624_v32 = vld [vmem:[%s7697_s3 + $0x68] sm:$0xff]  ;;  %v629_v44 = vld [vmem:[%s7697_s3 + $0x90] sm:$0xff] }
  0x16   :  { %4821 = vmatpush1.bf16.msra.mxu1 %v4820_v41  ;;  %v339_v36 = vmax.f32 %v331_v31, 0.0  ;;  %v630_v40 = vld [vmem:[%s7697_s3 + $0x98] sm:$0xff]  ;;  %v633_v41 = vld [vmem:[%s7697_s3 + $0xb0] sm:$0xff]  ;;  %v636_v48 = vld [vmem:[%s7697_s3 + $0xc8] sm:$0xff] }
  0x17   :  { %4862 = vmatprep.subr.bf16.mxu1 %v6039_v47  ;;  %v6488_v43 = vpack.c.bf16 %v633_v41, %v630_v40  ;;  %v639_v49 = vld [vmem:[%s7697_s3 + $0xe0] sm:$0xff]  ;;  %v638_v54 = vld [vmem:[%s7697_s3 + $0xd8] sm:$0xff]  ;;  %v641_v60 = vld [vmem:[%s7697_s3 + $0xf0] sm:$0xff] }
  0x18   :  { %3732 = vmatmul.mubr.msk.f32.gmra.mrb[6].mxu0 %vm81_vm0, %v6234_v39  ;;  %v635_v53 = vld [vmem:[%s7697_s3 + $0xc0] sm:$0xff]  ;;  %v642_v55 = vld [vmem:[%s7697_s3 + $0xf8] sm:$0xff]  ;;  %v648_v63 = vld [vmem:[%s7697_s3 + $0x128] sm:$0xff] }
  0x19   :  { %194 = vmatprep.mubr.f32.mxu0 %v6038_v3  ;;  %3745 = vmatmul.mubr.msk.f32.vlgmr.msra.gmra.mrb[4].mxu1 %vm81_vm0, %v332_v46  ;;  %v6535_v58 = vpack.c.bf16 %v638_v54, %v635_v53  ;;  %v651_v0 = vld [vmem:[%s7697_s3 + $0x140] sm:$0xff]  ;;  %v654_v7 = vld [vmem:[%s7697_s3 + $0x158] sm:$0xff]  ;;  %v657_v8 = vld [vmem:[%s7697_s3 + $0x170] sm:$0xff] }
  0x1a   :  { %4864 = vmatpush3.bf16.msra.mxu1 %v6250_v45  ;;  %463 = vmatprep.mubr.f32.mxu1 %v6038_v3  ;;  %v6560_v2 = vpack.c.bf16 %v651_v0, %v648_v63  ;;  %v647_v4 = vld [vmem:[%s7697_s3 + $0x120] sm:$0xff]  ;;  %v6580_v10 = vpack.c.bf16 %v657_v8, %v654_v7  ;;  %v653_v11 = vld [vmem:[%s7697_s3 + $0x150] sm:$0xff]  ;;  %v656_v12 = vld [vmem:[%s7697_s3 + $0x168] sm:$0xff] }
  0x1b   :  { %4865 = vmatprep.subr.bf16.mxu1 %v6039_v47 }
  0x1c   :  { %3733 = vmatmul.mubr.msk.f32.gmra.mrb[8].mxu0 %vm81_vm0, %v6146_v16  ;;  %v652_v16 = vld [vmem:[%s7697_s3 + $0x148] sm:$0xff] }
  0x1d   :  { %200 = vmatprep.mubr.f32.mxu0 %v6038_v3  ;;  %3746 = vmatmul.mubr.msk.f32.gmra.mrb[6].mxu1 %vm81_vm0, %v333_v52 }
  0x1e   :  { %4867 = vmatpush3.bf16.msra.mxu1 %v6272_v51  ;;  %469 = vmatprep.mubr.f32.mxu1 %v6038_v3 }
  0x1f   :  { %4868 = vmatprep.subr.bf16.mxu1 %v6039_v47 }
  0x20   :  { %3734 = vmatmul.mubr.msk.f32.gmra.mrb[10].mxu0 %vm81_vm0, %v49_v24  ;;  %v6418_v24 = vpack.c.bf16 %v614_v19, %v611_v18  ;;  %v64_v19 = vld [vmem:[%s7698_s4] sm:$0x7] }
  0x21   :  { %206 = vmatprep.mubr.f32.mxu0 %v6038_v3  ;;  %3747 = vmatmul.mubr.msk.f32.gmra.mrb[8].mxu1 %vm81_vm0, %v334_v57 }
  0x22   :  { %4870 = vmatpush3.bf16.msra.mxu1 %v6294_v56  ;;  %475 = vmatprep.mubr.f32.mxu1 %v6038_v3 }
  0x23   :  { %4871 = vmatprep.subr.bf16.mxu1 %v6039_v47 }
  0x24   :  { %3735 = vmatmul.mubr.msk.f32.gmra.mrb[12].mxu0 %vm81_vm0, %v6183_v26  ;;  %v655_v26 = vld [vmem:[%s7697_s3 + $0x160] sm:$0xff] }
  0x25   :  { %212 = vmatprep.mubr.f32.mxu0 %v6038_v3  ;;  %3748 = vmatmul.mubr.msk.f32.gmra.mrb[10].mxu1 %vm81_vm0, %v335_v62  ;;  %v6451_v34 = vpack.c.bf16 %v658_v27, %v655_v26 }
  0x26   :  { %4873 = vmatpush3.bf16.msra.mxu1 %v6317_v61  ;;  %481 = vmatprep.mubr.f32.mxu1 %v6038_v3 }
  0x27   :  { %4874 = vmatprep.subr.bf16.mxu1 %v6039_v47 }
  0x28   :  { %3736 = vmatmul.mubr.msk.f32.gmra.mrb[14].mxu0 %vm81_vm0, %v6211_v33  ;;  %v627_v33 = vld [vmem:[%s7697_s3 + $0x80] sm:$0xff] }
  0x29   :  { %4143 = vmatprep.mubr.msk.f32.mxu0 %vm81_vm0, %v6159_v20  ;;  %3749 = vmatmul.mubr.msk.f32.gmra.mrb[12].mxu1 %vm81_vm0, %v336_v6  ;;  %v330_v20 = vld [vmem:[%s7696_s1 + $0x30] sm:$0xff]  ;;  %v6460_v37 = vpack.c.bf16 %v627_v33, %v624_v32 }
  0x2a   :  { %4876 = vmatpush3.bf16.msra.mxu1 %v6346_v5  ;;  %487 = vmatprep.mubr.f32.mxu1 %v6038_v3 }
  0x2b   :  { %4877 = vmatprep.subr.bf16.mxu1 %v6039_v47 }
  0x2c   :  { %4144 = vmatmul.mubr.msk.f32.vlgmr.msra.gmra.mrb[16].mxu0 %vm81_vm0, %v6173_v23  ;;  %v6413_v23 = vpack.c.bf16 %v652_v16, %v649_v15  ;;  %v7707_v15 = vlaneseq }
  0x2d   :  { %4825 = vmatpush3.bf16.msra.mxu0 %v6178_v25  ;;  %4146 = vmatprep.mubr.msk.f32.mxu0 %vm81_vm0, %v6200_v29  ;;  %v338_v25 = vmax.f32 %v330_v20, 0.0  ;;  %v617_v29 = vld [vmem:[%s7697_s3 + $0x30] sm:$0xff] }
  0x2e   :  { %4827 = vmatprep.subr.bf16.mxu0 %v4826_v9  ;;  %3750 = vmatmul.mubr.msk.f32.gmra.mrb[14].mxu1 %vm81_vm0, %v337_v14  ;;  %v6454_v35 = vpack.c.bf16 %v620_v30, %v617_v29  ;;  %v6621_v16 = vshrl.u32 %v7707_v15, 7 }
  0x2f   :  { %4879 = vmatpush3.bf16.msra.mxu1 %v6376_v13  ;;  %493 = vmatprep.mubr.f32.mxu1 %v6038_v3 }
  0x30   :  { %4147 = vmatmul.mubr.msk.f32.gmra.mrb[18].mxu0 %vm81_vm0, %v6234_v39  ;;  %4880 = vmatprep.subr.bf16.mxu1 %v6039_v47  ;;  %v626_v39 = vld [vmem:[%s7697_s3 + $0x78] sm:$0xff]  ;;  %v76_v18 = vsub.s32 2, %v6621_v16 }
  0x31   :  { %4829 = vmatpush3.bf16.msra.mxu0 %v4826_v9  ;;  %4163 = vmatprep.mubr.msk.f32.mxu0 %vm81_vm0, %v332_v46  ;;  %v6482_v42 = vpack.c.bf16 %v626_v39, %v623_v38  ;;  %v632_v46 = vld [vmem:[%s7697_s3 + $0xa8] sm:$0xff]  ;;  %v352_v38 = vld [vmem:[%s7699_s8] sm:$0x7] }
  0x32   :  { %4831 = vmatprep.subr.bf16.mxu0 %v6388_v17  ;;  %3751 = vmatmul.mubr.msk.f32.gmra.mrb[16].mxu1 %vm81_vm0, %v338_v25  ;;  %v6511_v50 = vpack.c.bf16 %v632_v46, %v629_v44  ;;  %v77_v20 = vrot.slane %v64_v19, %v76_v18  ;;  %v6642_v44 = vrot.slane %v352_v38, %v76_v18 }
  0x33   :  { %4882 = vmatpush3.bf16.msra.mxu1 %v6413_v23  ;;  %499 = vmatprep.mubr.f32.mxu1 %v6038_v3 }
  0x34   :  { %4164 = vmatmul.mubr.msk.f32.vlgmr.msra.gmra.mrb[20].mxu0 %vm81_vm0, %v333_v52  ;;  %4883 = vmatprep.subr.bf16.mxu1 %v6039_v47  ;;  %v6515_v52 = vpack.c.bf16 %v639_v49, %v636_v48 }
  0x35   :  { %4833 = vmatpush1.bf16.msra.mxu0 %v6418_v24  ;;  %4166 = vmatprep.mubr.msk.f32.mxu0 %vm81_vm0, %v334_v57  ;;  %v645_v57 = vld [vmem:[%s7697_s3 + $0x110] sm:$0xff] }
  0x36   :  { %4835 = vmatprep.subr.bf16.mxu0 %v6427_v28  ;;  %3752 = vmatmul.mubr.msk.f32.gmra.mrb[18].mxu1 %vm81_vm0, %v339_v36  ;;  %v6539_v59 = vpack.c.bf16 %v645_v57, %v642_v55 }
  0x37   :  { %4885 = vmatpush3.bf16.msra.mxu1 %v6451_v34  ;;  %4207 = vmatprep.mubr.msk.f32.mxu1 %vm6040_vm1, %v6038_v3 }
  0x38   :  { %4167 = vmatmul.mubr.msk.f32.gmra.mrb[22].mxu0 %vm81_vm0, %v335_v62  ;;  %4918 = vmatprep.subr.bf16.mxu1 %v6039_v47  ;;  %v644_v62 = vld [vmem:[%s7697_s3 + $0x108] sm:$0xff] }
  0x39   :  { %4837 = vmatpush1.bf16.msra.mxu0 %v6454_v35  ;;  %4169 = vmatprep.mubr.msk.f32.mxu0 %vm81_vm0, %v336_v6  ;;  %v6556_v1 = vpack.c.bf16 %v644_v62, %v641_v60  ;;  %v650_v6 = vld [vmem:[%s7697_s3 + $0x138] sm:$0xff] }
  0x3a   :  { %4839 = vmatprep.subr.bf16.mxu0 %v6460_v37  ;;  %4208 = vmatmul.mubr.f32.vlgmr.msra.gmra.mrb[20].mxu1 %v6038_v3  ;;  %v6576_v9 = vpack.c.bf16 %v650_v6, %v647_v4 }
  0x3b   :  { %4920 = vmatpush3.bf16.msra.mxu1 %v6250_v45  ;;  %4242 = vmatprep.mubr.msk.f32.mxu1 %vm6040_vm1, %v6038_v3 }
  0x3c   :  { %4170 = vmatmul.mubr.msk.f32.gmra.mrb[24].mxu0 %vm81_vm0, %v337_v14  ;;  %4921 = vmatprep.subr.bf16.mxu1 %v6039_v47  ;;  %v6590_v14 = vpack.c.bf16 %v656_v12, %v653_v11 }
  0x3d   :  { %4841 = vmatpush1.bf16.msra.mxu0 %v6482_v42  ;;  %4172 = vmatprep.mubr.msk.f32.mxu0 %vm81_vm0, %v338_v25 }
  0x3e   :  { %4843 = vmatprep.subr.bf16.mxu0 %v6488_v43 }
  0x3f   :  { %4923 = vmatpush3.bf16.msra.mxu1 %v6272_v51 }
  0x40   :  { %4173 = vmatmul.mubr.msk.f32.gmra.mrb[26].mxu0 %vm81_vm0, %v339_v36  ;;  %4924 = vmatprep.subr.bf16.mxu1 %v6039_v47 }
  0x41   :  { %4845 = vmatpush1.bf16.msra.mxu0 %v6511_v50  ;;  %773 = vmatprep.mubr.f32.mxu0 %v6038_v3 }
  0x42   :  { %4847 = vmatprep.subr.bf16.mxu0 %v6515_v52 }
  0x43   :  { %4926 = vmatpush3.bf16.msra.mxu1 %v6294_v56 }
  0x44   :  { %4927 = vmatprep.subr.bf16.mxu1 %v6039_v47 }
  0x45   :  { %4849 = vmatpush1.bf16.msra.mxu0 %v6535_v58 }
  0x46   :  { %4851 = vmatprep.subr.bf16.mxu0 %v6539_v59 }
  0x47   :  { %4929 = vmatpush3.bf16.msra.mxu1 %v6317_v61 }
  0x48   :  { %4930 = vmatprep.subr.bf16.mxu1 %v6039_v47 }
  0x49   :  { %4853 = vmatpush1.bf16.msra.mxu0 %v6556_v1 }
  0x4a   :  { %4855 = vmatprep.subr.bf16.mxu0 %v6560_v2 }
  0x4b   :  { %4932 = vmatpush3.bf16.msra.mxu1 %v6346_v5 }
  0x4c   :  { %4933 = vmatprep.subr.bf16.mxu1 %v6039_v47 }
  0x4d   :  { %4857 = vmatpush1.bf16.msra.mxu0 %v6576_v9 }
  0x4e   :  { %4859 = vmatprep.subr.bf16.mxu0 %v6580_v10 }
  0x4f   :  { %4935 = vmatpush3.bf16.msra.mxu1 %v6376_v13 }
  0x50   :  { %4936 = vmatprep.subr.bf16.mxu1 %v6039_v47 }
  0x51   :  { %4861 = vmatpush1.bf16.msra.mxu0 %v6590_v14 }
  0x52   :  { %4887 = vmatprep.subr.bf16.mxu0 %v6388_v17 }
  0x53   :  { %4938 = vmatpush3.bf16.msra.mxu1 %v6413_v23 }
  0x54   :  { %774 = vmatmul.mubr.f32.vlgmr.msra.gmra.mrb[0].mxu0 %v6038_v3  ;;  %4939 = vmatprep.subr.bf16.mxu1 %v6039_v47 }
  0x55   :  { %4889 = vmatpush1.bf16.msra.mxu0 %v6418_v24  ;;  %942 = vmatprep.mubr.f32.mxu0 %v6038_v3 }
  0x56   :  { %4891 = vmatprep.subr.bf16.mxu0 %v6427_v28 }
  0x57   :  { %4941 = vmatpush3.bf16.msra.mxu1 %v6451_v34 }
  0x58   :  { %4974 = vmatprep.subr.bf16.mxu1 %v6039_v47 }
  0x59   :  { %4893 = vmatpush1.bf16.msra.mxu0 %v6454_v35 }
  0x5a   :  { %4895 = vmatprep.subr.bf16.mxu0 %v6460_v37 }
  0x5d   :  { %4897 = vmatpush1.bf16.msra.mxu0 %v6482_v42 }
  0x5e   :  { %4899 = vmatprep.subr.bf16.mxu0 %v6488_v43 }
  0x61   :  { %4901 = vmatpush1.bf16.msra.mxu0 %v6511_v50 }
  0x62   :  { %4903 = vmatprep.subr.bf16.mxu0 %v6515_v52 }
  0x65   :  { %4905 = vmatpush1.bf16.msra.mxu0 %v6535_v58 }
  0x66   :  { %4907 = vmatprep.subr.bf16.mxu0 %v6539_v59 }
  0x69   :  { %4909 = vmatpush1.bf16.msra.mxu0 %v6556_v1 }
  0x6a   :  { %4911 = vmatprep.subr.bf16.mxu0 %v6560_v2 }
  0x6d   :  { %4913 = vmatpush1.bf16.msra.mxu0 %v6576_v9 }
  0x6e   :  { %4915 = vmatprep.subr.bf16.mxu0 %v6580_v10 }
  0x71   :  { %4917 = vmatpush1.bf16.msra.mxu0 %v6590_v14 }
  0x72   :  { %4943 = vmatprep.subr.bf16.mxu0 %v6388_v17 }
  0xe2   :  { %v4151_v21 = vpop.f32.mrb[0].mxu1 }
  0xe3   :  { %v6627_v22 = vadd.f32 %v4151_v21, %v77_v20  ;;  %v305_v25 = vpop.f32.mrb[1].mxu1  ;;  %v68_v21 = vsub.s32 0, %v6621_v16 }
  0xe4   :  { %v6629_v26 = vadd.f32 %v305_v25, %v77_v20  ;;  %v7708_v25 = vsub.s32 1, %v6621_v16 }
  0xe6   :  { %v4154_v27 = vpop.f32.mrb[2].mxu1 }
  0xe7   :  { %v6631_v29 = vadd.f32 %v4154_v27, %v77_v20  ;;  %v315_v30 = vpop.f32.mrb[3].mxu1  ;;  %v6673_v27 = vrot.slane %v64_v19, %v68_v21 }
  0xe8   :  { %v6633_v31 = vadd.f32 %v315_v30, %v77_v20 }
  0xff   :  { %v4145_v32 = vpop.f32.mrb[16].mxu0 }
 0x100   :  { %v6635_v33 = vadd.f32 %v4145_v32, %v77_v20  ;;  %v285_v36 = vpop.f32.mrb[17].mxu0  ;;  %v6677_v32 = vrot.slane %v64_v19, %v7708_v25 }
 0x103   :  { %v4148_v39 = vpop.f32.mrb[18].mxu0 }
 0x104   :  { %v6640_v40 = vadd.f32 %v4148_v39, %v77_v20  ;;  %v295_v41 = vpop.f32.mrb[19].mxu0 }
 0x105   :  { %v6644_v46 = vadd.f32 %v295_v41, %v77_v20 }
 0x107   :  { %v4165_v48 = vpop.f32.mrb[20].mxu0 }
 0x108   :  { %v6647_v49 = vadd.f32 %v4165_v48, %v6642_v44  ;;  %v6649_v53 = vpop.f32.mrb[21].mxu0 }
 0x10b   :  { %v4168_v54 = vpop.f32.mrb[22].mxu0 }
 0x10c   :  { %v6652_v55 = vadd.f32 %v4168_v54, %v6642_v44  ;;  %v582_v57 = vpop.f32.mrb[23].mxu0 }
 0x10d   :  { %v6655_v60 = vadd.f32 %v582_v57, %v6642_v44  ;;  %v846_v62 = vpop.f32.mrb[20].mxu1 }
 0x10e   :  { %v4209_v0 = vpop.f32.mrb[21].mxu1 }
 0x10f   :  { %v4171_v63 = vpop.f32.mrb[24].mxu0 }
 0x110   :  { %v6658_v4 = vadd.f32 %v4171_v63, %v6642_v44  ;;  %v592_v6 = vpop.f32.mrb[25].mxu0 }
 0x111   :  { %v6661_v7 = vadd.f32 %v592_v6, %v6642_v44  ;;  %v6684_v6 = vld [vmem:[%s7700_s5] ss:$0 sm:$0xff] }
 0x113   :  { %v4174_v8 = vpop.f32.mrb[26].mxu0 }
 0x114   :  { %v6664_v11 = vadd.f32 %v4174_v8, %v6642_v44  ;;  %v602_v12 = vpop.f32.mrb[27].mxu0  ;;  %v870_v8 = vadd.f32 %v6684_v6, %v846_v62 }
 0x115   :  { %v6667_v18 = vadd.f32 %v602_v12, %v6642_v44 }
 0x127   :  { %v775_v30 = vpop.f32.mrb[0].mxu0 }
 0x128   :  { %v5774_v38 = vadd.f32 %v775_v30, %v6673_v27  ;;  %v777_v39 = vpop.f32.mrb[1].mxu0  ;;  %v286_v30 = vadd.f32 %v285_v36, %v77_v20 }
 0x129   :  { %v5775_v48 = vadd.f32 %v777_v39, %v6677_v32 }
 0x12a   :  { %v3761_v41 = vmul.f32 -1.442695, %v5774_v38 }
 0x12b   :  { %v3762_v54 = vmul.f32 -1.442695, %v5775_v48 }
 0x12c   :  { %5844 = vpow2.f32 %v3761_v41 }
 0x12d   :  { %5846 = vpow2.f32 %v3762_v54 }
 0x136   :  { %v5845_v57 = vpop.eup %5844 }
 0x137   :  { %v854_v63 = vadd.f32 1.0, %v5845_v57  ;;  %v5847_v0 = vpop.eup %5846 }
 0x138   :  { %v861_v19 = vadd.f32 1.0, %v5847_v0 }
 0x139   :  { %5848 = vrcp.f32 %v854_v63 }
 0x13a   :  { %5850 = vrcp.f32 %v861_v19 }
 0x143   :  { %v5849_v12 = vpop.eup %5848 }
 0x144   :  { %v871_v38 = vmul.f32 %v5849_v12, %v870_v8  ;;  %v5851_v41 = vpop.eup %5850 }
 0x145   :  { %v874_v48 = vsub.f32 1.0, %v5851_v41  ;;  %v876_v63 = vmul.f32 0.0, %v5851_v41 }
 0x146   :  { %v872_v39 = vadd.f32 %v871_v38, %v286_v30 }
 0x148   :  { %5852 = vtanh.f32 %v872_v39 }
 0x152   :  { %v5853_v54 = vpop.eup %5852 }
 0x153   :  { %v875_v57 = vmul.f32 %v5853_v54, %v874_v48 }
 0x155   :  { %v877_v15 = vadd.f32 %v876_v63, %v875_v57 }
 0x157   :  { %943 = vmatmul.mubr.f32.vlgmr.msra.gmra.mrb[2].mxu0 %v877_v15  ;;  %4243 = vmatmul.mubr.f32.vlgmr.msra.gmra.mrb[22].mxu1 %v877_v15 }
 0x158   :  { %4945 = vmatpush1.bf16.msra.mxu0 %v6418_v24  ;;  %4976 = vmatpush3.bf16.msra.mxu1 %v6250_v45 }
 0x159   :  { %4947 = vmatprep.subr.bf16.mxu0 %v6427_v28  ;;  %4977 = vmatprep.subr.bf16.mxu1 %v6039_v47 }
 0x15a   :  { %1105 = vmatprep.mubr.f32.mxu0 %v6038_v3  ;;  %4277 = vmatprep.mubr.msk.f32.mxu1 %vm6040_vm1, %v6038_v3 }
 0x15c   :  { %4949 = vmatpush1.bf16.msra.mxu0 %v6454_v35  ;;  %4979 = vmatpush3.bf16.msra.mxu1 %v6272_v51 }
 0x15d   :  { %4951 = vmatprep.subr.bf16.mxu0 %v6460_v37  ;;  %4980 = vmatprep.subr.bf16.mxu1 %v6039_v47 }
 0x160   :  { %4953 = vmatpush1.bf16.msra.mxu0 %v6482_v42  ;;  %4982 = vmatpush3.bf16.msra.mxu1 %v6294_v56 }
 0x161   :  { %4955 = vmatprep.subr.bf16.mxu0 %v6488_v43  ;;  %4983 = vmatprep.subr.bf16.mxu1 %v6039_v47 }
 0x164   :  { %4957 = vmatpush1.bf16.msra.mxu0 %v6511_v50  ;;  %4985 = vmatpush3.bf16.msra.mxu1 %v6317_v61 }
 0x165   :  { %4959 = vmatprep.subr.bf16.mxu0 %v6515_v52  ;;  %4986 = vmatprep.subr.bf16.mxu1 %v6039_v47 }
 0x168   :  { %4961 = vmatpush1.bf16.msra.mxu0 %v6535_v58  ;;  %4988 = vmatpush3.bf16.msra.mxu1 %v6346_v5 }
 0x169   :  { %4963 = vmatprep.subr.bf16.mxu0 %v6539_v59  ;;  %4989 = vmatprep.subr.bf16.mxu1 %v6039_v47 }
 0x16c   :  { %4965 = vmatpush1.bf16.msra.mxu0 %v6556_v1  ;;  %4991 = vmatpush3.bf16.msra.mxu1 %v6376_v13 }
 0x16d   :  { %4967 = vmatprep.subr.bf16.mxu0 %v6560_v2  ;;  %4992 = vmatprep.subr.bf16.mxu1 %v6039_v47 }
 0x170   :  { %4969 = vmatpush1.bf16.msra.mxu0 %v6576_v9  ;;  %4994 = vmatpush3.bf16.msra.mxu1 %v6413_v23 }
 0x171   :  { %4971 = vmatprep.subr.bf16.mxu0 %v6580_v10  ;;  %4995 = vmatprep.subr.bf16.mxu1 %v6039_v47 }
 0x174   :  { %4973 = vmatpush1.bf16.msra.mxu0 %v6590_v14  ;;  %4997 = vmatpush3.bf16.msra.mxu1 %v6451_v34 }
 0x175   :  { %4999 = vmatprep.subr.bf16.mxu0 %v6388_v17  ;;  %5030 = vmatprep.subr.bf16.mxu1 %v6039_v47 }
 0x22a   :  { %v944_v20 = vpop.f32.mrb[2].mxu0  ;;  %v1015_v36 = vpop.f32.mrb[22].mxu1 }
 0x22b   :  { %v5776_v62 = vadd.f32 %v944_v20, %v6673_v27  ;;  %v946_v0 = vpop.f32.mrb[3].mxu0  ;;  %v4244_v19 = vpop.f32.mrb[23].mxu1  ;;  %v1033_v54 = vadd.f32 %v6684_v6, %v1015_v36 }
 0x22c   :  { %v5777_v12 = vadd.f32 %v946_v0, %v6677_v32 }
 0x22d   :  { %v3764_v8 = vmul.f32 -1.442695, %v5776_v62 }
 0x22e   :  { %v3765_v30 = vmul.f32 -1.442695, %v5777_v12 }
 0x22f   :  { %5854 = vpow2.f32 %v3764_v8 }
 0x230   :  { %5856 = vpow2.f32 %v3765_v30 }
 0x239   :  { %v5855_v38 = vpop.eup %5854 }
 0x23a   :  { %v1023_v39 = vadd.f32 1.0, %v5855_v38  ;;  %v5857_v41 = vpop.eup %5856 }
 0x23b   :  { %v1030_v48 = vadd.f32 1.0, %v5857_v41 }
 0x23c   :  { %5858 = vrcp.f32 %v1023_v39 }
 0x23d   :  { %5860 = vrcp.f32 %v1030_v48 }
 0x246   :  { %v5859_v57 = vpop.eup %5858 }
 0x247   :  { %v1034_v63 = vmul.f32 %v5859_v57, %v1033_v54  ;;  %v5861_v19 = vpop.eup %5860 }
 0x248   :  { %v1037_v62 = vsub.f32 1.0, %v5861_v19  ;;  %v1039_v8 = vmul.f32 %v5861_v19, %v877_v15 }
 0x249   :  { %v1035_v20 = vadd.f32 %v1034_v63, %v6635_v33 }
 0x24b   :  { %5862 = vtanh.f32 %v1035_v20 }
 0x255   :  { %v5863_v25 = vpop.eup %5862 }
 0x256   :  { %v1038_v0 = vmul.f32 %v5863_v25, %v1037_v62 }
 0x258   :  { %v1040_v12 = vadd.f32 %v1039_v8, %v1038_v0 }
 0x25a   :  { %1106 = vmatmul.mubr.f32.vlgmr.msra.gmra.mrb[4].mxu0 %v1040_v12  ;;  %4278 = vmatmul.mubr.f32.vlgmr.msra.gmra.mrb[24].mxu1 %v1040_v12 }
 0x25b   :  { %5001 = vmatpush1.bf16.msra.mxu0 %v6418_v24  ;;  %5032 = vmatpush3.bf16.msra.mxu1 %v6250_v45 }
 0x25c   :  { %5003 = vmatprep.subr.bf16.mxu0 %v6427_v28  ;;  %5033 = vmatprep.subr.bf16.mxu1 %v6039_v47 }
 0x25d   :  { %1268 = vmatprep.mubr.f32.mxu0 %v6038_v3  ;;  %4312 = vmatprep.mubr.msk.f32.mxu1 %vm6040_vm1, %v6038_v3 }
 0x25f   :  { %5005 = vmatpush1.bf16.msra.mxu0 %v6454_v35  ;;  %5035 = vmatpush3.bf16.msra.mxu1 %v6272_v51 }
 0x260   :  { %5007 = vmatprep.subr.bf16.mxu0 %v6460_v37  ;;  %5036 = vmatprep.subr.bf16.mxu1 %v6039_v47 }
 0x263   :  { %5009 = vmatpush1.bf16.msra.mxu0 %v6482_v42  ;;  %5038 = vmatpush3.bf16.msra.mxu1 %v6294_v56 }
 0x264   :  { %5011 = vmatprep.subr.bf16.mxu0 %v6488_v43  ;;  %5039 = vmatprep.subr.bf16.mxu1 %v6039_v47 }
 0x267   :  { %5013 = vmatpush1.bf16.msra.mxu0 %v6511_v50  ;;  %5041 = vmatpush3.bf16.msra.mxu1 %v6317_v61 }
 0x268   :  { %5015 = vmatprep.subr.bf16.mxu0 %v6515_v52  ;;  %5042 = vmatprep.subr.bf16.mxu1 %v6039_v47 }
 0x26b   :  { %5017 = vmatpush1.bf16.msra.mxu0 %v6535_v58  ;;  %5044 = vmatpush3.bf16.msra.mxu1 %v6346_v5 }
 0x26c   :  { %5019 = vmatprep.subr.bf16.mxu0 %v6539_v59  ;;  %5045 = vmatprep.subr.bf16.mxu1 %v6039_v47 }
 0x26f   :  { %5021 = vmatpush1.bf16.msra.mxu0 %v6556_v1  ;;  %5047 = vmatpush3.bf16.msra.mxu1 %v6376_v13 }
 0x270   :  { %5023 = vmatprep.subr.bf16.mxu0 %v6560_v2  ;;  %5048 = vmatprep.subr.bf16.mxu1 %v6039_v47 }
 0x273   :  { %5025 = vmatpush1.bf16.msra.mxu0 %v6576_v9  ;;  %5050 = vmatpush3.bf16.msra.mxu1 %v6413_v23 }
 0x274   :  { %5027 = vmatprep.subr.bf16.mxu0 %v6580_v10  ;;  %5051 = vmatprep.subr.bf16.mxu1 %v6039_v47 }
 0x277   :  { %5029 = vmatpush1.bf16.msra.mxu0 %v6590_v14  ;;  %5053 = vmatpush3.bf16.msra.mxu1 %v6451_v34 }
 0x278   :  { %5055 = vmatprep.subr.bf16.mxu0 %v6388_v17  ;;  %5086 = vmatprep.subr.bf16.mxu1 %v6039_v47 }
 0x32d   :  { %v1107_v15 = vpop.f32.mrb[4].mxu0  ;;  %v1178_v33 = vpop.f32.mrb[24].mxu1 }
 0x32e   :  { %v5778_v25 = vadd.f32 %v1107_v15, %v6673_v27  ;;  %v1109_v36 = vpop.f32.mrb[5].mxu0  ;;  %v4279_v30 = vpop.f32.mrb[25].mxu1  ;;  %v1196_v20 = vadd.f32 %v6684_v6, %v1178_v33 }
 0x32f   :  { %v5779_v39 = vadd.f32 %v1109_v36, %v6677_v32 }
 0x330   :  { %v3766_v38 = vmul.f32 -1.442695, %v5778_v25 }
 0x331   :  { %v3767_v41 = vmul.f32 -1.442695, %v5779_v39 }
 0x332   :  { %5864 = vpow2.f32 %v3766_v38 }
 0x333   :  { %5866 = vpow2.f32 %v3767_v41 }
 0x33c   :  { %v5865_v48 = vpop.eup %5864 }
 0x33d   :  { %v1186_v54 = vadd.f32 1.0, %v5865_v48  ;;  %v5867_v57 = vpop.eup %5866 }
 0x33e   :  { %v1193_v63 = vadd.f32 1.0, %v5867_v57 }
 0x33f   :  { %5868 = vrcp.f32 %v1186_v54 }
 0x340   :  { %5870 = vrcp.f32 %v1193_v63 }
 0x349   :  { %v5869_v19 = vpop.eup %5868 }
 0x34a   :  { %v1197_v62 = vmul.f32 %v5869_v19, %v1196_v20  ;;  %v5871_v8 = vpop.eup %5870 }
 0x34b   :  { %v1200_v15 = vsub.f32 1.0, %v5871_v8  ;;  %v1202_v30 = vmul.f32 %v5871_v8, %v1040_v12 }
 0x34c   :  { %v1198_v0 = vadd.f32 %v1197_v62, %v6644_v46 }
 0x34e   :  { %5872 = vtanh.f32 %v1198_v0 }
 0x358   :  { %v5873_v25 = vpop.eup %5872 }
 0x359   :  { %v1201_v36 = vmul.f32 %v5873_v25, %v1200_v15 }
 0x35b   :  { %v1203_v38 = vadd.f32 %v1202_v30, %v1201_v36 }
 0x35d   :  { %1269 = vmatmul.mubr.f32.vlgmr.msra.gmra.mrb[6].mxu0 %v1203_v38  ;;  %4313 = vmatmul.mubr.f32.vlgmr.msra.gmra.mrb[26].mxu1 %v1203_v38 }
 0x35e   :  { %5057 = vmatpush1.bf16.msra.mxu0 %v6418_v24  ;;  %5088 = vmatpush3.bf16.msra.mxu1 %v6250_v45 }
 0x35f   :  { %5059 = vmatprep.subr.bf16.mxu0 %v6427_v28  ;;  %5089 = vmatprep.subr.bf16.mxu1 %v6039_v47 }
 0x360   :  { %1431 = vmatprep.mubr.f32.mxu0 %v6038_v3  ;;  %4347 = vmatprep.mubr.msk.f32.mxu1 %vm6040_vm1, %v6038_v3 }
 0x362   :  { %5061 = vmatpush1.bf16.msra.mxu0 %v6454_v35  ;;  %5091 = vmatpush3.bf16.msra.mxu1 %v6272_v51 }
 0x363   :  { %5063 = vmatprep.subr.bf16.mxu0 %v6460_v37  ;;  %5092 = vmatprep.subr.bf16.mxu1 %v6039_v47 }
 0x366   :  { %5065 = vmatpush1.bf16.msra.mxu0 %v6482_v42  ;;  %5094 = vmatpush3.bf16.msra.mxu1 %v6294_v56 }
 0x367   :  { %5067 = vmatprep.subr.bf16.mxu0 %v6488_v43  ;;  %5095 = vmatprep.subr.bf16.mxu1 %v6039_v47 }
 0x36a   :  { %5069 = vmatpush1.bf16.msra.mxu0 %v6511_v50  ;;  %5097 = vmatpush3.bf16.msra.mxu1 %v6317_v61 }
 0x36b   :  { %5071 = vmatprep.subr.bf16.mxu0 %v6515_v52  ;;  %5098 = vmatprep.subr.bf16.mxu1 %v6039_v47 }
 0x36e   :  { %5073 = vmatpush1.bf16.msra.mxu0 %v6535_v58  ;;  %5100 = vmatpush3.bf16.msra.mxu1 %v6346_v5 }
 0x36f   :  { %5075 = vmatprep.subr.bf16.mxu0 %v6539_v59  ;;  %5101 = vmatprep.subr.bf16.mxu1 %v6039_v47 }
 0x372   :  { %5077 = vmatpush1.bf16.msra.mxu0 %v6556_v1  ;;  %5103 = vmatpush3.bf16.msra.mxu1 %v6376_v13 }
 0x373   :  { %5079 = vmatprep.subr.bf16.mxu0 %v6560_v2  ;;  %5104 = vmatprep.subr.bf16.mxu1 %v6039_v47 }
 0x376   :  { %5081 = vmatpush1.bf16.msra.mxu0 %v6576_v9  ;;  %5106 = vmatpush3.bf16.msra.mxu1 %v6413_v23 }
 0x377   :  { %5083 = vmatprep.subr.bf16.mxu0 %v6580_v10  ;;  %5107 = vmatprep.subr.bf16.mxu1 %v6039_v47 }
 0x37a   :  { %5085 = vmatpush1.bf16.msra.mxu0 %v6590_v14  ;;  %5109 = vmatpush3.bf16.msra.mxu1 %v6451_v34 }
 0x37b   :  { %5111 = vmatprep.subr.bf16.mxu0 %v6388_v17  ;;  %5142 = vmatprep.subr.bf16.mxu1 %v6039_v47 }
 0x430   :  { %v1270_v46 = vpop.f32.mrb[6].mxu0  ;;  %v1341_v12 = vpop.f32.mrb[26].mxu1 }
 0x431   :  { %v5780_v33 = vadd.f32 %v1270_v46, %v6673_v27  ;;  %v1272_v39 = vpop.f32.mrb[7].mxu0  ;;  %v4314_v41 = vpop.f32.mrb[27].mxu1  ;;  %v1359_v0 = vadd.f32 %v6684_v6, %v1341_v12 }
 0x432   :  { %v5781_v54 = vadd.f32 %v1272_v39, %v6677_v32 }
 0x433   :  { %v3768_v48 = vmul.f32 -1.442695, %v5780_v33 }
 0x434   :  { %v3769_v57 = vmul.f32 -1.442695, %v5781_v54 }
 0x435   :  { %5874 = vpow2.f32 %v3768_v48 }
 0x436   :  { %5876 = vpow2.f32 %v3769_v57 }
 0x43f   :  { %v5875_v63 = vpop.eup %5874 }
 0x440   :  { %v1349_v20 = vadd.f32 1.0, %v5875_v63  ;;  %v5877_v19 = vpop.eup %5876 }
 0x441   :  { %v1356_v62 = vadd.f32 1.0, %v5877_v19 }
 0x442   :  { %5878 = vrcp.f32 %v1349_v20 }
 0x443   :  { %5880 = vrcp.f32 %v1356_v62 }
 0x44c   :  { %v5879_v8 = vpop.eup %5878 }
 0x44d   :  { %v1360_v15 = vmul.f32 %v5879_v8, %v1359_v0  ;;  %v5881_v36 = vpop.eup %5880 }
 0x44e   :  { %v1363_v30 = vsub.f32 1.0, %v5881_v36  ;;  %v1365_v39 = vmul.f32 %v5881_v36, %v1203_v38 }
 0x44f   :  { %v1361_v25 = vadd.f32 %v1360_v15, %v6640_v40 }
 0x451   :  { %5882 = vtanh.f32 %v1361_v25 }
 0x45b   :  { %v5883_v46 = vpop.eup %5882 }
 0x45c   :  { %v1364_v33 = vmul.f32 %v5883_v46, %v1363_v30 }
 0x45e   :  { %v1366_v41 = vadd.f32 %v1365_v39, %v1364_v33 }
 0x460   :  { %1432 = vmatmul.mubr.f32.vlgmr.msra.gmra.mrb[8].mxu0 %v1366_v41  ;;  %4348 = vmatmul.mubr.f32.vlgmr.msra.gmra.mrb[28].mxu1 %v1366_v41 }
 0x461   :  { %5113 = vmatpush1.bf16.msra.mxu0 %v6418_v24  ;;  %5144 = vmatpush3.bf16.msra.mxu1 %v6250_v45 }
 0x462   :  { %5115 = vmatprep.subr.bf16.mxu0 %v6427_v28  ;;  %5145 = vmatprep.subr.bf16.mxu1 %v6039_v47 }
 0x463   :  { %1594 = vmatprep.mubr.f32.mxu0 %v6038_v3  ;;  %4382 = vmatprep.mubr.msk.f32.mxu1 %vm6040_vm1, %v6038_v3 }
 0x465   :  { %5117 = vmatpush1.bf16.msra.mxu0 %v6454_v35  ;;  %5147 = vmatpush3.bf16.msra.mxu1 %v6272_v51 }
 0x466   :  { %5119 = vmatprep.subr.bf16.mxu0 %v6460_v37  ;;  %5148 = vmatprep.subr.bf16.mxu1 %v6039_v47 }
 0x469   :  { %5121 = vmatpush1.bf16.msra.mxu0 %v6482_v42  ;;  %5150 = vmatpush3.bf16.msra.mxu1 %v6294_v56 }
 0x46a   :  { %5123 = vmatprep.subr.bf16.mxu0 %v6488_v43  ;;  %5151 = vmatprep.subr.bf16.mxu1 %v6039_v47 }
 0x46d   :  { %5125 = vmatpush1.bf16.msra.mxu0 %v6511_v50  ;;  %5153 = vmatpush3.bf16.msra.mxu1 %v6317_v61 }
 0x46e   :  { %5127 = vmatprep.subr.bf16.mxu0 %v6515_v52  ;;  %5154 = vmatprep.subr.bf16.mxu1 %v6039_v47 }
 0x471   :  { %5129 = vmatpush1.bf16.msra.mxu0 %v6535_v58  ;;  %5156 = vmatpush3.bf16.msra.mxu1 %v6346_v5 }
 0x472   :  { %5131 = vmatprep.subr.bf16.mxu0 %v6539_v59  ;;  %5157 = vmatprep.subr.bf16.mxu1 %v6039_v47 }
 0x475   :  { %5133 = vmatpush1.bf16.msra.mxu0 %v6556_v1  ;;  %5159 = vmatpush3.bf16.msra.mxu1 %v6376_v13 }
 0x476   :  { %5135 = vmatprep.subr.bf16.mxu0 %v6560_v2  ;;  %5160 = vmatprep.subr.bf16.mxu1 %v6039_v47 }
 0x479   :  { %5137 = vmatpush1.bf16.msra.mxu0 %v6576_v9  ;;  %5162 = vmatpush3.bf16.msra.mxu1 %v6413_v23 }
 0x47a   :  { %5139 = vmatprep.subr.bf16.mxu0 %v6580_v10  ;;  %5163 = vmatprep.subr.bf16.mxu1 %v6039_v47 }
 0x47d   :  { %5141 = vmatpush1.bf16.msra.mxu0 %v6590_v14  ;;  %5165 = vmatpush3.bf16.msra.mxu1 %v6451_v34 }
 0x47e   :  { %5167 = vmatprep.subr.bf16.mxu0 %v6388_v17  ;;  %5198 = vmatprep.subr.bf16.mxu1 %v6039_v47 }
 0x533   :  { %v1433_v40 = vpop.f32.mrb[8].mxu0  ;;  %v1504_v38 = vpop.f32.mrb[28].mxu1 }
 0x534   :  { %v5782_v12 = vadd.f32 %v1433_v40, %v6673_v27  ;;  %v1435_v48 = vpop.f32.mrb[9].mxu0  ;;  %v4349_v54 = vpop.f32.mrb[29].mxu1  ;;  %v1522_v15 = vadd.f32 %v6684_v6, %v1504_v38 }
 0x535   :  { %v5783_v63 = vadd.f32 %v1435_v48, %v6677_v32 }
 0x536   :  { %v3770_v57 = vmul.f32 -1.442695, %v5782_v12 }
 0x537   :  { %v3771_v20 = vmul.f32 -1.442695, %v5783_v63 }
 0x538   :  { %5884 = vpow2.f32 %v3770_v57 }
 0x539   :  { %5886 = vpow2.f32 %v3771_v20 }
 0x542   :  { %v5885_v19 = vpop.eup %5884 }
 0x543   :  { %v1512_v62 = vadd.f32 1.0, %v5885_v19  ;;  %v5887_v0 = vpop.eup %5886 }
 0x544   :  { %v1519_v8 = vadd.f32 1.0, %v5887_v0 }
 0x545   :  { %5888 = vrcp.f32 %v1512_v62 }
 0x546   :  { %5890 = vrcp.f32 %v1519_v8 }
 0x54f   :  { %v5889_v25 = vpop.eup %5888 }
 0x550   :  { %v1523_v36 = vmul.f32 %v5889_v25, %v1522_v15  ;;  %v5891_v46 = vpop.eup %5890 }
 0x551   :  { %v1526_v33 = vsub.f32 1.0, %v5891_v46  ;;  %v1528_v12 = vmul.f32 %v5891_v46, %v1366_v41 }
 0x552   :  { %v1524_v30 = vadd.f32 %v1523_v36, %v6629_v26 }
 0x554   :  { %5892 = vtanh.f32 %v1524_v30 }
 0x55e   :  { %v5893_v39 = vpop.eup %5892 }
 0x55f   :  { %v1527_v40 = vmul.f32 %v5893_v39, %v1526_v33 }
 0x561   :  { %v1529_v48 = vadd.f32 %v1528_v12, %v1527_v40 }
 0x563   :  { %1595 = vmatmul.mubr.f32.vlgmr.msra.gmra.mrb[10].mxu0 %v1529_v48  ;;  %4383 = vmatmul.mubr.f32.vlgmr.msra.gmra.mrb[30].mxu1 %v1529_v48 }
 0x564   :  { %5169 = vmatpush1.bf16.msra.mxu0 %v6418_v24  ;;  %5200 = vmatpush3.bf16.msra.mxu1 %v6250_v45 }
 0x565   :  { %5171 = vmatprep.subr.bf16.mxu0 %v6427_v28  ;;  %5201 = vmatprep.subr.bf16.mxu1 %v6039_v47 }
 0x566   :  { %1757 = vmatprep.mubr.f32.mxu0 %v6038_v3  ;;  %4417 = vmatprep.mubr.msk.f32.mxu1 %vm6040_vm1, %v6038_v3 }
 0x568   :  { %5173 = vmatpush1.bf16.msra.mxu0 %v6454_v35  ;;  %5203 = vmatpush3.bf16.msra.mxu1 %v6272_v51 }
 0x569   :  { %5175 = vmatprep.subr.bf16.mxu0 %v6460_v37  ;;  %5204 = vmatprep.subr.bf16.mxu1 %v6039_v47 }
 0x56c   :  { %5177 = vmatpush1.bf16.msra.mxu0 %v6482_v42  ;;  %5206 = vmatpush3.bf16.msra.mxu1 %v6294_v56 }
 0x56d   :  { %5179 = vmatprep.subr.bf16.mxu0 %v6488_v43  ;;  %5207 = vmatprep.subr.bf16.mxu1 %v6039_v47 }
 0x570   :  { %5181 = vmatpush1.bf16.msra.mxu0 %v6511_v50  ;;  %5209 = vmatpush3.bf16.msra.mxu1 %v6317_v61 }
 0x571   :  { %5183 = vmatprep.subr.bf16.mxu0 %v6515_v52  ;;  %5210 = vmatprep.subr.bf16.mxu1 %v6039_v47 }
 0x574   :  { %5185 = vmatpush1.bf16.msra.mxu0 %v6535_v58  ;;  %5212 = vmatpush3.bf16.msra.mxu1 %v6346_v5 }
 0x575   :  { %5187 = vmatprep.subr.bf16.mxu0 %v6539_v59  ;;  %5213 = vmatprep.subr.bf16.mxu1 %v6039_v47 }
 0x578   :  { %5189 = vmatpush1.bf16.msra.mxu0 %v6556_v1  ;;  %5215 = vmatpush3.bf16.msra.mxu1 %v6376_v13 }
 0x579   :  { %5191 = vmatprep.subr.bf16.mxu0 %v6560_v2  ;;  %5216 = vmatprep.subr.bf16.mxu1 %v6039_v47 }
 0x57c   :  { %5193 = vmatpush1.bf16.msra.mxu0 %v6576_v9  ;;  %5218 = vmatpush3.bf16.msra.mxu1 %v6413_v23 }
 0x57d   :  { %5195 = vmatprep.subr.bf16.mxu0 %v6580_v10  ;;  %5219 = vmatprep.subr.bf16.mxu1 %v6039_v47 }
 0x580   :  { %5197 = vmatpush1.bf16.msra.mxu0 %v6590_v14  ;;  %5221 = vmatpush3.bf16.msra.mxu1 %v6451_v34 }
 0x581   :  { %5223 = vmatprep.subr.bf16.mxu0 %v6388_v17  ;;  %5254 = vmatprep.subr.bf16.mxu1 %v6039_v47 }
 0x636   :  { %v1596_v26 = vpop.f32.mrb[10].mxu0  ;;  %v1667_v41 = vpop.f32.mrb[30].mxu1 }
 0x637   :  { %v5784_v38 = vadd.f32 %v1596_v26, %v6673_v27  ;;  %v1598_v54 = vpop.f32.mrb[11].mxu0  ;;  %v4384_v57 = vpop.f32.mrb[31].mxu1  ;;  %v1685_v17 = vadd.f32 %v6684_v6, %v1667_v41  ;;  %v661_v41 = vld [vmem:[%s7701_s7 + $0x10] sm:$0xff] }
 0x638   :  { %v5785_v20 = vadd.f32 %v1598_v54, %v6677_v32  ;;  %v664_v54 = vld [vmem:[%s7701_s7 + $0x28] sm:$0xff] }
 0x639   :  { %v3772_v63 = vmul.f32 -1.442695, %v5784_v38  ;;  %v6950_v57 = vpack.c.bf16 %v664_v54, %v661_v41  ;;  %v694_v41 = vld [vmem:[%s7701_s7 + $0x118] sm:$0xff] }
 0x63a   :  { %v3773_v19 = vmul.f32 -1.442695, %v5785_v20  ;;  %v669_v20 = vld [vmem:[%s7701_s7 + $0x50] sm:$0xff] }
 0x63b   :  { %5894 = vpow2.f32 %v3772_v63  ;;  %v666_v63 = vld [vmem:[%s7701_s7 + $0x38] sm:$0xff] }
 0x63c   :  { %5896 = vpow2.f32 %v3773_v19  ;;  %v6960_v19 = vpack.c.bf16 %v669_v20, %v666_v63  ;;  %v696_v20 = vld [vmem:[%s7701_s7 + $0x128] sm:$0xff] }
 0x645   :  { %v5895_v62 = vpop.eup %5894 }
 0x646   :  { %v1675_v0 = vadd.f32 1.0, %v5895_v62  ;;  %v5897_v8 = vpop.eup %5896  ;;  %v665_v62 = vld [vmem:[%s7701_s7 + $0x30] sm:$0xff] }
 0x647   :  { %v1682_v15 = vadd.f32 1.0, %v5897_v8  ;;  %v667_v8 = vld [vmem:[%s7701_s7 + $0x40] sm:$0xff] }
 0x648   :  { %5898 = vrcp.f32 %v1675_v0  ;;  %v668_v0 = vld [vmem:[%s7701_s7 + $0x48] sm:$0xff] }
 0x649   :  { %5900 = vrcp.f32 %v1682_v15  ;;  %v6972_v15 = vpack.c.bf16 %v668_v0, %v665_v62  ;;  %v699_v62 = vld [vmem:[%s7701_s7 + $0x140] sm:$0xff] }
 0x64a   :  { %v695_v0 = vld [vmem:[%s7701_s7 + $0x120] sm:$0xff] }
 0x652   :  { %v5899_v25 = vpop.eup %5898 }
 0x653   :  { %v1686_v36 = vmul.f32 %v5899_v25, %v1685_v17  ;;  %v5901_v46 = vpop.eup %5900  ;;  %v670_v17 = vld [vmem:[%s7701_s7 + $0x58] sm:$0xff] }
 0x654   :  { %v1689_v33 = vsub.f32 1.0, %v5901_v46  ;;  %v1691_v12 = vmul.f32 %v5901_v46, %v1529_v48  ;;  %v662_v48 = vld [vmem:[%s7701_s7 + $0x18] sm:$0xff]  ;;  %v6978_v25 = vpack.c.bf16 %v670_v17, %v667_v8  ;;  %v7101_v8 = vpack.c.bf16 %v699_v62, %v696_v20  ;;  %v6036_v62 = vld [vmem:[%s7700_s5] ss:$0 sm:$0xff] }
 0x655   :  { %v1687_v30 = vadd.f32 %v1686_v36, %v6627_v22  ;;  %v663_v22 = vld [vmem:[%s7701_s7 + $0x20] sm:$0xff]  ;;  %v672_v36 = vld [vmem:[%s7701_s7 + $0x68] sm:$0xff]  ;;  %v698_v17 = vld [vmem:[%s7701_s7 + $0x138] sm:$0xff] }
 0x657   :  { %5902 = vtanh.f32 %v1687_v30  ;;  %v675_v30 = vld [vmem:[%s7701_s7 + $0x80] sm:$0xff] }
 0x658   :  { %v6988_v46 = vpack.c.bf16 %v675_v30, %v672_v36  ;;  %v697_v36 = vld [vmem:[%s7701_s7 + $0x130] sm:$0xff]  ;;  %v700_v30 = vld [vmem:[%s7701_s7 + $0x148] sm:$0xff] }
 0x661   :  { %v5903_v39 = vpop.eup %5902 }
 0x662   :  { %v1690_v40 = vmul.f32 %v5903_v39, %v1689_v33  ;;  %v671_v33 = vld [vmem:[%s7701_s7 + $0x60] sm:$0xff]  ;;  %v674_v39 = vld [vmem:[%s7701_s7 + $0x78] sm:$0xff] }
 0x664   :  { %v1692_v26 = vadd.f32 %v1691_v12, %v1690_v40  ;;  %v673_v40 = vld [vmem:[%s7701_s7 + $0x70] sm:$0xff]  ;;  %v7000_v12 = vpack.c.bf16 %v674_v39, %v671_v33  ;;  %v7113_v33 = vpack.c.bf16 %v698_v17, %v695_v0  ;;  %v702_v39 = vld [vmem:[%s7701_s7 + $0x158] sm:$0xff] }
 0x666   :  { %1758 = vmatmul.mubr.f32.vlgmr.msra.gmra.mrb[12].mxu0 %v1692_v26  ;;  %4418 = vmatmul.mubr.f32.vlgmr.msra.gmra.mrb[32].mxu1 %v1692_v26 }
 0x667   :  { %5225 = vmatpush1.bf16.msra.mxu0 %v6418_v24  ;;  %5256 = vmatpush3.bf16.msra.mxu1 %v6250_v45 }
 0x668   :  { %5227 = vmatprep.subr.bf16.mxu0 %v6427_v28  ;;  %5257 = vmatprep.subr.bf16.mxu1 %v6039_v47 }
 0x669   :  { %1920 = vmatprep.mubr.f32.mxu0 %v6038_v3  ;;  %4452 = vmatprep.mubr.msk.f32.mxu1 %vm6040_vm1, %v6038_v3 }
 0x66b   :  { %5229 = vmatpush1.bf16.msra.mxu0 %v6454_v35  ;;  %5259 = vmatpush3.bf16.msra.mxu1 %v6272_v51 }
 0x66c   :  { %5231 = vmatprep.subr.bf16.mxu0 %v6460_v37  ;;  %5260 = vmatprep.subr.bf16.mxu1 %v6039_v47 }
 0x66f   :  { %5233 = vmatpush1.bf16.msra.mxu0 %v6482_v42  ;;  %5262 = vmatpush3.bf16.msra.mxu1 %v6294_v56 }
 0x670   :  { %5235 = vmatprep.subr.bf16.mxu0 %v6488_v43  ;;  %5263 = vmatprep.subr.bf16.mxu1 %v6039_v47 }
 0x673   :  { %5237 = vmatpush1.bf16.msra.mxu0 %v6511_v50  ;;  %5265 = vmatpush3.bf16.msra.mxu1 %v6317_v61 }
 0x674   :  { %5239 = vmatprep.subr.bf16.mxu0 %v6515_v52  ;;  %5266 = vmatprep.subr.bf16.mxu1 %v6039_v47 }
 0x677   :  { %5241 = vmatpush1.bf16.msra.mxu0 %v6535_v58  ;;  %5268 = vmatpush3.bf16.msra.mxu1 %v6346_v5 }
 0x678   :  { %5243 = vmatprep.subr.bf16.mxu0 %v6539_v59  ;;  %5269 = vmatprep.subr.bf16.mxu1 %v6039_v47 }
 0x67b   :  { %5245 = vmatpush1.bf16.msra.mxu0 %v6556_v1  ;;  %5271 = vmatpush3.bf16.msra.mxu1 %v6376_v13 }
 0x67c   :  { %5247 = vmatprep.subr.bf16.mxu0 %v6560_v2  ;;  %5272 = vmatprep.subr.bf16.mxu1 %v6039_v47 }
 0x67f   :  { %5249 = vmatpush1.bf16.msra.mxu0 %v6576_v9  ;;  %5274 = vmatpush3.bf16.msra.mxu1 %v6413_v23 }
 0x680   :  { %5251 = vmatprep.subr.bf16.mxu0 %v6580_v10  ;;  %5275 = vmatprep.subr.bf16.mxu1 %v6039_v47 }
 0x683   :  { %5253 = vmatpush1.bf16.msra.mxu0 %v6590_v14  ;;  %5277 = vmatpush3.bf16.msra.mxu1 %v6451_v34  ;;  %v660_v14 = vld [vmem:[%s7701_s7 + $0x8] sm:$0xff] }
 0x684   :  { %5310 = vmatprep.subr.bf16.mxu0 %v6039_v47 }
 0x739   :  { %v1759_v45 = vpop.f32.mrb[12].mxu0  ;;  %v1830_v51 = vpop.f32.mrb[32].mxu1 }
 0x73a   :  { %v5786_v56 = vadd.f32 %v1759_v45, %v6673_v27  ;;  %v1761_v61 = vpop.f32.mrb[13].mxu0  ;;  %v4419_v5 = vpop.f32.mrb[33].mxu1  ;;  %v1848_v34 = vadd.f32 %v6684_v6, %v1830_v51  ;;  %v659_v6 = vld [vmem:[%s7701_s7] sm:$0xff]  ;;  %v678_v51 = vld [vmem:[%s7701_s7 + $0x98] sm:$0xff] }
 0x73b   :  { %v5787_v24 = vadd.f32 %v1761_v61, %v6677_v32  ;;  %v6944_v38 = vpack.c.bf16 %v662_v48, %v659_v6  ;;  %v677_v5 = vld [vmem:[%s7701_s7 + $0x90] sm:$0xff]  ;;  %v692_v6 = vld [vmem:[%s7701_s7 + $0x108] sm:$0xff]  ;;  %v691_v48 = vld [vmem:[%s7701_s7 + $0x100] sm:$0xff] }
 0x73c   :  { %v3774_v13 = vmul.f32 -1.442695, %v5786_v56  ;;  %v681_v56 = vld [vmem:[%s7701_s7 + $0xb0] sm:$0xff]  ;;  %v7089_v63 = vpack.c.bf16 %v694_v41, %v691_v48 }
 0x73d   :  { %v3775_v23 = vmul.f32 -1.442695, %v5787_v24  ;;  %v7016_v61 = vpack.c.bf16 %v681_v56, %v678_v51  ;;  %v679_v24 = vld [vmem:[%s7701_s7 + $0xa0] sm:$0xff]  ;;  %v701_v56 = vld [vmem:[%s7701_s7 + $0x150] sm:$0xff] }
 0x73e   :  { %5904 = vpow2.f32 %v3774_v13  ;;  %v680_v13 = vld [vmem:[%s7701_s7 + $0xa8] sm:$0xff] }
 0x73f   :  { %5906 = vpow2.f32 %v3775_v23  ;;  %v7028_v23 = vpack.c.bf16 %v680_v13, %v677_v5  ;;  %v704_v5 = vld [vmem:[%s7701_s7 + $0x168] sm:$0xff]  ;;  %v703_v13 = vld [vmem:[%s7701_s7 + $0x160] sm:$0xff] }
 0x748   :  { %v5905_v28 = vpop.eup %5904 }
 0x749   :  { %v1838_v35 = vadd.f32 1.0, %v5905_v28  ;;  %v5907_v37 = vpop.eup %5906  ;;  %v682_v28 = vld [vmem:[%s7701_s7 + $0xb8] sm:$0xff] }
 0x74a   :  { %v1845_v42 = vadd.f32 1.0, %v5907_v37  ;;  %v684_v37 = vld [vmem:[%s7701_s7 + $0xc8] sm:$0xff] }
 0x74b   :  { %5908 = vrcp.f32 %v1838_v35  ;;  %v7034_v35 = vpack.c.bf16 %v682_v28, %v679_v24  ;;  %v706_v24 = vld [vmem:[%s7701_s7 + $0x178] sm:$0xff]  ;;  %v7141_v28 = vpack.c.bf16 %v704_v5, %v701_v56 }
 0x74c   :  { %5910 = vrcp.f32 %v1845_v42  ;;  %v687_v42 = vld [vmem:[%s7701_s7 + $0xe0] sm:$0xff] }
 0x755   :  { %v5909_v43 = vpop.eup %5908 }
 0x756   :  { %v1849_v50 = vmul.f32 %v5909_v43, %v1848_v34  ;;  %v5911_v58 = vpop.eup %5910  ;;  %v7044_v34 = vpack.c.bf16 %v687_v42, %v684_v37  ;;  %v683_v43 = vld [vmem:[%s7701_s7 + $0xc0] sm:$0xff]  ;;  %v7145_v37 = vpack.c.bf16 %v706_v24, %v703_v13 }
 0x757   :  { %v1852_v59 = vsub.f32 1.0, %v5911_v58  ;;  %v1854_v9 = vmul.f32 %v5911_v58, %v1692_v26  ;;  %v676_v26 = vld [vmem:[%s7701_s7 + $0x88] sm:$0xff] }
 0x758   :  { %v1850_v52 = vadd.f32 %v1849_v50, %v6633_v31  ;;  %v6933_v31 = vpack.c.bf16 %v663_v22, %v660_v14  ;;  %v7006_v45 = vpack.c.bf16 %v676_v26, %v673_v40  ;;  %v686_v50 = vld [vmem:[%s7701_s7 + $0xd8] sm:$0xff]  ;;  %v689_v14 = vld [vmem:[%s7701_s7 + $0xf0] sm:$0xff]  ;;  %v7123_v26 = vpack.c.bf16 %v700_v30, %v697_v36 }
 0x759   :  { %v7056_v58 = vpack.c.bf16 %v686_v50, %v683_v43  ;;  %v7087_v54 = vpack.c.bf16 %v692_v6, %v689_v14  ;;  %v705_v40 = vld [vmem:[%s7701_s7 + $0x170] sm:$0xff] }
 0x75a   :  { %5912 = vtanh.f32 %v1850_v52  ;;  %5279 = vmatprep.subr.bf16.mxu1 %v6933_v31  ;;  %v685_v52 = vld [vmem:[%s7701_s7 + $0xd0] sm:$0xff]  ;;  %v7125_v51 = vpack.c.bf16 %v705_v40, %v702_v39 }
 0x764   :  { %v5913_v1 = vpop.eup %5912 }
 0x765   :  { %v1853_v2 = vmul.f32 %v5913_v1, %v1852_v59  ;;  %v688_v59 = vld [vmem:[%s7701_s7 + $0xe8] sm:$0xff] }
 0x766   :  { %v7062_v1 = vpack.c.bf16 %v688_v59, %v685_v52 }
 0x767   :  { %v6920_v10 = vadd.f32 %v1854_v9, %v1853_v2  ;;  %v690_v2 = vld [vmem:[%s7701_s7 + $0xf8] sm:$0xff]  ;;  %v693_v9 = vld [vmem:[%s7701_s7 + $0x110] sm:$0xff] }
 0x768   :  { %v7075_v22 = vpack.c.bf16 %v693_v9, %v690_v2 }
 0x769   :  { %1921 = vmatmul.mubr.f32.vlgmr.msra.gmra.mrb[14].mxu0 %v6920_v10  ;;  %4453 = vmatmul.mubr.f32.vlgmr.msra.gmra.mrb[34].mxu1 %v6920_v10 }
 0x76a   :  { %2083 = vmatprep.mubr.f32.mxu1 %v6038_v3  ;;  %4487 = vmatprep.mubr.msk.f32.mxu0 %vm6040_vm1, %v6038_v3 }
 0x76b   :  { %5281 = vmatpush1.bf16.msra.mxu1 %v6944_v38  ;;  %5312 = vmatpush3.bf16.msra.mxu0 %v6950_v57 }
 0x76c   :  { %5313 = vmatprep.subr.bf16.mxu0 %v6039_v47  ;;  %5283 = vmatprep.subr.bf16.mxu1 %v6960_v19 }
 0x76f   :  { %5285 = vmatpush1.bf16.msra.mxu1 %v6972_v15  ;;  %5315 = vmatpush3.bf16.msra.mxu0 %v6978_v25 }
 0x770   :  { %5316 = vmatprep.subr.bf16.mxu0 %v6039_v47  ;;  %5287 = vmatprep.subr.bf16.mxu1 %v6988_v46 }
 0x773   :  { %5289 = vmatpush1.bf16.msra.mxu1 %v7000_v12  ;;  %5318 = vmatpush3.bf16.msra.mxu0 %v7006_v45 }
 0x774   :  { %5319 = vmatprep.subr.bf16.mxu0 %v6039_v47  ;;  %5291 = vmatprep.subr.bf16.mxu1 %v7016_v61 }
 0x777   :  { %5293 = vmatpush1.bf16.msra.mxu1 %v7028_v23  ;;  %5321 = vmatpush3.bf16.msra.mxu0 %v7034_v35 }
 0x778   :  { %5322 = vmatprep.subr.bf16.mxu0 %v6039_v47  ;;  %5295 = vmatprep.subr.bf16.mxu1 %v7044_v34 }
 0x77b   :  { %5297 = vmatpush1.bf16.msra.mxu1 %v7056_v58  ;;  %5324 = vmatpush3.bf16.msra.mxu0 %v7062_v1 }
 0x77c   :  { %5325 = vmatprep.subr.bf16.mxu0 %v6039_v47  ;;  %5299 = vmatprep.subr.bf16.mxu1 %v7075_v22 }
 0x77f   :  { %5301 = vmatpush1.bf16.msra.mxu1 %v7087_v54  ;;  %5327 = vmatpush3.bf16.msra.mxu0 %v7089_v63 }
 0x780   :  { %5303 = vmatprep.subr.bf16.mxu1 %v7101_v8  ;;  %5328 = vmatprep.subr.bf16.mxu0 %v6039_v47 }
 0x783   :  { %5305 = vmatpush1.bf16.msra.mxu1 %v7113_v33  ;;  %5330 = vmatpush3.bf16.msra.mxu0 %v7123_v26 }
 0x784   :  { %5307 = vmatprep.subr.bf16.mxu1 %v7125_v51  ;;  %5331 = vmatprep.subr.bf16.mxu0 %v6039_v47 }
 0x787   :  { %5309 = vmatpush1.bf16.msra.mxu1 %v7141_v28  ;;  %5333 = vmatpush3.bf16.msra.mxu0 %v7145_v37 }
 0x788   :  { %5335 = vmatprep.subr.bf16.mxu1 %v6933_v31  ;;  %5366 = vmatprep.subr.bf16.mxu0 %v6039_v47 }
 0x83c   :  { %v1922_v42 = vpop.f32.mrb[14].mxu0  ;;  %v1993_v43 = vpop.f32.mrb[34].mxu1 }
 0x83d   :  { %v5788_v50 = vadd.f32 %v1922_v42, %v6673_v27  ;;  %v1924_v52 = vpop.f32.mrb[15].mxu0  ;;  %v4454_v59 = vpop.f32.mrb[35].mxu1  ;;  %v2011_v0 = vadd.f32 %v6036_v62, %v1993_v43  ;;  %v7709_v42 = vsub.s32 1, %v6621_v16 }
 0x83e   :  { %v5789_v9 = vadd.f32 %v1924_v52, %v6677_v32 }
 0x83f   :  { %v3776_v2 = vmul.f32 -1.442695, %v5788_v50 }
 0x840   :  { %v3777_v14 = vmul.f32 -1.442695, %v5789_v9 }
 0x841   :  { %5914 = vpow2.f32 %v3776_v2 }
 0x842   :  { %5916 = vpow2.f32 %v3777_v14 }
 0x84b   :  { %v5915_v6 = vpop.eup %5914 }
 0x84c   :  { %v2001_v48 = vadd.f32 1.0, %v5915_v6  ;;  %v5917_v41 = vpop.eup %5916 }
 0x84d   :  { %v2008_v20 = vadd.f32 1.0, %v5917_v41  ;;  %v7214_v41 = vld [vmem:[%s7702_s9] ss:$0 sm:$0xff] }
 0x84e   :  { %5918 = vrcp.f32 %v2001_v48 }
 0x84f   :  { %5920 = vrcp.f32 %v2008_v20 }
 0x858   :  { %v5919_v17 = vpop.eup %5918 }
 0x859   :  { %v2012_v27 = vmul.f32 %v5919_v17, %v2011_v0  ;;  %v5921_v32 = vpop.eup %5920  ;;  %v573_v17 = vadd.f32 %v6649_v53, %v6642_v44 }
 0x85a   :  { %v2015_v30 = vsub.f32 1.0, %v5921_v32  ;;  %v2017_v56 = vmul.f32 %v5921_v32, %v6920_v10 }
 0x85b   :  { %v2013_v36 = vadd.f32 %v2012_v27, %v6631_v29  ;;  %v6037_v29 = vld [vmem:[%s7699_s8] sm:$0x7] }
 0x85c   :  { %v7203_v10 = vrot.slane %v6037_v29, %v68_v21  ;;  %v7207_v43 = vrot.slane %v6037_v29, %v7709_v42 }
 0x85d   :  { %5922 = vtanh.f32 %v2013_v36 }
 0x867   :  { %v5923_v39 = vpop.eup %5922 }
 0x868   :  { %v2016_v40 = vmul.f32 %v5923_v39, %v2015_v30 }
 0x86a   :  { %v7159_v5 = vadd.f32 %v2017_v56, %v2016_v40 }
 0x86c   :  { %2084 = vmatmul.mubr.f32.vlgmr.msra.gmra.mrb[4].mxu1 %v7159_v5  ;;  %4488 = vmatmul.mubr.f32.vlgmr.msra.gmra.mrb[28].mxu0 %v7159_v5 }
 0x86d   :  { %5337 = vmatpush1.bf16.msra.mxu1 %v6944_v38  ;;  %5368 = vmatpush3.bf16.msra.mxu0 %v6950_v57 }
 0x86e   :  { %5339 = vmatprep.subr.bf16.mxu1 %v6960_v19  ;;  %5369 = vmatprep.subr.bf16.mxu0 %v6039_v47 }
 0x86f   :  { %2252 = vmatprep.mubr.f32.mxu1 %v6038_v3  ;;  %4522 = vmatprep.mubr.msk.f32.mxu0 %vm6040_vm1, %v6038_v3 }
 0x871   :  { %5341 = vmatpush1.bf16.msra.mxu1 %v6972_v15  ;;  %5371 = vmatpush3.bf16.msra.mxu0 %v6978_v25 }
 0x872   :  { %5343 = vmatprep.subr.bf16.mxu1 %v6988_v46  ;;  %5372 = vmatprep.subr.bf16.mxu0 %v6039_v47 }
 0x875   :  { %5345 = vmatpush1.bf16.msra.mxu1 %v7000_v12  ;;  %5374 = vmatpush3.bf16.msra.mxu0 %v7006_v45 }
 0x876   :  { %5347 = vmatprep.subr.bf16.mxu1 %v7016_v61  ;;  %5375 = vmatprep.subr.bf16.mxu0 %v6039_v47 }
 0x879   :  { %5349 = vmatpush1.bf16.msra.mxu1 %v7028_v23  ;;  %5377 = vmatpush3.bf16.msra.mxu0 %v7034_v35 }
 0x87a   :  { %5351 = vmatprep.subr.bf16.mxu1 %v7044_v34  ;;  %5378 = vmatprep.subr.bf16.mxu0 %v6039_v47 }
 0x87d   :  { %5353 = vmatpush1.bf16.msra.mxu1 %v7056_v58  ;;  %5380 = vmatpush3.bf16.msra.mxu0 %v7062_v1 }
 0x87e   :  { %5355 = vmatprep.subr.bf16.mxu1 %v7075_v22  ;;  %5381 = vmatprep.subr.bf16.mxu0 %v6039_v47 }
 0x881   :  { %5357 = vmatpush1.bf16.msra.mxu1 %v7087_v54  ;;  %5383 = vmatpush3.bf16.msra.mxu0 %v7089_v63 }
 0x882   :  { %5359 = vmatprep.subr.bf16.mxu1 %v7101_v8  ;;  %5384 = vmatprep.subr.bf16.mxu0 %v6039_v47 }
 0x885   :  { %5361 = vmatpush1.bf16.msra.mxu1 %v7113_v33  ;;  %5386 = vmatpush3.bf16.msra.mxu0 %v7123_v26 }
 0x886   :  { %5363 = vmatprep.subr.bf16.mxu1 %v7125_v51  ;;  %5387 = vmatprep.subr.bf16.mxu0 %v6039_v47 }
 0x889   :  { %5365 = vmatpush1.bf16.msra.mxu1 %v7141_v28  ;;  %5389 = vmatpush3.bf16.msra.mxu0 %v7145_v37 }
 0x88a   :  { %5391 = vmatprep.subr.bf16.mxu1 %v6933_v31  ;;  %5422 = vmatprep.subr.bf16.mxu0 %v6039_v47 }
 0x93f   :  { %v2085_v13 = vpop.f32.mrb[4].mxu1  ;;  %v2156_v24 = vpop.f32.mrb[28].mxu0 }
 0x940   :  { %v5790_v50 = vadd.f32 %v2085_v13, %v7203_v10  ;;  %v2087_v52 = vpop.f32.mrb[5].mxu1  ;;  %v4489_v59 = vpop.f32.mrb[29].mxu0  ;;  %v2180_v62 = vadd.f32 %v7214_v41, %v2156_v24 }
 0x941   :  { %v5791_v9 = vadd.f32 %v2087_v52, %v7207_v43 }
 0x942   :  { %v3778_v2 = vmul.f32 -1.442695, %v5790_v50 }
 0x943   :  { %v3779_v14 = vmul.f32 -1.442695, %v5791_v9 }
 0x944   :  { %5924 = vpow2.f32 %v3778_v2 }
 0x945   :  { %5926 = vpow2.f32 %v3779_v14 }
 0x94e   :  { %v5925_v6 = vpop.eup %5924 }
 0x94f   :  { %v2164_v48 = vadd.f32 1.0, %v5925_v6  ;;  %v5927_v21 = vpop.eup %5926 }
 0x950   :  { %v2171_v20 = vadd.f32 1.0, %v5927_v21 }
 0x951   :  { %5928 = vrcp.f32 %v2164_v48 }
 0x952   :  { %5930 = vrcp.f32 %v2171_v20 }
 0x95b   :  { %v5929_v0 = vpop.eup %5928 }
 0x95c   :  { %v2181_v27 = vmul.f32 %v5929_v0, %v2180_v62  ;;  %v5931_v32 = vpop.eup %5930 }
 0x95d   :  { %v2184_v30 = vsub.f32 1.0, %v5931_v32  ;;  %v2186_v56 = vmul.f32 %v5931_v32, %v7159_v5 }
 0x95e   :  { %v2182_v36 = vadd.f32 %v2181_v27, %v573_v17 }
 0x960   :  { %5932 = vtanh.f32 %v2182_v36 }
 0x96a   :  { %v5933_v39 = vpop.eup %5932 }
 0x96b   :  { %v2185_v40 = vmul.f32 %v5933_v39, %v2184_v30 }
 0x96d   :  { %v7220_v29 = vadd.f32 %v2186_v56, %v2185_v40 }
 0x96f   :  { %2253 = vmatmul.mubr.f32.vlgmr.msra.gmra.mrb[6].mxu1 %v7220_v29  ;;  %4523 = vmatmul.mubr.f32.vlgmr.msra.gmra.mrb[30].mxu0 %v7220_v29 }
 0x970   :  { %5393 = vmatpush1.bf16.msra.mxu1 %v6944_v38  ;;  %5424 = vmatpush3.bf16.msra.mxu0 %v6950_v57 }
 0x971   :  { %5395 = vmatprep.subr.bf16.mxu1 %v6960_v19  ;;  %5425 = vmatprep.subr.bf16.mxu0 %v6039_v47 }
 0x972   :  { %2415 = vmatprep.mubr.f32.mxu1 %v6038_v3  ;;  %4557 = vmatprep.mubr.msk.f32.mxu0 %vm6040_vm1, %v6038_v3 }
 0x974   :  { %5397 = vmatpush1.bf16.msra.mxu1 %v6972_v15  ;;  %5427 = vmatpush3.bf16.msra.mxu0 %v6978_v25 }
 0x975   :  { %5399 = vmatprep.subr.bf16.mxu1 %v6988_v46  ;;  %5428 = vmatprep.subr.bf16.mxu0 %v6039_v47 }
 0x978   :  { %5401 = vmatpush1.bf16.msra.mxu1 %v7000_v12  ;;  %5430 = vmatpush3.bf16.msra.mxu0 %v7006_v45 }
 0x979   :  { %5403 = vmatprep.subr.bf16.mxu1 %v7016_v61  ;;  %5431 = vmatprep.subr.bf16.mxu0 %v6039_v47 }
 0x97c   :  { %5405 = vmatpush1.bf16.msra.mxu1 %v7028_v23  ;;  %5433 = vmatpush3.bf16.msra.mxu0 %v7034_v35 }
 0x97d   :  { %5407 = vmatprep.subr.bf16.mxu1 %v7044_v34  ;;  %5434 = vmatprep.subr.bf16.mxu0 %v6039_v47 }
 0x980   :  { %5409 = vmatpush1.bf16.msra.mxu1 %v7056_v58  ;;  %5436 = vmatpush3.bf16.msra.mxu0 %v7062_v1 }
 0x981   :  { %5411 = vmatprep.subr.bf16.mxu1 %v7075_v22  ;;  %5437 = vmatprep.subr.bf16.mxu0 %v6039_v47 }
 0x984   :  { %5413 = vmatpush1.bf16.msra.mxu1 %v7087_v54  ;;  %5439 = vmatpush3.bf16.msra.mxu0 %v7089_v63 }
 0x985   :  { %5415 = vmatprep.subr.bf16.mxu1 %v7101_v8  ;;  %5440 = vmatprep.subr.bf16.mxu0 %v6039_v47 }
 0x988   :  { %5417 = vmatpush1.bf16.msra.mxu1 %v7113_v33  ;;  %5442 = vmatpush3.bf16.msra.mxu0 %v7123_v26 }
 0x989   :  { %5419 = vmatprep.subr.bf16.mxu1 %v7125_v51  ;;  %5443 = vmatprep.subr.bf16.mxu0 %v6039_v47 }
 0x98c   :  { %5421 = vmatpush1.bf16.msra.mxu1 %v7141_v28  ;;  %5445 = vmatpush3.bf16.msra.mxu0 %v7145_v37 }
 0x98d   :  { %5447 = vmatprep.subr.bf16.mxu1 %v6933_v31  ;;  %5478 = vmatprep.subr.bf16.mxu0 %v6039_v47 }
 0xa42   :  { %v2254_v44 = vpop.f32.mrb[6].mxu1  ;;  %v2325_v53 = vpop.f32.mrb[30].mxu0 }
 0xa43   :  { %v5792_v5 = vadd.f32 %v2254_v44, %v7203_v10  ;;  %v2256_v13 = vpop.f32.mrb[7].mxu1  ;;  %v4524_v24 = vpop.f32.mrb[31].mxu0  ;;  %v2343_v6 = vadd.f32 %v7214_v41, %v2325_v53 }
 0xa44   :  { %v5793_v50 = vadd.f32 %v2256_v13, %v7207_v43 }
 0xa45   :  { %v3781_v42 = vmul.f32 -1.442695, %v5792_v5 }
 0xa46   :  { %v3782_v52 = vmul.f32 -1.442695, %v5793_v50 }
 0xa47   :  { %5934 = vpow2.f32 %v3781_v42 }
 0xa48   :  { %5936 = vpow2.f32 %v3782_v52 }
 0xa51   :  { %v5935_v59 = vpop.eup %5934 }
 0xa52   :  { %v2333_v2 = vadd.f32 1.0, %v5935_v59  ;;  %v5937_v9 = vpop.eup %5936 }
 0xa53   :  { %v2340_v14 = vadd.f32 1.0, %v5937_v9 }
 0xa54   :  { %5938 = vrcp.f32 %v2333_v2 }
 0xa55   :  { %5940 = vrcp.f32 %v2340_v14 }
 0xa5e   :  { %v5939_v48 = vpop.eup %5938 }
 0xa5f   :  { %v2344_v21 = vmul.f32 %v5939_v48, %v2343_v6  ;;  %v5941_v62 = vpop.eup %5940 }
 0xa60   :  { %v2347_v0 = vsub.f32 1.0, %v5941_v62  ;;  %v2349_v36 = vmul.f32 %v5941_v62, %v7220_v29 }
 0xa61   :  { %v2345_v20 = vadd.f32 %v2344_v21, %v6647_v49 }
 0xa63   :  { %5942 = vtanh.f32 %v2345_v20 }
 0xa6d   :  { %v5943_v17 = vpop.eup %5942 }
 0xa6e   :  { %v2348_v27 = vmul.f32 %v5943_v17, %v2347_v0 }
 0xa70   :  { %v7264_v32 = vadd.f32 %v2349_v36, %v2348_v27 }
 0xa72   :  { %2416 = vmatmul.mubr.f32.vlgmr.msra.gmra.mrb[8].mxu1 %v7264_v32  ;;  %4558 = vmatmul.mubr.f32.vlgmr.msra.gmra.mrb[32].mxu0 %v7264_v32 }
 0xa73   :  { %5449 = vmatpush1.bf16.msra.mxu1 %v6944_v38  ;;  %5480 = vmatpush3.bf16.msra.mxu0 %v6950_v57 }
 0xa74   :  { %5451 = vmatprep.subr.bf16.mxu1 %v6960_v19  ;;  %5481 = vmatprep.subr.bf16.mxu0 %v6039_v47 }
 0xa75   :  { %2578 = vmatprep.mubr.f32.mxu1 %v6038_v3  ;;  %4592 = vmatprep.mubr.msk.f32.mxu0 %vm6040_vm1, %v6038_v3 }
 0xa77   :  { %5453 = vmatpush1.bf16.msra.mxu1 %v6972_v15  ;;  %5483 = vmatpush3.bf16.msra.mxu0 %v6978_v25 }
 0xa78   :  { %5455 = vmatprep.subr.bf16.mxu1 %v6988_v46  ;;  %5484 = vmatprep.subr.bf16.mxu0 %v6039_v47 }
 0xa7b   :  { %5457 = vmatpush1.bf16.msra.mxu1 %v7000_v12  ;;  %5486 = vmatpush3.bf16.msra.mxu0 %v7006_v45 }
 0xa7c   :  { %5459 = vmatprep.subr.bf16.mxu1 %v7016_v61  ;;  %5487 = vmatprep.subr.bf16.mxu0 %v6039_v47 }
 0xa7f   :  { %5461 = vmatpush1.bf16.msra.mxu1 %v7028_v23  ;;  %5489 = vmatpush3.bf16.msra.mxu0 %v7034_v35 }
 0xa80   :  { %5463 = vmatprep.subr.bf16.mxu1 %v7044_v34  ;;  %5490 = vmatprep.subr.bf16.mxu0 %v6039_v47 }
 0xa83   :  { %5465 = vmatpush1.bf16.msra.mxu1 %v7056_v58  ;;  %5492 = vmatpush3.bf16.msra.mxu0 %v7062_v1 }
 0xa84   :  { %5467 = vmatprep.subr.bf16.mxu1 %v7075_v22  ;;  %5493 = vmatprep.subr.bf16.mxu0 %v6039_v47 }
 0xa87   :  { %5469 = vmatpush1.bf16.msra.mxu1 %v7087_v54  ;;  %5495 = vmatpush3.bf16.msra.mxu0 %v7089_v63 }
 0xa88   :  { %5471 = vmatprep.subr.bf16.mxu1 %v7101_v8  ;;  %5496 = vmatprep.subr.bf16.mxu0 %v6039_v47 }
 0xa8b   :  { %5473 = vmatpush1.bf16.msra.mxu1 %v7113_v33  ;;  %5498 = vmatpush3.bf16.msra.mxu0 %v7123_v26 }
 0xa8c   :  { %5475 = vmatprep.subr.bf16.mxu1 %v7125_v51  ;;  %5499 = vmatprep.subr.bf16.mxu0 %v6039_v47 }
 0xa8f   :  { %5477 = vmatpush1.bf16.msra.mxu1 %v7141_v28  ;;  %5501 = vmatpush3.bf16.msra.mxu0 %v7145_v37 }
 0xa90   :  { %5503 = vmatprep.subr.bf16.mxu1 %v6933_v31  ;;  %5534 = vmatprep.subr.bf16.mxu0 %v6039_v47 }
 0xb45   :  { %v2417_v49 = vpop.f32.mrb[8].mxu1  ;;  %v2488_v30 = vpop.f32.mrb[32].mxu0 }
 0xb46   :  { %v5794_v39 = vadd.f32 %v2417_v49, %v7203_v10  ;;  %v2419_v40 = vpop.f32.mrb[9].mxu1  ;;  %v4559_v56 = vpop.f32.mrb[33].mxu0  ;;  %v2506_v52 = vadd.f32 %v7214_v41, %v2488_v30 }
 0xb47   :  { %v5795_v53 = vadd.f32 %v2419_v40, %v7207_v43 }
 0xb48   :  { %v3783_v44 = vmul.f32 -1.442695, %v5794_v39 }
 0xb49   :  { %v3784_v5 = vmul.f32 -1.442695, %v5795_v53 }
 0xb4a   :  { %5944 = vpow2.f32 %v3783_v44 }
 0xb4b   :  { %5946 = vpow2.f32 %v3784_v5 }
 0xb54   :  { %v5945_v13 = vpop.eup %5944 }
 0xb55   :  { %v2496_v24 = vadd.f32 1.0, %v5945_v13  ;;  %v5947_v42 = vpop.eup %5946 }
 0xb56   :  { %v2503_v50 = vadd.f32 1.0, %v5947_v42 }
 0xb57   :  { %5948 = vrcp.f32 %v2496_v24 }
 0xb58   :  { %5950 = vrcp.f32 %v2503_v50 }
 0xb61   :  { %v5949_v59 = vpop.eup %5948 }
 0xb62   :  { %v2507_v2 = vmul.f32 %v5949_v59, %v2506_v52  ;;  %v5951_v14 = vpop.eup %5950 }
 0xb63   :  { %v2510_v6 = vsub.f32 1.0, %v5951_v14  ;;  %v2512_v20 = vmul.f32 %v5951_v14, %v7264_v32 }
 0xb64   :  { %v2508_v9 = vadd.f32 %v2507_v2, %v6655_v60 }
 0xb66   :  { %5952 = vtanh.f32 %v2508_v9 }
 0xb70   :  { %v5953_v48 = vpop.eup %5952 }
 0xb71   :  { %v2511_v21 = vmul.f32 %v5953_v48, %v2510_v6 }
 0xb73   :  { %v7308_v62 = vadd.f32 %v2512_v20, %v2511_v21 }
 0xb75   :  { %2579 = vmatmul.mubr.f32.vlgmr.msra.gmra.mrb[10].mxu1 %v7308_v62  ;;  %4593 = vmatmul.mubr.f32.vlgmr.msra.gmra.mrb[34].mxu0 %v7308_v62 }
 0xb76   :  { %5505 = vmatpush1.bf16.msra.mxu1 %v6944_v38  ;;  %5536 = vmatpush3.bf16.msra.mxu0 %v6950_v57 }
 0xb77   :  { %5507 = vmatprep.subr.bf16.mxu1 %v6960_v19  ;;  %5537 = vmatprep.subr.bf16.mxu0 %v6039_v47 }
 0xb78   :  { %2741 = vmatprep.mubr.f32.mxu1 %v6038_v3  ;;  %4627 = vmatprep.mubr.msk.f32.mxu0 %vm6040_vm1, %v6038_v3 }
 0xb7a   :  { %5509 = vmatpush1.bf16.msra.mxu1 %v6972_v15  ;;  %5539 = vmatpush3.bf16.msra.mxu0 %v6978_v25 }
 0xb7b   :  { %5511 = vmatprep.subr.bf16.mxu1 %v6988_v46  ;;  %5540 = vmatprep.subr.bf16.mxu0 %v6039_v47 }
 0xb7e   :  { %5513 = vmatpush1.bf16.msra.mxu1 %v7000_v12  ;;  %5542 = vmatpush3.bf16.msra.mxu0 %v7006_v45 }
 0xb7f   :  { %5515 = vmatprep.subr.bf16.mxu1 %v7016_v61  ;;  %5543 = vmatprep.subr.bf16.mxu0 %v6039_v47 }
 0xb82   :  { %5517 = vmatpush1.bf16.msra.mxu1 %v7028_v23  ;;  %5545 = vmatpush3.bf16.msra.mxu0 %v7034_v35 }
 0xb83   :  { %5519 = vmatprep.subr.bf16.mxu1 %v7044_v34  ;;  %5546 = vmatprep.subr.bf16.mxu0 %v6039_v47 }
 0xb86   :  { %5521 = vmatpush1.bf16.msra.mxu1 %v7056_v58  ;;  %5548 = vmatpush3.bf16.msra.mxu0 %v7062_v1 }
 0xb87   :  { %5523 = vmatprep.subr.bf16.mxu1 %v7075_v22  ;;  %5549 = vmatprep.subr.bf16.mxu0 %v6039_v47 }
 0xb8a   :  { %5525 = vmatpush1.bf16.msra.mxu1 %v7087_v54  ;;  %5551 = vmatpush3.bf16.msra.mxu0 %v7089_v63 }
 0xb8b   :  { %5527 = vmatprep.subr.bf16.mxu1 %v7101_v8  ;;  %5552 = vmatprep.subr.bf16.mxu0 %v6039_v47 }
 0xb8e   :  { %5529 = vmatpush1.bf16.msra.mxu1 %v7113_v33  ;;  %5554 = vmatpush3.bf16.msra.mxu0 %v7123_v26 }
 0xb8f   :  { %5531 = vmatprep.subr.bf16.mxu1 %v7125_v51  ;;  %5555 = vmatprep.subr.bf16.mxu0 %v6039_v47 }
 0xb92   :  { %5533 = vmatpush1.bf16.msra.mxu1 %v7141_v28  ;;  %5557 = vmatpush3.bf16.msra.mxu0 %v7145_v37 }
 0xb93   :  { %5559 = vmatprep.subr.bf16.mxu1 %v6933_v31  ;;  %5590 = vmatprep.subr.bf16.mxu0 %v6039_v47 }
 0xc48   :  { %v2580_v60 = vpop.f32.mrb[10].mxu1  ;;  %v2651_v0 = vpop.f32.mrb[34].mxu0 }
 0xc49   :  { %v5796_v17 = vadd.f32 %v2580_v60, %v7203_v10  ;;  %v2582_v27 = vpop.f32.mrb[11].mxu1  ;;  %v4594_v36 = vpop.f32.mrb[35].mxu0  ;;  %v2669_v5 = vadd.f32 %v7214_v41, %v2651_v0 }
 0xc4a   :  { %v5797_v30 = vadd.f32 %v2582_v27, %v7207_v43 }
 0xc4b   :  { %v3785_v49 = vmul.f32 -1.442695, %v5796_v17 }
 0xc4c   :  { %v3786_v39 = vmul.f32 -1.442695, %v5797_v30 }
 0xc4d   :  { %5954 = vpow2.f32 %v3785_v49 }
 0xc4e   :  { %5956 = vpow2.f32 %v3786_v39 }
 0xc57   :  { %v5955_v40 = vpop.eup %5954 }
 0xc58   :  { %v2659_v56 = vadd.f32 1.0, %v5955_v40  ;;  %v5957_v44 = vpop.eup %5956 }
 0xc59   :  { %v2666_v53 = vadd.f32 1.0, %v5957_v44 }
 0xc5a   :  { %5958 = vrcp.f32 %v2659_v56 }
 0xc5b   :  { %5960 = vrcp.f32 %v2666_v53 }
 0xc64   :  { %v5959_v13 = vpop.eup %5958 }
 0xc65   :  { %v2670_v24 = vmul.f32 %v5959_v13, %v2669_v5  ;;  %v5961_v50 = vpop.eup %5960 }
 0xc66   :  { %v2673_v52 = vsub.f32 1.0, %v5961_v50  ;;  %v2675_v9 = vmul.f32 %v5961_v50, %v7308_v62 }
 0xc67   :  { %v2671_v42 = vadd.f32 %v2670_v24, %v6652_v55 }
 0xc69   :  { %5962 = vtanh.f32 %v2671_v42 }
 0xc73   :  { %v5963_v59 = vpop.eup %5962 }
 0xc74   :  { %v2674_v2 = vmul.f32 %v5963_v59, %v2673_v52 }
 0xc76   :  { %v7352_v14 = vadd.f32 %v2675_v9, %v2674_v2 }
 0xc78   :  { %2742 = vmatmul.mubr.f32.vlgmr.msra.gmra.mrb[12].mxu1 %v7352_v14  ;;  %4628 = vmatmul.mubr.f32.vlgmr.msra.gmra.mrb[36].mxu0 %v7352_v14 }
 0xc79   :  { %5561 = vmatpush1.bf16.msra.mxu1 %v6944_v38  ;;  %5592 = vmatpush3.bf16.msra.mxu0 %v6950_v57 }
 0xc7a   :  { %5563 = vmatprep.subr.bf16.mxu1 %v6960_v19  ;;  %5593 = vmatprep.subr.bf16.mxu0 %v6039_v47 }
 0xc7b   :  { %2904 = vmatprep.mubr.f32.mxu1 %v6038_v3  ;;  %4662 = vmatprep.mubr.msk.f32.mxu0 %vm6040_vm1, %v6038_v3 }
 0xc7d   :  { %5565 = vmatpush1.bf16.msra.mxu1 %v6972_v15  ;;  %5595 = vmatpush3.bf16.msra.mxu0 %v6978_v25 }
 0xc7e   :  { %5567 = vmatprep.subr.bf16.mxu1 %v6988_v46  ;;  %5596 = vmatprep.subr.bf16.mxu0 %v6039_v47 }
 0xc81   :  { %5569 = vmatpush1.bf16.msra.mxu1 %v7000_v12  ;;  %5598 = vmatpush3.bf16.msra.mxu0 %v7006_v45 }
 0xc82   :  { %5571 = vmatprep.subr.bf16.mxu1 %v7016_v61  ;;  %5599 = vmatprep.subr.bf16.mxu0 %v6039_v47 }
 0xc85   :  { %5573 = vmatpush1.bf16.msra.mxu1 %v7028_v23  ;;  %5601 = vmatpush3.bf16.msra.mxu0 %v7034_v35 }
 0xc86   :  { %5575 = vmatprep.subr.bf16.mxu1 %v7044_v34  ;;  %5602 = vmatprep.subr.bf16.mxu0 %v6039_v47 }
 0xc89   :  { %5577 = vmatpush1.bf16.msra.mxu1 %v7056_v58  ;;  %5604 = vmatpush3.bf16.msra.mxu0 %v7062_v1 }
 0xc8a   :  { %5579 = vmatprep.subr.bf16.mxu1 %v7075_v22  ;;  %5605 = vmatprep.subr.bf16.mxu0 %v6039_v47 }
 0xc8d   :  { %5581 = vmatpush1.bf16.msra.mxu1 %v7087_v54  ;;  %5607 = vmatpush3.bf16.msra.mxu0 %v7089_v63 }
 0xc8e   :  { %5583 = vmatprep.subr.bf16.mxu1 %v7101_v8  ;;  %5608 = vmatprep.subr.bf16.mxu0 %v6039_v47 }
 0xc91   :  { %5585 = vmatpush1.bf16.msra.mxu1 %v7113_v33  ;;  %5610 = vmatpush3.bf16.msra.mxu0 %v7123_v26 }
 0xc92   :  { %5587 = vmatprep.subr.bf16.mxu1 %v7125_v51  ;;  %5611 = vmatprep.subr.bf16.mxu0 %v6039_v47 }
 0xc95   :  { %5589 = vmatpush1.bf16.msra.mxu1 %v7141_v28  ;;  %5613 = vmatpush3.bf16.msra.mxu0 %v7145_v37 }
 0xc96   :  { %5615 = vmatprep.subr.bf16.mxu1 %v6933_v31  ;;  %5646 = vmatprep.subr.bf16.mxu0 %v6039_v47 }
 0xd4b   :  { %v2743_v55 = vpop.f32.mrb[12].mxu1  ;;  %v2814_v6 = vpop.f32.mrb[36].mxu0 }
 0xd4c   :  { %v5798_v48 = vadd.f32 %v2743_v55, %v7203_v10  ;;  %v2745_v21 = vpop.f32.mrb[13].mxu1  ;;  %v4629_v20 = vpop.f32.mrb[37].mxu0  ;;  %v2832_v39 = vadd.f32 %v7214_v41, %v2814_v6 }
 0xd4d   :  { %v5799_v0 = vadd.f32 %v2745_v21, %v7207_v43 }
 0xd4e   :  { %v3787_v60 = vmul.f32 -1.442695, %v5798_v48 }
 0xd4f   :  { %v3788_v17 = vmul.f32 -1.442695, %v5799_v0 }
 0xd50   :  { %5964 = vpow2.f32 %v3787_v60 }
 0xd51   :  { %5966 = vpow2.f32 %v3788_v17 }
 0xd5a   :  { %v5965_v27 = vpop.eup %5964 }
 0xd5b   :  { %v2822_v36 = vadd.f32 1.0, %v5965_v27  ;;  %v5967_v49 = vpop.eup %5966 }
 0xd5c   :  { %v2829_v30 = vadd.f32 1.0, %v5967_v49 }
 0xd5d   :  { %5968 = vrcp.f32 %v2822_v36 }
 0xd5e   :  { %5970 = vrcp.f32 %v2829_v30 }
 0xd67   :  { %v5969_v40 = vpop.eup %5968 }
 0xd68   :  { %v2833_v56 = vmul.f32 %v5969_v40, %v2832_v39  ;;  %v5971_v53 = vpop.eup %5970 }
 0xd69   :  { %v2836_v5 = vsub.f32 1.0, %v5971_v53  ;;  %v2838_v42 = vmul.f32 %v5971_v53, %v7352_v14 }
 0xd6a   :  { %v2834_v44 = vadd.f32 %v2833_v56, %v6661_v7 }
 0xd6c   :  { %5972 = vtanh.f32 %v2834_v44 }
 0xd76   :  { %v5973_v13 = vpop.eup %5972 }
 0xd77   :  { %v2837_v24 = vmul.f32 %v5973_v13, %v2836_v5 }
 0xd79   :  { %v7396_v50 = vadd.f32 %v2838_v42, %v2837_v24  ;;  %v3334_v42 = vld [vmem:[%s7703_s10 + $0x28] sm:$0xff] }
 0xd7b   :  { %2905 = vmatmul.mubr.f32.vlgmr.msra.gmra.mrb[14].mxu1 %v7396_v50  ;;  %4663 = vmatmul.mubr.f32.vlgmr.msra.gmra.mrb[38].mxu0 %v7396_v50 }
 0xd7c   :  { %5617 = vmatpush1.bf16.msra.mxu1 %v6944_v38  ;;  %5648 = vmatpush3.bf16.msra.mxu0 %v6950_v57 }
 0xd7d   :  { %5619 = vmatprep.subr.bf16.mxu1 %v6960_v19  ;;  %5649 = vmatprep.subr.bf16.mxu0 %v6039_v47 }
 0xd7e   :  { %3067 = vmatprep.mubr.f32.mxu1 %v6038_v3  ;;  %4697 = vmatprep.mubr.msk.f32.mxu0 %vm6040_vm1, %v6038_v3 }
 0xd80   :  { %5621 = vmatpush1.bf16.msra.mxu1 %v6972_v15  ;;  %5651 = vmatpush3.bf16.msra.mxu0 %v6978_v25 }
 0xd81   :  { %5623 = vmatprep.subr.bf16.mxu1 %v6988_v46  ;;  %5652 = vmatprep.subr.bf16.mxu0 %v6039_v47 }
 0xd84   :  { %5625 = vmatpush1.bf16.msra.mxu1 %v7000_v12  ;;  %5654 = vmatpush3.bf16.msra.mxu0 %v7006_v45 }
 0xd85   :  { %5627 = vmatprep.subr.bf16.mxu1 %v7016_v61  ;;  %5655 = vmatprep.subr.bf16.mxu0 %v6039_v47 }
 0xd88   :  { %5629 = vmatpush1.bf16.msra.mxu1 %v7028_v23  ;;  %5657 = vmatpush3.bf16.msra.mxu0 %v7034_v35 }
 0xd89   :  { %5631 = vmatprep.subr.bf16.mxu1 %v7044_v34  ;;  %5658 = vmatprep.subr.bf16.mxu0 %v6039_v47 }
 0xd8c   :  { %5633 = vmatpush1.bf16.msra.mxu1 %v7056_v58  ;;  %5660 = vmatpush3.bf16.msra.mxu0 %v7062_v1 }
 0xd8d   :  { %5635 = vmatprep.subr.bf16.mxu1 %v7075_v22  ;;  %5661 = vmatprep.subr.bf16.mxu0 %v6039_v47 }
 0xd90   :  { %5637 = vmatpush1.bf16.msra.mxu1 %v7087_v54  ;;  %5663 = vmatpush3.bf16.msra.mxu0 %v7089_v63 }
 0xd91   :  { %5639 = vmatprep.subr.bf16.mxu1 %v7101_v8  ;;  %5664 = vmatprep.subr.bf16.mxu0 %v6039_v47 }
 0xd94   :  { %5641 = vmatpush1.bf16.msra.mxu1 %v7113_v33  ;;  %5666 = vmatpush3.bf16.msra.mxu0 %v7123_v26 }
 0xd95   :  { %5643 = vmatprep.subr.bf16.mxu1 %v7125_v51  ;;  %5667 = vmatprep.subr.bf16.mxu0 %v6039_v47 }
 0xd98   :  { %5645 = vmatpush1.bf16.msra.mxu1 %v7141_v28  ;;  %5669 = vmatpush3.bf16.msra.mxu0 %v7145_v37 }
 0xd99   :  { %5671 = vmatprep.subr.bf16.mxu1 %v6933_v31  ;;  %5702 = vmatprep.subr.bf16.mxu0 %v6039_v47 }
 0xe4e   :  { %v2906_v7 = vpop.f32.mrb[14].mxu1  ;;  %v2977_v52 = vpop.f32.mrb[38].mxu0 }
 0xe4f   :  { %v5800_v59 = vadd.f32 %v2906_v7, %v7203_v10  ;;  %v2908_v2 = vpop.f32.mrb[15].mxu1  ;;  %v4664_v9 = vpop.f32.mrb[39].mxu0  ;;  %v2995_v31 = vadd.f32 %v7214_v41, %v2977_v52  ;;  %v3335_v52 = vld [vmem:[%s7703_s10 + $0x30] sm:$0xff] }
 0xe50   :  { %v5801_v6 = vadd.f32 %v2908_v2, %v7207_v43  ;;  %v3338_v9 = vld [vmem:[%s7703_s10 + $0x48] sm:$0xff] }
 0xe51   :  { %v3789_v55 = vmul.f32 -1.442695, %v5800_v59  ;;  %v3336_v59 = vld [vmem:[%s7703_s10 + $0x38] sm:$0xff] }
 0xe52   :  { %v3790_v48 = vmul.f32 -1.442695, %v5801_v6  ;;  %v5738_v2 = vpack.c.bf16 %v3336_v59, %v3335_v52  ;;  %v3339_v6 = vld [vmem:[%s7703_s10 + $0x50] sm:$0xff] }
 0xe53   :  { %5974 = vpow2.f32 %v3789_v55 }
 0xe54   :  { %5976 = vpow2.f32 %v3790_v48  ;;  %v3340_v48 = vld [vmem:[%s7703_s10 + $0x58] sm:$0xff] }
 0xe5d   :  { %v5975_v21 = vpop.eup %5974 }
 0xe5e   :  { %v2985_v20 = vadd.f32 1.0, %v5975_v21  ;;  %v5977_v60 = vpop.eup %5976  ;;  %v5746_v21 = vpack.c.bf16 %v3340_v48, %v3339_v6 }
 0xe5f   :  { %v2992_v0 = vadd.f32 1.0, %v5977_v60  ;;  %v3342_v60 = vld [vmem:[%s7703_s10 + $0x68] sm:$0xff] }
 0xe60   :  { %5978 = vrcp.f32 %v2985_v20  ;;  %v3341_v20 = vld [vmem:[%s7703_s10 + $0x60] sm:$0xff] }
 0xe61   :  { %5980 = vrcp.f32 %v2992_v0  ;;  %v5750_v0 = vpack.c.bf16 %v3342_v60, %v3341_v20 }
 0xe6a   :  { %v5979_v17 = vpop.eup %5978 }
 0xe6b   :  { %v2996_v27 = vmul.f32 %v5979_v17, %v2995_v31  ;;  %v5981_v49 = vpop.eup %5980  ;;  %v3343_v31 = vld [vmem:[%s7703_s10 + $0x70] sm:$0xff]  ;;  %v3344_v17 = vld [vmem:[%s7703_s10 + $0x78] sm:$0xff] }
 0xe6c   :  { %v2999_v30 = vsub.f32 1.0, %v5981_v49  ;;  %v3001_v56 = vmul.f32 %v5981_v49, %v7396_v50 }
 0xe6d   :  { %v2997_v36 = vadd.f32 %v2996_v27, %v6658_v4  ;;  %v3329_v4 = vld [vmem:[%s7703_s10] sm:$0xff]  ;;  %v5754_v27 = vpack.c.bf16 %v3344_v17, %v3343_v31 }
 0xe6f   :  { %5982 = vtanh.f32 %v2997_v36 }
 0xe79   :  { %v5983_v39 = vpop.eup %5982 }
 0xe7a   :  { %v3000_v40 = vmul.f32 %v5983_v39, %v2999_v30 }
 0xe7c   :  { %v7440_v44 = vadd.f32 %v3001_v56, %v3000_v40 }
 0xe7e   :  { %3068 = vmatmul.mubr.f32.vlgmr.msra.gmra.mrb[16].mxu1 %v7440_v44  ;;  %4698 = vmatmul.mubr.f32.vlgmr.msra.gmra.mrb[40].mxu0 %v7440_v44 }
 0xe7f   :  { %5673 = vmatpush1.bf16.msra.mxu1 %v6944_v38  ;;  %5704 = vmatpush3.bf16.msra.mxu0 %v6950_v57  ;;  %v3330_v38 = vld [vmem:[%s7703_s10 + $0x8] sm:$0xff] }
 0xe80   :  { %5675 = vmatprep.subr.bf16.mxu1 %v6960_v19  ;;  %5705 = vmatprep.subr.bf16.mxu0 %v6039_v47  ;;  %v5726_v57 = vpack.c.bf16 %v3330_v38, %v3329_v4 }
 0xe81   :  { %3230 = vmatprep.mubr.f32.mxu1 %v6038_v3  ;;  %4732 = vmatprep.mubr.msk.f32.mxu0 %vm6040_vm1, %v6038_v3 }
 0xe83   :  { %5677 = vmatpush1.bf16.msra.mxu1 %v6972_v15  ;;  %5707 = vmatpush3.bf16.msra.mxu0 %v6978_v25 }
 0xe84   :  { %5679 = vmatprep.subr.bf16.mxu1 %v6988_v46  ;;  %5708 = vmatprep.subr.bf16.mxu0 %v6039_v47 }
 0xe87   :  { %5681 = vmatpush1.bf16.msra.mxu1 %v7000_v12  ;;  %5710 = vmatpush3.bf16.msra.mxu0 %v7006_v45 }
 0xe88   :  { %5683 = vmatprep.subr.bf16.mxu1 %v7016_v61  ;;  %5711 = vmatprep.subr.bf16.mxu0 %v6039_v47 }
 0xe8b   :  { %5685 = vmatpush1.bf16.msra.mxu1 %v7028_v23  ;;  %5713 = vmatpush3.bf16.msra.mxu0 %v7034_v35 }
 0xe8c   :  { %5687 = vmatprep.subr.bf16.mxu1 %v7044_v34  ;;  %5714 = vmatprep.subr.bf16.mxu0 %v6039_v47 }
 0xe8f   :  { %5689 = vmatpush1.bf16.msra.mxu1 %v7056_v58  ;;  %5716 = vmatpush3.bf16.msra.mxu0 %v7062_v1 }
 0xe90   :  { %5691 = vmatprep.subr.bf16.mxu1 %v7075_v22  ;;  %5717 = vmatprep.subr.bf16.mxu0 %v6039_v47 }
 0xe93   :  { %5693 = vmatpush1.bf16.msra.mxu1 %v7087_v54  ;;  %5719 = vmatpush3.bf16.msra.mxu0 %v7089_v63 }
 0xe94   :  { %5695 = vmatprep.subr.bf16.mxu1 %v7101_v8  ;;  %5720 = vmatprep.subr.bf16.mxu0 %v6039_v47 }
 0xe97   :  { %5697 = vmatpush1.bf16.msra.mxu1 %v7113_v33  ;;  %5722 = vmatpush3.bf16.msra.mxu0 %v7123_v26 }
 0xe98   :  { %5699 = vmatprep.subr.bf16.mxu1 %v7125_v51  ;;  %5723 = vmatprep.subr.bf16.mxu0 %v6039_v47 }
 0xe9b   :  { %5701 = vmatpush1.bf16.msra.mxu1 %v7141_v28  ;;  %5725 = vmatpush3.bf16.msra.mxu0 %v7145_v37  ;;  %v3331_v28 = vld [vmem:[%s7703_s10 + $0x10] sm:$0xff]  ;;  %v3332_v37 = vld [vmem:[%s7703_s10 + $0x18] sm:$0xff] }
 0xe9c   :  { %5758 = vmatprep.subr.bf16.mxu0 %v6039_v47  ;;  %5727 = vmatprep.subr.bf16.mxu1 %v5726_v57  ;;  %v5730_v24 = vpack.c.bf16 %v3332_v37, %v3331_v28 }
 0xf51   :  { %v3069_v19 = vpop.f32.mrb[16].mxu1  ;;  %v3140_v15 = vpop.f32.mrb[40].mxu0 }
 0xf52   :  { %v5802_v25 = vadd.f32 %v3069_v19, %v7203_v10  ;;  %v3071_v46 = vpop.f32.mrb[17].mxu1  ;;  %v4699_v12 = vpop.f32.mrb[41].mxu0  ;;  %v3158_v22 = vadd.f32 %v7214_v41, %v3140_v15  ;;  %v3795_v15 = vld [vmem:[%s7704_s11] ss:$0 sm:$0xff] }
 0xf53   :  { %v5803_v61 = vadd.f32 %v3071_v46, %v7207_v43 }
 0xf54   :  { %v3791_v45 = vmul.f32 -1.442695, %v5802_v25 }
 0xf55   :  { %v3792_v23 = vmul.f32 -1.442695, %v5803_v61 }
 0xf56   :  { %5984 = vpow2.f32 %v3791_v45 }
 0xf57   :  { %5986 = vpow2.f32 %v3792_v23 }
 0xf60   :  { %v5985_v35 = vpop.eup %5984 }
 0xf61   :  { %v3148_v34 = vadd.f32 1.0, %v5985_v35  ;;  %v5987_v58 = vpop.eup %5986 }
 0xf62   :  { %v3155_v1 = vadd.f32 1.0, %v5987_v58 }
 0xf63   :  { %5988 = vrcp.f32 %v3148_v34 }
 0xf64   :  { %5990 = vrcp.f32 %v3155_v1 }
 0xf6d   :  { %v5989_v54 = vpop.eup %5988 }
 0xf6e   :  { %v3159_v63 = vmul.f32 %v5989_v54, %v3158_v22  ;;  %v5991_v33 = vpop.eup %5990 }
 0xf6f   :  { %v3162_v26 = vsub.f32 1.0, %v5991_v33  ;;  %v3164_v5 = vmul.f32 %v5991_v33, %v7440_v44 }
 0xf70   :  { %v3160_v8 = vadd.f32 %v3159_v63, %v6667_v18  ;;  %v3333_v18 = vld [vmem:[%s7703_s10 + $0x20] sm:$0xff] }
 0xf71   :  { %v5734_v7 = vpack.c.bf16 %v3334_v42, %v3333_v18 }
 0xf72   :  { %5992 = vtanh.f32 %v3160_v8 }
 0xf7c   :  { %v5993_v51 = vpop.eup %5992 }
 0xf7d   :  { %v3163_v53 = vmul.f32 %v5993_v51, %v3162_v26 }
 0xf7f   :  { %v7495_v13 = vadd.f32 %v3164_v5, %v3163_v53 }
 0xf81   :  { %3231 = vmatmul.mubr.f32.vlgmr.msra.gmra.mrb[18].mxu1 %v7495_v13  ;;  %4733 = vmatmul.mubr.f32.vlgmr.msra.gmra.mrb[42].mxu0 %v7495_v13 }
 0xf82   :  { %5729 = vmatpush3.bf16.msra.mxu1 %v5726_v57  ;;  %4767 = vmatprep.mubr.f32.mxu1 %v7220_v29  ;;  %v3337_v29 = vld [vmem:[%s7703_s10 + $0x40] sm:$0xff] }
 0xf83   :  { %5731 = vmatprep.subr.bf16.mxu1 %v5730_v24  ;;  %4795 = vmatprep.mubr.msk.f32.mxu0 %vm6040_vm1, %v6038_v3  ;;  %v5742_v55 = vpack.c.bf16 %v3338_v9, %v3337_v29 }
 0xf86   :  { %5733 = vmatpush3.bf16.msra.mxu1 %v5730_v24 }
 0xf87   :  { %5735 = vmatprep.subr.bf16.mxu1 %v5734_v7 }
 0xf8a   :  { %5737 = vmatpush3.bf16.msra.mxu1 %v5734_v7 }
 0xf8b   :  { %5739 = vmatprep.subr.bf16.mxu1 %v5738_v2 }
 0xf8e   :  { %5741 = vmatpush3.bf16.msra.mxu1 %v5738_v2 }
 0xf8f   :  { %5743 = vmatprep.subr.bf16.mxu1 %v5742_v55 }
 0xf92   :  { %5745 = vmatpush3.bf16.msra.mxu1 %v5742_v55 }
 0xf93   :  { %5747 = vmatprep.subr.bf16.mxu1 %v5746_v21 }
 0xf96   :  { %5749 = vmatpush3.bf16.msra.mxu1 %v5746_v21 }
 0xf97   :  { %5751 = vmatprep.subr.bf16.mxu1 %v5750_v0 }
 0xf9a   :  { %5753 = vmatpush3.bf16.msra.mxu1 %v5750_v0 }
 0xf9b   :  { %5755 = vmatprep.subr.bf16.mxu1 %v5754_v27 }
 0xf9e   :  { %5757 = vmatpush3.bf16.msra.mxu1 %v5754_v27 }
 0xfa1   :  { %4768 = vmatmul.mubr.f32.vlgmr.msra.gmra.mrb[36].mxu1 %v7264_v32 }
 0xfa2   :  { %4770 = vmatprep.mubr.f32.mxu1 %v7308_v62 }
 0xfa5   :  { %4771 = vmatmul.mubr.f32.gmra.mrb[38].mxu1 %v7352_v14 }
 0xfa6   :  { %4773 = vmatprep.mubr.f32.mxu1 %v7396_v50 }
 0xfa9   :  { %4774 = vmatmul.mubr.f32.gmra.mrb[40].mxu1 %v7440_v44 }
 0xfaa   :  { %4776 = vmatprep.mubr.f32.mxu1 %v7495_v13 }
0x1054   :  { %v3232_v36 = vpop.f32.mrb[18].mxu1  ;;  %v3303_v49 = vpop.f32.mrb[42].mxu0 }
0x1055   :  { %v5804_v30 = vadd.f32 %v3232_v36, %v7203_v10  ;;  %v3234_v39 = vpop.f32.mrb[19].mxu1  ;;  %v4734_v40 = vpop.f32.mrb[43].mxu0  ;;  %v3321_v44 = vadd.f32 %v7214_v41, %v3303_v49 }
0x1056   :  { %v5805_v4 = vadd.f32 %v3234_v39, %v7207_v43 }
0x1057   :  { %v3793_v56 = vmul.f32 -1.442695, %v5804_v30 }
0x1058   :  { %v3794_v32 = vmul.f32 -1.442695, %v5805_v4 }
0x1059   :  { %5994 = vpow2.f32 %v3793_v56 }
0x105a   :  { %5996 = vpow2.f32 %v3794_v32 }
0x1063   :  { %v5995_v62 = vpop.eup %5994 }
0x1064   :  { %v3311_v14 = vadd.f32 1.0, %v5995_v62  ;;  %v5997_v50 = vpop.eup %5996 }
0x1065   :  { %v3318_v38 = vadd.f32 1.0, %v5997_v50 }
0x1066   :  { %5998 = vrcp.f32 %v3311_v14 }
0x1067   :  { %6000 = vrcp.f32 %v3318_v38 }
0x1070   :  { %v5999_v57 = vpop.eup %5998 }
0x1071   :  { %v3322_v19 = vmul.f32 %v5999_v57, %v3321_v44 }
0x1073   :  { %v3323_v10 = vadd.f32 %v3322_v19, %v6664_v11  ;;  %v6001_v11 = vpop.eup %6000 }
0x1074   :  { %v4769_v43 = vpop.f32.mrb[36].mxu1  ;;  %v3325_v63 = vsub.f32 1.0, %v6001_v11  ;;  %v3327_v37 = vmul.f32 %v6001_v11, %v7495_v13 }
0x1075   :  { %6002 = vtanh.f32 %v3323_v10  ;;  %v3418_v25 = vpop.f32.mrb[37].mxu1  ;;  %v7553_v12 = vadd.f32 %v4769_v43, %v3795_v15 }
0x1076   :  { %v7551_v46 = vadd.f32 %v3795_v15, %v3418_v25 }
0x1077   :  { %v3461_v1 = vsel %vm3457_vm2, %v7553_v12, -inf }
0x1078   :  { %v4772_v45 = vpop.f32.mrb[38].mxu1  ;;  %v3458_v41 = vsel %vm3457_vm2, %v7551_v46, -inf }
0x1079   :  { %v7557_v61 = vadd.f32 %v4772_v45, %v3795_v15  ;;  %v3428_v23 = vpop.f32.mrb[39].mxu1  ;;  %3459 = vmax.xlane.f32.xlu0 %v3458_v41 }
0x107a   :  { %v7559_v35 = vadd.f32 %v3795_v15, %v3428_v23 }
0x107b   :  { %v3467_v34 = vsel %vm3457_vm2, %v7557_v61, -inf }
0x107c   :  { %3468 = vmax.xlane.f32.xlu1 %v3467_v34  ;;  %v4775_v58 = vpop.f32.mrb[40].mxu1  ;;  %v3464_v26 = vsel %vm3457_vm2, %v7559_v35, -inf }
0x107d   :  { %v3438_v22 = vpop.f32.mrb[41].mxu1  ;;  %3462 = vmax.xlane.f32.xlu0 %v3461_v1  ;;  %v7567_v33 = vadd.f32 %v4775_v58, %v3795_v15 }
0x107e   :  { %v7565_v54 = vadd.f32 %v3795_v15, %v3438_v22 }
0x107f   :  { %v6003_v8 = vpop.eup %6002  ;;  %v3473_v5 = vsel %vm3457_vm2, %v7567_v33, -inf }
0x1080   :  { %3465 = vmax.xlane.f32.xlu1 %v3464_v26  ;;  %v3470_v51 = vsel %vm3457_vm2, %v7565_v54, -inf  ;;  %v3326_v28 = vmul.f32 %v6003_v8, %v3325_v63  ;;  %v3565_v63 = vld [vmem:[%s7705_s12 + $0x8] sm:$0xff]  ;;  %v3566_v8 = vld [vmem:[%s7705_s12 + $0x10] sm:$0xff]  ;;  %v3564_v26 = vld [vmem:[%s7705_s12] sm:$0xff] }
0x1081   :  { %3471 = vmax.xlane.f32.xlu0 %v3470_v51  ;;  %v3567_v51 = vld [vmem:[%s7705_s12 + $0x18] sm:$0xff] }
0x1082   :  { %v3328_v53 = vadd.f32 %v3327_v37, %v3326_v28  ;;  %v3568_v28 = vld [vmem:[%s7705_s12 + $0x20] sm:$0xff]  ;;  %v3569_v37 = vld [vmem:[%s7705_s12 + $0x28] sm:$0xff] }
0x1084   :  { %3474 = vmax.xlane.f32.xlu1 %v3473_v5  ;;  %4777 = vmatmul.mubr.f32.gmra.mrb[42].mxu1 %v3328_v53  ;;  %v3570_v53 = vld [vmem:[%s7705_s12 + $0x30] sm:$0xff]  ;;  %v3571_v5 = vld [vmem:[%s7705_s12 + $0x38] sm:$0xff] }
0x1106   :  { %v7576_v24 = vpop.xlane.xlu0 %3459 }
0x1107   :  { %v3482_v13 = vsub.f32 %v7551_v46, %v7576_v24 }
0x1109   :  { %v7578_v18 = vpop.xlane.xlu1 %3468  ;;  %v3490_v29 = vmul.f32 1.442695, %v3482_v13 }
0x110a   :  { %v7580_v42 = vpop.xlane.xlu0 %3462  ;;  %v3485_v59 = vsub.f32 %v7557_v61, %v7578_v18 }
0x110b   :  { %v3483_v52 = vsub.f32 %v7553_v12, %v7580_v42 }
0x110c   :  { %v3496_v48 = vmul.f32 1.442695, %v3485_v59 }
0x110d   :  { %v7582_v7 = vpop.xlane.xlu1 %3465  ;;  %v3492_v2 = vmul.f32 1.442695, %v3483_v52 }
0x110e   :  { %v3484_v9 = vsub.f32 %v7559_v35, %v7582_v7  ;;  %v7594_v6 = vpop.xlane.xlu0 %3471 }
0x110f   :  { %6004 = vpow2.f32 %v3492_v2  ;;  %v3486_v60 = vsub.f32 %v7565_v54, %v7594_v6 }
0x1110   :  { %6006 = vpow2.f32 %v3490_v29  ;;  %v3494_v20 = vmul.f32 1.442695, %v3484_v9 }
0x1111   :  { %v7592_v55 = vpop.xlane.xlu1 %3474  ;;  %6008 = vpow2.f32 %v3496_v48  ;;  %v3498_v31 = vmul.f32 1.442695, %v3486_v60 }
0x1112   :  { %v3487_v21 = vsub.f32 %v7567_v33, %v7592_v55  ;;  %6010 = vpow2.f32 %v3494_v20 }
0x1114   :  { %v3500_v0 = vmul.f32 1.442695, %v3487_v21 }
0x1116   :  { %6012 = vpow2.f32 %v3500_v0 }
0x1117   :  { %6014 = vpow2.f32 %v3498_v31 }
0x1119   :  { %v6005_v39 = vpop.eup %6004 }
0x111a   :  { %v6007_v56 = vpop.eup %6006  ;;  %v3509_v4 = vsel %vm3457_vm2, %v6005_v39, 0.0 }
0x111b   :  { %v6009_v32 = vpop.eup %6008  ;;  %v3506_v62 = vsel %vm3457_vm2, %v6007_v56, 0.0 }
0x111c   :  { %v6011_v14 = vpop.eup %6010  ;;  %v3515_v50 = vsel %vm3457_vm2, %v6009_v32, 0.0 }
0x111d   :  { %v3512_v44 = vsel %vm3457_vm2, %v6011_v14, 0.0 }
0x1120   :  { %v6013_v38 = vpop.eup %6012 }
0x1121   :  { %v6015_v57 = vpop.eup %6014  ;;  %v3521_v19 = vsel %vm3457_vm2, %v6013_v38, 0.0 }
0x1122   :  { %v3518_v10 = vsel %vm3457_vm2, %v6015_v57, 0.0 }
0x1157   :  { %v4778_v17 = vpop.f32.mrb[42].mxu1 }
0x1158   :  { %v7600_v27 = vadd.f32 %v4778_v17, %v3795_v15  ;;  %v3448_v36 = vpop.f32.mrb[43].mxu1 }
0x1159   :  { %v7602_v49 = vadd.f32 %v3795_v15, %v3448_v36  ;;  %v6041_v15 = vmov 0   ;;  %v7710_v36 = vlaneseq }
0x115a   :  { %v3479_v30 = vsel %vm3457_vm2, %v7600_v27, -inf  ;;  %5843 = vset.pattern.permute.xlu1 %v6041_v15  ;;  %5842 = vset.pattern.permute.xlu0 %v6041_v15 }
0x115b   :  { %3480 = vmax.xlane.f32.xlu1 %v3479_v30  ;;  %v3476_v40 = vsel %vm3457_vm2, %v7602_v49, -inf  ;;  %v7649_v30 = vand.u32 127, %v7710_v36 }
0x115c   :  { %3477 = vmax.xlane.f32.xlu0 %v3476_v40 }
0x115f   :  { %3510 = vadd.xlane.f32.xlu1 %v3509_v4 }
0x1160   :  { %3507 = vadd.xlane.f32.xlu0 %v3506_v62 }
0x1163   :  { %3516 = vadd.xlane.f32.xlu1 %v3515_v50 }
0x1164   :  { %3513 = vadd.xlane.f32.xlu0 %v3512_v44 }
0x1167   :  { %3522 = vadd.xlane.f32.xlu1 %v3521_v19 }
0x1168   :  { %3519 = vadd.xlane.f32.xlu0 %v3518_v10 }
0x11e8   :  { %v7614_v43 = vpop.xlane.xlu1 %3480 }
0x11e9   :  { %v3489_v25 = vsub.f32 %v7600_v27, %v7614_v43  ;;  %v7618_v45 = vpop.xlane.xlu0 %3477 }
0x11ea   :  { %v3488_v41 = vsub.f32 %v7602_v49, %v7618_v45 }
0x11eb   :  { %v3504_v23 = vmul.f32 1.442695, %v3489_v25 }
0x11ec   :  { %v3502_v11 = vmul.f32 1.442695, %v3488_v41  ;;  %v3511_v52 = vpop.xlane.xlu1 %3510 }
0x11ed   :  { %6016 = vpow2.f32 %v3504_v23  ;;  %v3508_v13 = vpop.xlane.xlu0 %3507 }
0x11ee   :  { %6018 = vpow2.f32 %v3502_v11 }
0x11ef   :  { %6020 = vlog2.f32 %v3511_v52 }
0x11f0   :  { %v3517_v59 = vpop.xlane.xlu1 %3516  ;;  %6022 = vlog2.f32 %v3508_v13 }
0x11f1   :  { %v3514_v2 = vpop.xlane.xlu0 %3513  ;;  %6024 = vlog2.f32 %v3517_v59 }
0x11f2   :  { %6026 = vlog2.f32 %v3514_v2 }
0x11f4   :  { %v3523_v29 = vpop.xlane.xlu1 %3522 }
0x11f5   :  { %v3520_v9 = vpop.xlane.xlu0 %3519  ;;  %6028 = vlog2.f32 %v3523_v29 }
0x11f6   :  { %6030 = vlog2.f32 %v3520_v9 }
0x11f7   :  { %v6017_v34 = vpop.eup %6016 }
0x11f8   :  { %v6019_v58 = vpop.eup %6018  ;;  %v3527_v1 = vsel %vm3457_vm2, %v6017_v34, 0.0 }
0x11f9   :  { %3528 = vadd.xlane.f32.xlu1 %v3527_v1  ;;  %v3524_v22 = vsel %vm3457_vm2, %v6019_v58, 0.0  ;;  %v6021_v48 = vpop.eup %6020 }
0x11fa   :  { %3525 = vadd.xlane.f32.xlu0 %v3524_v22  ;;  %v6023_v21 = vpop.eup %6022  ;;  %v3533_v31 = vmul.f32 0.6931472, %v6021_v48 }
0x11fb   :  { %v6025_v60 = vpop.eup %6024  ;;  %v3531_v17 = vmul.f32 0.6931472, %v6023_v21  ;;  %v3634_v21 = vand.u32 7, %v7649_v30 }
0x11fc   :  { %v6027_v0 = vpop.eup %6026  ;;  %v3537_v40 = vmul.f32 0.6931472, %v6025_v60  ;;  %v3547_v32 = vadd.f32 %v3533_v31, %v7580_v42 }
0x11fd   :  { %v3535_v56 = vmul.f32 0.6931472, %v6027_v0  ;;  %v3546_v62 = vadd.f32 %v3531_v17, %v7576_v24  ;;  %vm3642_vm11 = vcmp.eq.s32.totalorder %v3634_v21, %v6621_v16 }
0x11fe   :  { %v3549_v38 = vadd.f32 %v3537_v40, %v7578_v18  ;;  %v3555_v42 = vsub.f32 %v7553_v12, %v3547_v32  ;;  %v3804_v17 = vsel %vm3642_vm11, 1.0, %v6038_v3 }
0x11ff   :  { %v6029_v50 = vpop.eup %6028  ;;  %v3548_v44 = vadd.f32 %v3535_v56, %v7582_v7  ;;  %v3554_v24 = vsub.f32 %v7551_v46, %v3546_v62 }
0x1200   :  { %v6031_v10 = vpop.eup %6030  ;;  %v3541_v25 = vmul.f32 0.6931472, %v6029_v50  ;;  %v3557_v58 = vsub.f32 %v7557_v61, %v3549_v38 }
0x1201   :  { %v3539_v11 = vmul.f32 0.6931472, %v6031_v10  ;;  %v3556_v34 = vsub.f32 %v7559_v35, %v3548_v44 }
0x120a   :  { %3576 = vperm.xlu1 %5843, %v3565_v63   ;;  %v3551_v63 = vadd.f32 %v3541_v25, %v7592_v55 }
0x120e   :  { %3579 = vperm.xlu1 %5843, %v3566_v8  }
0x1210   :  { %3573 = vperm.xlu0 %5842, %v3564_v26  }
0x1212   :  { %3582 = vperm.xlu1 %5843, %v3567_v51   ;;  %v3550_v51 = vadd.f32 %v3539_v11, %v7594_v6 }
0x1214   :  { %v3558_v55 = vsub.f32 %v7565_v54, %v3550_v51 }
0x1216   :  { %3585 = vperm.xlu1 %5843, %v3568_v28  }
0x121a   :  { %3588 = vperm.xlu1 %5843, %v3569_v37   ;;  %v3559_v37 = vsub.f32 %v7567_v33, %v3551_v63 }
0x121e   :  { %3591 = vperm.xlu1 %5843, %v3570_v53  }
0x1222   :  { %3594 = vperm.xlu1 %5843, %v3571_v5  }
0x1286   :  { %v3529_v20 = vpop.xlane.xlu1 %3528 }
0x1287   :  { %v3526_v4 = vpop.xlane.xlu0 %3525  ;;  %6032 = vlog2.f32 %v3529_v20 }
0x1288   :  { %6034 = vlog2.f32 %v3526_v4 }
0x128a   :  { %v3577_v39 = vpop.permute.xlu1 %3576 }
0x128b   :  { %vm3597_vm3 = vcmp.eq.s32.totalorder %v7649_v30, %v3577_v39 }
0x128c   :  { %v3797_v57 = vsel %vm3597_vm3, 1.0, %v6038_v3 }
0x128d   :  { %v3621_v41 = vmul.f32 %v3797_v57, %v3555_v42 }
0x128e   :  { %v3580_v14 = vpop.permute.xlu1 %3579 }
0x128f   :  { %vm3598_vm4 = vcmp.eq.s32.totalorder %v7649_v30, %v3580_v14  ;;  %v3574_v19 = vpop.permute.xlu0 %3573 }
0x1290   :  { %vm3596_vm5 = vcmp.eq.s32.totalorder %v7649_v30, %v3574_v19  ;;  %v3798_v18 = vsel %vm3598_vm4, 1.0, %v6038_v3 }
0x1291   :  { %v3796_v15 = vsel %vm3596_vm5, 1.0, %v6038_v3  ;;  %v3622_v1 = vmul.f32 %v3798_v18, %v3556_v34  ;;  %v6033_v26 = vpop.eup %6032 }
0x1292   :  { %v3620_v23 = vmul.f32 %v3796_v15, %v3554_v24  ;;  %v3583_v7 = vpop.permute.xlu1 %3582  ;;  %v6035_v61 = vpop.eup %6034  ;;  %v3545_v5 = vmul.f32 0.6931472, %v6033_v26 }
0x1293   :  { %vm3599_vm6 = vcmp.eq.s32.totalorder %v7649_v30, %v3583_v7  ;;  %v3543_v52 = vmul.f32 0.6931472, %v6035_v61 }
0x1294   :  { %v5759_v12 = vpack.c.bf16 %v3621_v41, %v3620_v23  ;;  %v3799_v46 = vsel %vm3599_vm6, 1.0, %v6038_v3  ;;  %v3553_v29 = vadd.f32 %v3545_v5, %v7614_v43 }
0x1295   :  { %v3623_v22 = vmul.f32 %v3799_v46, %v3557_v58  ;;  %v3552_v9 = vadd.f32 %v3543_v52, %v7618_v45 }
0x1296   :  { %v3586_v8 = vpop.permute.xlu1 %3585  ;;  %5760 = vmatpush3.bf16.msra.mxu0 %v5759_v12  ;;  %v3561_v60 = vsub.f32 %v7600_v27, %v3553_v29 }
0x1297   :  { %v5762_v28 = vpack.c.bf16 %v3623_v22, %v3622_v1  ;;  %vm3600_vm7 = vcmp.eq.s32.totalorder %v7649_v30, %v3586_v8  ;;  %5761 = vmatprep.subr.bf16.mxu0 %v6039_v47  ;;  %v3560_v20 = vsub.f32 %v7602_v49, %v3552_v9 }
0x1298   :  { %v3800_v35 = vsel %vm3600_vm7, 1.0, %v6038_v3 }
0x1299   :  { %v3624_v13 = vmul.f32 %v3800_v35, %v3558_v55 }
0x129a   :  { %v3589_v53 = vpop.permute.xlu1 %3588  ;;  %5763 = vmatpush3.bf16.msra.mxu0 %v5762_v28 }
0x129b   :  { %vm3601_vm8 = vcmp.eq.s32.totalorder %v7649_v30, %v3589_v53  ;;  %5764 = vmatprep.subr.bf16.mxu0 %v6039_v47 }
0x129c   :  { %v3801_v6 = vsel %vm3601_vm8, 1.0, %v6038_v3 }
0x129d   :  { %v3625_v59 = vmul.f32 %v3801_v6, %v3559_v37 }
0x129e   :  { %v3592_v2 = vpop.permute.xlu1 %3591 }
0x129f   :  { %v5765_v33 = vpack.c.bf16 %v3625_v59, %v3624_v13  ;;  %vm3602_vm9 = vcmp.eq.s32.totalorder %v7649_v30, %v3592_v2 }
0x12a0   :  { %v3802_v48 = vsel %vm3602_vm9, 1.0, %v6038_v3 }
0x12a1   :  { %5766 = vmatpush3.bf16.msra.mxu0 %v5765_v33  ;;  %v3626_v45 = vmul.f32 %v3802_v48, %v3560_v20 }
0x12a2   :  { %v3595_v54 = vpop.permute.xlu1 %3594  ;;  %5767 = vmatprep.subr.bf16.mxu0 %v6039_v47 }
0x12a3   :  { %vm3603_vm10 = vcmp.eq.s32.totalorder %v7649_v30, %v3595_v54 }
0x12a4   :  { %v3803_v43 = vsel %vm3603_vm10, 1.0, %v6038_v3 }
0x12a5   :  { %v3627_v0 = vmul.f32 %v3803_v43, %v3561_v60 }
0x12a7   :  { %v5768_v31 = vpack.c.bf16 %v3627_v0, %v3626_v45 }
0x12a9   :  { %5769 = vmatpush3.bf16.msra.mxu0 %v5768_v31 }
0x12ac   :  { %4796 = vmatmul.mubr.msk.f32.vlgmr.msra.gmra.mrb[44].mxu0 %vm3645_vm12, %v3804_v17 }
0x137f   :  { %v3715_v47 = vpop.f32.mrb[44].mxu0 }
0x1380   :  { %v4797_v36 = vpop.f32.mrb[45].mxu0  ;;  %v3719_v49 = vsel %vm3457_vm2, %v3715_v47, 0.0 }
0x1381   :  { %3720 = vadd.xlane.f32.xlu1 %v3719_v49 }
0x140e   :  { %v3721_v27 = vpop.xlane.xlu1 %3720 }
0x140f   :  { %v3722_v30 = vsub.f32 0.0, %v3721_v27 }
0x1411   :  { %3724 = vst.msk [vmem:[%s7706_s13] sm:$0xff] %vm3723_vm13, %v3722_v30 }

</bundles_post_ra>
